<compile_context>
chip_gen: v6e
topology: v6e:2x2x1
jax: 0.10.0
libtpu: 0.0.40
codegen_flags: <defaults>
</compile_context>

<pallas_src>
import jax
import jax.numpy as jnp
from jax import lax
from jax.experimental import pallas as pl
from jax.experimental.pallas import tpu as pltpu

LEAKY_SLOPE = 0.15
_NEG_BIG = -1e30  # finite sentinel (avoids -inf - -inf = nan in the online softmax)


def _make_kernel(multi_tile: bool):
    """Build the kernel body; `multi_tile` selects the online-softmax carry vs the
    single-shot fast path at trace time."""

    def kernel(
        src_ref, dst_ref, ea_ref, x_ref,
        wkv_ref, bkv_ref,              # fused k|v node projection  [Cin, 2D], [1, 2D]
        wq_ref, bq_ref,                # q projection, 1/sqrt(D) pre-folded
        ws_ref, bs_ref,                # skip projection (x_r)
        w1_ref, b1_ref,                # edge-MLP first linear
        w2we_ref, b2we_ref,            # folded (w2 @ we), duplicated to [D, 2D]
        wba_ref, wbb_ref,              # folded lin_beta rows, [1, D] each
        out_ref,
        kv_sc, q_sc, xr_sc, ids_sc, m_sc, state_sc,
    ):
        f32 = jnp.float32
        bf16 = jnp.bfloat16
        t = pl.program_id(0)
        D = q_sc.shape[1]
        N = kv_sc.shape[0]
        TE = ea_ref.shape[0]
        contract_edges = (((0,), (0,)), ((), ()))

        def node_projections():
            # Per-role scratch buffers: each later matmul RHS is a whole scratch ref
            # (no per-step sub-vreg lane slices of a 128-lane scratch).
            xv = x_ref[...].astype(f32)
            kv_sc[...] = (jnp.dot(xv, wkv_ref[...], preferred_element_type=f32)
                          + bkv_ref[...]).astype(bf16)
            q_sc[...] = (jnp.dot(xv, wq_ref[...], preferred_element_type=f32)
                         + bq_ref[...]).astype(bf16)
            xr_sc[...] = (jnp.dot(xv, ws_ref[...], preferred_element_type=f32)
                          + bs_ref[...])

        def edge_tile_math(ids):
            # edge encoder MLP with w2@we folded; result already duplicated for k|v.
            # TODO(synk): Dropout(0.2) in the edge MLP / attention is eval-mode identity.
            ea = ea_ref[...].astype(f32)                               # bf16 HBM stream
            h = jnp.dot(ea, w1_ref[...], preferred_element_type=f32) + b1_ref[...]
            h = jnp.where(h > 0, h, LEAKY_SLOPE * h)
            e_proj2 = (jnp.dot(h, w2we_ref[...], preferred_element_type=f32)
                       + b2we_ref[...])                                # [TE, 2D]

            src = src_ref[...]                                         # [TE, 1]
            dst = dst_ref[...]
            valid = dst >= 0                                           # padded edges -> -1
            src_oh = (ids == src).astype(bf16)                         # exact in bf16
            dst_mask = ids == dst
            dst_oh = dst_mask.astype(bf16)

            # fused gathers on the MXU (bf16 operands, f32 accumulation)
            kv_j = jnp.dot(src_oh, kv_sc[...], preferred_element_type=f32) + e_proj2
            q_i = jnp.dot(dst_oh, q_sc[...], preferred_element_type=f32)
            k_j = kv_j[:, :D]
            v_j = kv_j[:, D:]
            # 1/sqrt(D) already folded into the q projection
            alpha = jnp.sum(q_i * k_j, axis=-1, keepdims=True)         # [TE, 1]
            return dst_mask, dst_oh, valid, alpha, v_j

        def finalize(state):
            l = state[0:1, :]                                          # [1, N] denom
            acc_t = state[1:, :]                                       # [D, N]
            # isolated target nodes: l == 0, acc == 0 -> agg = 0 (matches PyG)
            inv_l = pl.reciprocal(jnp.where(l > 0, l, f32(1.0)), approx=False)
            agg = jnp.transpose(acc_t * inv_l, (1, 0))                 # [N, D]
            x_r = xr_sc[...]
            # folded lin_beta: agg@(wb1+wb3) + x_r@(wb2-wb3) as VPU mul + lane reduce
            beta_logit = (jnp.sum(agg * wba_ref[...], axis=-1, keepdims=True)
                          + jnp.sum(x_r * wbb_ref[...], axis=-1, keepdims=True))
            beta = jax.nn.sigmoid(beta_logit)
            result = beta * x_r + (1.0 - beta) * agg                   # [N, D]
            pad_cols = out_ref.shape[1] - D
            if pad_cols:                                               # lane-dense store
                result = jnp.concatenate(
                    [result, jnp.zeros((N, pad_cols), f32)], axis=-1)
            out_ref[...] = result.astype(out_ref.dtype)

        if multi_tile:
            # ---------------- online (flash-style) segment softmax over edge tiles ----
            @pl.when(t == 0)
            def _init():
                node_projections()
                ids_sc[...] = lax.broadcasted_iota(jnp.int32, (TE, N), 1)  # hoisted iota
                m_sc[...] = jnp.full(m_sc.shape, _NEG_BIG, f32)
                state_sc[...] = jnp.zeros(state_sc.shape, f32)

            dst_mask, dst_oh, valid, alpha, v_j = edge_tile_math(ids_sc[...])

            m_old = m_sc[...]                                          # [1, N]
            masked = jnp.where(dst_mask, alpha, f32(_NEG_BIG))         # [TE, N]
            m_new = jnp.maximum(m_old, jnp.max(masked, axis=0, keepdims=True))
            corr = jnp.exp(m_old - m_new)                              # [1, N]
            m_e = jnp.sum(jnp.where(dst_mask, m_new, f32(0.0)),
                          axis=-1, keepdims=True)                      # [TE, 1]
            p = jnp.exp(alpha - m_e)                                   # [TE, 1], <= 1
            p = jnp.where(valid, p, f32(0.0))                          # padded edges -> 0

            # fused scatter of (denominator | weighted values): one bf16 MXU contraction
            pm = jnp.concatenate([p, v_j * p], axis=-1).astype(bf16)   # [TE, 1+D]
            state_sc[...] = corr * state_sc[...] + lax.dot_general(
                pm, dst_oh, dimension_numbers=contract_edges,
                preferred_element_type=f32)                            # [1+D, N]
            m_sc[...] = m_new

            @pl.when(t == pl.num_programs(0) - 1)
            def _fin():
                finalize(state_sc[...])
        else:
            # ---------------- single-tile fast path: one-shot segment softmax --------
            node_projections()
            ids = lax.broadcasted_iota(jnp.int32, (TE, N), 1)
            dst_mask, dst_oh, valid, alpha, v_j = edge_tile_math(ids)

            masked = jnp.where(dst_mask, alpha, f32(_NEG_BIG))
            m = jnp.max(masked, axis=0, keepdims=True)                 # [1, N]
            m_e = jnp.sum(jnp.where(dst_mask, m, f32(0.0)), axis=-1, keepdims=True)
            p = jnp.exp(alpha - m_e)
            p = jnp.where(valid, p, f32(0.0))
            pm = jnp.concatenate([p, v_j * p], axis=-1).astype(bf16)
            state = lax.dot_general(pm, dst_oh, dimension_numbers=contract_edges,
                                    preferred_element_type=f32)
            finalize(state)

    return kernel


def _round_up(x, m):
    return ((x + m - 1) // m) * m


def edge_trans_forward(x, edge_index, edge_attr, params, *, edge_tile=512):
    """EdgeTrans forward (eval mode).  x: [N, Cin], edge_index: [2, E] int (row0=src,
    row1=dst), edge_attr: [E, De].  Returns [N, emb_dim]."""
    N, cin = x.shape
    E = edge_index.shape[1]
    De = edge_attr.shape[1]
    D = params["w2"].shape[1]
    scale = 1.0 / (float(D) ** 0.5)

    # ---- host-side weight fusion / folding (free) ----
    w_kv = jnp.concatenate([params["wk"], params["wv"]], axis=1)            # [Cin, 2D]
    b_kv = jnp.concatenate([params["bk"], params["bv"]], axis=1)            # [1, 2D]
    w_q = params["wq"] * scale                                              # scale folded
    b_q = params["bq"] * scale
    w2we = params["w2"] @ params["we"]                                      # fold w2 @ we
    b2we = params["b2"] @ params["we"]
    w2we2 = jnp.concatenate([w2we, w2we], axis=1)                           # [D, 2D] dup k|v
    b2we2 = jnp.concatenate([b2we, b2we], axis=1)                           # [1, 2D]
    wba = (params["wb1"] + params["wb3"]).T                                 # [1, D]
    wbb = (params["wb2"] - params["wb3"]).T                                 # [1, D]

    # ---- pad edge axis to a multiple of the edge tile (padded edges -> index -1) ----
    te = min(edge_tile, _round_up(E, 8))
    e_pad = _round_up(E, te)
    pad = e_pad - E
    n_tiles = e_pad // te
    multi_tile = n_tiles > 1

    src = jnp.pad(edge_index[0].astype(jnp.int32), (0, pad),
                  constant_values=-1).reshape(e_pad, 1)
    dst = jnp.pad(edge_index[1].astype(jnp.int32), (0, pad),
                  constant_values=-1).reshape(e_pad, 1)
    # edge_attr is the only O(E) HBM stream -> ship bf16, upcast in-kernel
    ea = jnp.pad(edge_attr.astype(jnp.bfloat16), ((0, pad), (0, 0)))

    out_pad = _round_up(D, 128)        # lane-dense final store; sliced off below

    tiled = lambda t: (t, 0)           # edge-tile blocks (pipelined)
    const = lambda t: (0, 0)           # resident blocks (DMA'd once)

    grid_spec = pltpu.PrefetchScalarGridSpec(
        num_scalar_prefetch=0,
        grid=(n_tiles,),
        in_specs=[
            pl.BlockSpec((te, 1), tiled),          # src indices
            pl.BlockSpec((te, 1), tiled),          # dst indices
            pl.BlockSpec((te, De), tiled),         # edge_attr tile (bf16)
            pl.BlockSpec((N, cin), const),         # x
            pl.BlockSpec((cin, 2 * D), const),     # w_kv
            pl.BlockSpec((1, 2 * D), const),       # b_kv
            pl.BlockSpec((cin, D), const),         # w_q (scaled)
            pl.BlockSpec((1, D), const),           # b_q (scaled)
            pl.BlockSpec((cin, D), const),         # w_skip
            pl.BlockSpec((1, D), const),           # b_skip
            pl.BlockSpec((De, D), const),          # edge MLP w1
            pl.BlockSpec((1, D), const),           # edge MLP b1
            pl.BlockSpec((D, 2 * D), const),       # folded w2@we, duplicated
            pl.BlockSpec((1, 2 * D), const),       # folded b2@we, duplicated
            pl.BlockSpec((1, D), const),           # folded beta row A
            pl.BlockSpec((1, D), const),           # folded beta row B
        ],
        out_specs=pl.BlockSpec((N, out_pad), const),
        scratch_shapes=[
            pltpu.VMEM((N, 2 * D), jnp.bfloat16),      # k|v projections (gather RHS)
            pltpu.VMEM((N, D), jnp.bfloat16),          # q projection (gather RHS)
            pltpu.VMEM((N, D), jnp.float32),           # skip projection x_r
            pltpu.VMEM((te, N), jnp.int32),            # hoisted node-id iota
            pltpu.VMEM((1, N), jnp.float32),           # running per-node max
            pltpu.VMEM((1 + D, N), jnp.float32),       # denom (row 0) + value acc^T
        ],
    )

    out_padded = pl.pallas_call(
        _make_kernel(multi_tile),
        out_shape=jax.ShapeDtypeStruct((N, out_pad), jnp.float32),
        grid_spec=grid_spec,
        # Edge axis is a carried reduction.  Note: this pins the kernel to one
        # TensorCore on v7x; a 2-way edge split + combine pass only pays at large E.
        compiler_params=pltpu.CompilerParams(
            dimension_semantics=("arbitrary",),
            vmem_limit_bytes=48 * 1024 * 1024),
    )(src, dst, ea, x.astype(jnp.float32),
      w_kv, b_kv, w_q, b_q, params["ws"], params["bs"],
      params["w1"], params["b1"], w2we2, b2we2, wba, wbb)
    return out_padded[:, :D]


def reference_forward(x, edge_index, edge_attr, p, num_nodes):
    """Pure-JAX reference mirroring PyG TransformerConv semantics."""
    h = edge_attr @ p["w1"] + p["b1"]
    h = jnp.where(h > 0, h, LEAKY_SLOPE * h)
    edge_emb = h @ p["w2"] + p["b2"]
    q = x @ p["wq"] + p["bq"]
    k = x @ p["wk"] + p["bk"]
    v = x @ p["wv"] + p["bv"]
    e_proj = edge_emb @ p["we"]
    src, dst = edge_index[0], edge_index[1]
    q_i, k_j, v_j = q[dst], k[src] + e_proj, v[src] + e_proj
    D = q.shape[-1]
    alpha = (q_i * k_j).sum(-1) / jnp.sqrt(jnp.float32(D))
    m = jax.ops.segment_max(alpha, dst, num_segments=num_nodes)
    exp_a = jnp.exp(alpha - m[dst])
    denom = jax.ops.segment_sum(exp_a, dst, num_segments=num_nodes)
    alpha_n = exp_a / denom[dst]
    agg = jax.ops.segment_sum(v_j * alpha_n[:, None], dst, num_segments=num_nodes)
    x_r = x @ p["ws"] + p["bs"]
    wb = jnp.concatenate([p["wb1"], p["wb2"], p["wb3"]], axis=0)
    cat = jnp.concatenate([agg, x_r, agg - x_r], axis=-1)
    beta = jax.nn.sigmoid(cat @ wb)
    return beta * x_r + (1.0 - beta) * agg


def make_params(key, in_channels, emb_dim, edge_input_dim):
    ks = jax.random.split(key, 16)
    s = 0.1

    def w(k, shape):
        return jax.random.normal(k, shape, jnp.float32) * s

    return {
        # edge encoder
        "w1": w(ks[0], (edge_input_dim, emb_dim)), "b1": w(ks[1], (1, emb_dim)),
        "w2": w(ks[2], (emb_dim, emb_dim)),        "b2": w(ks[3], (1, emb_dim)),
        # TransformerConv projections
        "wq": w(ks[4], (in_channels, emb_dim)), "bq": w(ks[5], (1, emb_dim)),
        "wk": w(ks[6], (in_channels, emb_dim)), "bk": w(ks[7], (1, emb_dim)),
        "wv": w(ks[8], (in_channels, emb_dim)), "bv": w(ks[9], (1, emb_dim)),
        "we": w(ks[10], (emb_dim, emb_dim)),                      # lin_edge (no bias)
        "ws": w(ks[11], (in_channels, emb_dim)), "bs": w(ks[12], (1, emb_dim)),  # lin_skip
        # lin_beta (no bias), split into the three concat segments
        "wb1": w(ks[13], (emb_dim, 1)),
        "wb2": w(ks[14], (emb_dim, 1)),
        "wb3": w(ks[15], (emb_dim, 1)),
    }


if __name__ == "__main__":
    N, E = 16, 200              # nodes, edges
    in_channels = 8
    emb_dim = 32
    edge_input_dim = 7

    root = jax.random.PRNGKey(0)
    k_x, k_ei, k_ea, k_p = jax.random.split(root, 4)

    x = jax.random.normal(k_x, (N, in_channels), jnp.float32)
    edge_index = jax.random.randint(k_ei, (2, E), 0, N, dtype=jnp.int32)
    edge_attr = jax.random.normal(k_ea, (E, edge_input_dim), jnp.float32)
    params = make_params(k_p, in_channels, emb_dim, edge_input_dim)

    ref = reference_forward(x, edge_index, edge_attr, params, N)

    # default tile covers all 200 edges -> single-tile fast path (no softmax carry)
    out_single = jax.block_until_ready(
        edge_trans_forward(x, edge_index, edge_attr, params))
    # edge_tile=64 -> 4 grid steps, exercising the online (multi-tile) segment softmax
    out_multi = jax.block_until_ready(
        edge_trans_forward(x, edge_index, edge_attr, params, edge_tile=64))

    assert out_single.shape == (N, emb_dim)
    assert out_multi.shape == (N, emb_dim)
    # tolerance accounts for bf16 MXU operands (one-hot gather/scatter) and the bf16
    # edge_attr stream; accumulation stays f32 so errors are ~1e-3 worst case.
    assert jnp.allclose(out_single, ref, rtol=5e-3, atol=5e-3), "single-tile mismatch"
    assert jnp.allclose(out_multi, ref, rtol=5e-3, atol=5e-3), "multi-tile mismatch"
    print("KERNEL_OK")
</pallas_src>

<mosaic_0001>
module attributes {stable_mosaic.version = 11 : i64} {
  func.func @kernel(%arg0: i32, %arg1: memref<200x1xi32, #tpu.memory_space<vmem>>, %arg2: memref<200x1xi32, #tpu.memory_space<vmem>>, %arg3: memref<200x7xbf16, #tpu.memory_space<vmem>>, %arg4: memref<16x8xf32, #tpu.memory_space<vmem>>, %arg5: memref<8x64xf32, #tpu.memory_space<vmem>>, %arg6: memref<1x64xf32, #tpu.memory_space<vmem>>, %arg7: memref<8x32xf32, #tpu.memory_space<vmem>>, %arg8: memref<1x32xf32, #tpu.memory_space<vmem>>, %arg9: memref<8x32xf32, #tpu.memory_space<vmem>>, %arg10: memref<1x32xf32, #tpu.memory_space<vmem>>, %arg11: memref<7x32xf32, #tpu.memory_space<vmem>>, %arg12: memref<1x32xf32, #tpu.memory_space<vmem>>, %arg13: memref<32x64xf32, #tpu.memory_space<vmem>>, %arg14: memref<1x64xf32, #tpu.memory_space<vmem>>, %arg15: memref<1x32xf32, #tpu.memory_space<vmem>>, %arg16: memref<1x32xf32, #tpu.memory_space<vmem>>, %arg17: memref<16x128xf32, #tpu.memory_space<vmem>>, %arg18: memref<16x64xbf16, #tpu.memory_space<vmem>>, %arg19: memref<16x32xbf16, #tpu.memory_space<vmem>>, %arg20: memref<16x32xf32, #tpu.memory_space<vmem>>, %arg21: memref<200x16xi32, #tpu.memory_space<vmem>>, %arg22: memref<1x16xf32, #tpu.memory_space<vmem>>, %arg23: memref<33x16xf32, #tpu.memory_space<vmem>>) attributes {dimension_semantics = [#tpu.dimension_semantics<arbitrary>], iteration_bounds = array<i64: 1>, scalar_prefetch = 0 : i64, scratch_operands = 6 : i64, tpu.core_type = #tpu.core_type<tc>, window_params = [{transform_indices = @transform_0, window_bounds = array<i64: 200, 1>}, {transform_indices = @transform_1, window_bounds = array<i64: 200, 1>}, {transform_indices = @transform_2, window_bounds = array<i64: 200, 7>}, {pipeline_mode = #tpu.pipeline_mode<synchronous>, transform_indices = @transform_3, window_bounds = array<i64: 16, 8>}, {pipeline_mode = #tpu.pipeline_mode<synchronous>, transform_indices = @transform_4, window_bounds = array<i64: 8, 64>}, {pipeline_mode = #tpu.pipeline_mode<synchronous>, transform_indices = @transform_5, window_bounds = array<i64: 1, 64>}, {pipeline_mode = #tpu.pipeline_mode<synchronous>, transform_indices = @transform_6, window_bounds = array<i64: 8, 32>}, {pipeline_mode = #tpu.pipeline_mode<synchronous>, transform_indices = @transform_7, window_bounds = array<i64: 1, 32>}, {pipeline_mode = #tpu.pipeline_mode<synchronous>, transform_indices = @transform_8, window_bounds = array<i64: 8, 32>}, {pipeline_mode = #tpu.pipeline_mode<synchronous>, transform_indices = @transform_9, window_bounds = array<i64: 1, 32>}, {pipeline_mode = #tpu.pipeline_mode<synchronous>, transform_indices = @transform_10, window_bounds = array<i64: 7, 32>}, {pipeline_mode = #tpu.pipeline_mode<synchronous>, transform_indices = @transform_11, window_bounds = array<i64: 1, 32>}, {pipeline_mode = #tpu.pipeline_mode<synchronous>, transform_indices = @transform_12, window_bounds = array<i64: 32, 64>}, {pipeline_mode = #tpu.pipeline_mode<synchronous>, transform_indices = @transform_13, window_bounds = array<i64: 1, 64>}, {pipeline_mode = #tpu.pipeline_mode<synchronous>, transform_indices = @transform_14, window_bounds = array<i64: 1, 32>}, {pipeline_mode = #tpu.pipeline_mode<synchronous>, transform_indices = @transform_15, window_bounds = array<i64: 1, 32>}, {pipeline_mode = #tpu.pipeline_mode<synchronous>, transform_indices = @transform_16, window_bounds = array<i64: 16, 128>}]} {
    %c0 = arith.constant 0 : index
    %c0_0 = arith.constant 0 : index
    %0 = vector.load %arg4[%c0, %c0_0] : memref<16x8xf32, #tpu.memory_space<vmem>>, vector<16x8xf32>
    %c0_1 = arith.constant 0 : index
    %c0_2 = arith.constant 0 : index
    %1 = vector.load %arg5[%c0_1, %c0_2] : memref<8x64xf32, #tpu.memory_space<vmem>>, vector<8x64xf32>
    %cst = arith.constant dense<0.000000e+00> : vector<16x64xf32>
    %2 = tpu.matmul %0, %1, %cst {dimension_numbers = #tpu.dot_dimension_numbers<[1], [0], [0], [1], [0, 0, 1, 1], [], []>} : vector<16x8xf32>, vector<8x64xf32>, vector<16x64xf32> -> vector<16x64xf32>
    %c0_3 = arith.constant 0 : index
    %c0_4 = arith.constant 0 : index
    %3 = vector.load %arg6[%c0_3, %c0_4] : memref<1x64xf32, #tpu.memory_space<vmem>>, vector<1x64xf32>
    %4 = vector.broadcast %3 : vector<1x64xf32> to vector<16x64xf32>
    %5 = arith.addf %2, %4 : vector<16x64xf32>
    %6 = arith.truncf %5 : vector<16x64xf32> to vector<16x64xbf16>
    %c0_5 = arith.constant 0 : index
    %c0_6 = arith.constant 0 : index
    %7 = vector.load %arg18[%c0_5, %c0_6] : memref<16x64xbf16, #tpu.memory_space<vmem>>, vector<16x64xbf16>
    tpu.vector_store %arg18[%c0_5, %c0_6], %6 {strides = array<i32>} : memref<16x64xbf16, #tpu.memory_space<vmem>>, vector<16x64xbf16>,
    %c0_7 = arith.constant 0 : index
    %c0_8 = arith.constant 0 : index
    %8 = vector.load %arg7[%c0_7, %c0_8] : memref<8x32xf32, #tpu.memory_space<vmem>>, vector<8x32xf32>
    %cst_9 = arith.constant dense<0.000000e+00> : vector<16x32xf32>
    %9 = tpu.matmul %0, %8, %cst_9 {dimension_numbers = #tpu.dot_dimension_numbers<[1], [0], [0], [1], [0, 0, 1, 1], [], []>} : vector<16x8xf32>, vector<8x32xf32>, vector<16x32xf32> -> vector<16x32xf32>
    %c0_10 = arith.constant 0 : index
    %c0_11 = arith.constant 0 : index
    %10 = vector.load %arg8[%c0_10, %c0_11] : memref<1x32xf32, #tpu.memory_space<vmem>>, vector<1x32xf32>
    %11 = vector.broadcast %10 : vector<1x32xf32> to vector<16x32xf32>
    %12 = arith.addf %9, %11 : vector<16x32xf32>
    %13 = arith.truncf %12 : vector<16x32xf32> to vector<16x32xbf16>
    %c0_12 = arith.constant 0 : index
    %c0_13 = arith.constant 0 : index
    %14 = vector.load %arg19[%c0_12, %c0_13] : memref<16x32xbf16, #tpu.memory_space<vmem>>, vector<16x32xbf16>
    tpu.vector_store %arg19[%c0_12, %c0_13], %13 {strides = array<i32>} : memref<16x32xbf16, #tpu.memory_space<vmem>>, vector<16x32xbf16>,
    %c0_14 = arith.constant 0 : index
    %c0_15 = arith.constant 0 : index
    %15 = vector.load %arg9[%c0_14, %c0_15] : memref<8x32xf32, #tpu.memory_space<vmem>>, vector<8x32xf32>
    %cst_16 = arith.constant dense<0.000000e+00> : vector<16x32xf32>
    %16 = tpu.matmul %0, %15, %cst_16 {dimension_numbers = #tpu.dot_dimension_numbers<[1], [0], [0], [1], [0, 0, 1, 1], [], []>} : vector<16x8xf32>, vector<8x32xf32>, vector<16x32xf32> -> vector<16x32xf32>
    %c0_17 = arith.constant 0 : index
    %c0_18 = arith.constant 0 : index
    %17 = vector.load %arg10[%c0_17, %c0_18] : memref<1x32xf32, #tpu.memory_space<vmem>>, vector<1x32xf32>
    %18 = vector.broadcast %17 : vector<1x32xf32> to vector<16x32xf32>
    %19 = arith.addf %16, %18 : vector<16x32xf32>
    %c0_19 = arith.constant 0 : index
    %c0_20 = arith.constant 0 : index
    %20 = vector.load %arg20[%c0_19, %c0_20] : memref<16x32xf32, #tpu.memory_space<vmem>>, vector<16x32xf32>
    tpu.vector_store %arg20[%c0_19, %c0_20], %19 {strides = array<i32>} : memref<16x32xf32, #tpu.memory_space<vmem>>, vector<16x32xf32>,
    %21 = tpu.iota {dimensions = array<i32: 1>} : vector<200x16xi32>
    %c0_21 = arith.constant 0 : index
    %c0_22 = arith.constant 0 : index
    %22 = vector.load %arg3[%c0_21, %c0_22] : memref<200x7xbf16, #tpu.memory_space<vmem>>, vector<200x7xbf16>
    %23 = arith.extf %22 : vector<200x7xbf16> to vector<200x7xf32>
    %c0_23 = arith.constant 0 : index
    %c0_24 = arith.constant 0 : index
    %24 = vector.load %arg11[%c0_23, %c0_24] : memref<7x32xf32, #tpu.memory_space<vmem>>, vector<7x32xf32>
    %cst_25 = arith.constant dense<0.000000e+00> : vector<200x32xf32>
    %25 = tpu.matmul %23, %24, %cst_25 {dimension_numbers = #tpu.dot_dimension_numbers<[1], [0], [0], [1], [0, 0, 1, 1], [], []>} : vector<200x7xf32>, vector<7x32xf32>, vector<200x32xf32> -> vector<200x32xf32>
    %c0_26 = arith.constant 0 : index
    %c0_27 = arith.constant 0 : index
    %26 = vector.load %arg12[%c0_26, %c0_27] : memref<1x32xf32, #tpu.memory_space<vmem>>, vector<1x32xf32>
    %27 = vector.broadcast %26 : vector<1x32xf32> to vector<200x32xf32>
    %28 = arith.addf %25, %27 : vector<200x32xf32>
    %cst_28 = arith.constant 0.000000e+00 : f32
    %29 = vector.broadcast %cst_28 : f32 to vector<200x32xf32>
    %30 = arith.cmpf ogt, %28, %29 : vector<200x32xf32>
    %cst_29 = arith.constant 1.500000e-01 : f32
    %31 = vector.broadcast %cst_29 : f32 to vector<200x32xf32>
    %32 = arith.mulf %31, %28 : vector<200x32xf32>
    %33 = arith.select %30, %28, %32 : vector<200x32xi1>, vector<200x32xf32>
    %c0_30 = arith.constant 0 : index
    %c0_31 = arith.constant 0 : index
    %34 = vector.load %arg13[%c0_30, %c0_31] : memref<32x64xf32, #tpu.memory_space<vmem>>, vector<32x64xf32>
    %cst_32 = arith.constant dense<0.000000e+00> : vector<200x64xf32>
    %35 = tpu.matmul %33, %34, %cst_32 {dimension_numbers = #tpu.dot_dimension_numbers<[1], [0], [0], [1], [0, 0, 1, 1], [], []>} : vector<200x32xf32>, vector<32x64xf32>, vector<200x64xf32> -> vector<200x64xf32>
    %c0_33 = arith.constant 0 : index
    %c0_34 = arith.constant 0 : index
    %36 = vector.load %arg14[%c0_33, %c0_34] : memref<1x64xf32, #tpu.memory_space<vmem>>, vector<1x64xf32>
    %37 = vector.broadcast %36 : vector<1x64xf32> to vector<200x64xf32>
    %38 = arith.addf %35, %37 : vector<200x64xf32>
    %c0_35 = arith.constant 0 : index
    %c0_36 = arith.constant 0 : index
    %39 = vector.load %arg1[%c0_35, %c0_36] : memref<200x1xi32, #tpu.memory_space<vmem>>, vector<200x1xi32>
    %c0_37 = arith.constant 0 : index
    %c0_38 = arith.constant 0 : index
    %40 = vector.load %arg2[%c0_37, %c0_38] : memref<200x1xi32, #tpu.memory_space<vmem>>, vector<200x1xi32>
    %c0_i32 = arith.constant 0 : i32
    %41 = vector.broadcast %c0_i32 : i32 to vector<200x1xi32>
    %42 = arith.cmpi sge, %40, %41 : vector<200x1xi32>
    %43 = vector.broadcast %39 : vector<200x1xi32> to vector<200x16xi32>
    %44 = arith.cmpi eq, %21, %43 : vector<200x16xi32>
    %45 = arith.extui %44 : vector<200x16xi1> to vector<200x16xi32>
    %46 = arith.sitofp %45 : vector<200x16xi32> to vector<200x16xf32>
    %47 = arith.truncf %46 : vector<200x16xf32> to vector<200x16xbf16>
    %48 = vector.broadcast %40 : vector<200x1xi32> to vector<200x16xi32>
    %49 = arith.cmpi eq, %21, %48 : vector<200x16xi32>
    %50 = arith.extui %49 : vector<200x16xi1> to vector<200x16xi32>
    %51 = arith.sitofp %50 : vector<200x16xi32> to vector<200x16xf32>
    %52 = arith.truncf %51 : vector<200x16xf32> to vector<200x16xbf16>
    %c0_39 = arith.constant 0 : index
    %c0_40 = arith.constant 0 : index
    %53 = vector.load %arg18[%c0_39, %c0_40] : memref<16x64xbf16, #tpu.memory_space<vmem>>, vector<16x64xbf16>
    %cst_41 = arith.constant dense<0.000000e+00> : vector<200x64xf32>
    %54 = tpu.matmul %47, %53, %cst_41 {dimension_numbers = #tpu.dot_dimension_numbers<[1], [0], [0], [1], [0, 0, 1, 1], [], []>} : vector<200x16xbf16>, vector<16x64xbf16>, vector<200x64xf32> -> vector<200x64xf32>
    %55 = arith.addf %54, %38 : vector<200x64xf32>
    %c0_42 = arith.constant 0 : index
    %c0_43 = arith.constant 0 : index
    %56 = vector.load %arg19[%c0_42, %c0_43] : memref<16x32xbf16, #tpu.memory_space<vmem>>, vector<16x32xbf16>
    %cst_44 = arith.constant dense<0.000000e+00> : vector<200x32xf32>
    %57 = tpu.matmul %52, %56, %cst_44 {dimension_numbers = #tpu.dot_dimension_numbers<[1], [0], [0], [1], [0, 0, 1, 1], [], []>} : vector<200x16xbf16>, vector<16x32xbf16>, vector<200x32xf32> -> vector<200x32xf32>
    %58 = vector.extract_strided_slice %55 {offsets = [0, 0], sizes = [200, 32], strides = [1, 1]} : vector<200x64xf32> to vector<200x32xf32>
    %59 = vector.extract_strided_slice %55 {offsets = [0, 32], sizes = [200, 32], strides = [1, 1]} : vector<200x64xf32> to vector<200x32xf32>
    %60 = arith.mulf %57, %58 : vector<200x32xf32>
    %cst_45 = arith.constant dense<0.000000e+00> : vector<200xf32>
    %61 = vector.multi_reduction <add>, %60, %cst_45 [1] : vector<200x32xf32> to vector<200xf32>
    %62 = vector.shape_cast %61 : vector<200xf32> to vector<200x1xf32>
    %cst_46 = arith.constant -1.000000e+30 : f32
    %63 = vector.shape_cast %62 : vector<200x1xf32> to vector<200x1xf32>
    %64 = vector.broadcast %63 : vector<200x1xf32> to vector<200x16xf32>
    %65 = vector.broadcast %cst_46 : f32 to vector<200x16xf32>
    %66 = arith.select %49, %64, %65 : vector<200x16xi1>, vector<200x16xf32>
    %cst_47 = arith.constant dense<0xFF800000> : vector<16xf32>
    %67 = vector.multi_reduction <maximumf>, %66, %cst_47 [0] : vector<200x16xf32> to vector<16xf32>
    %68 = vector.shape_cast %67 : vector<16xf32> to vector<1x16xf32>
    %cst_48 = arith.constant 0.000000e+00 : f32
    %69 = vector.shape_cast %68 : vector<1x16xf32> to vector<1x16xf32>
    %70 = vector.broadcast %69 : vector<1x16xf32> to vector<200x16xf32>
    %71 = vector.broadcast %cst_48 : f32 to vector<200x16xf32>
    %72 = arith.select %49, %70, %71 : vector<200x16xi1>, vector<200x16xf32>
    %cst_49 = arith.constant dense<0.000000e+00> : vector<200xf32>
    %73 = vector.multi_reduction <add>, %72, %cst_49 [1] : vector<200x16xf32> to vector<200xf32>
    %74 = vector.shape_cast %73 : vector<200xf32> to vector<200x1xf32>
    %75 = arith.subf %62, %74 : vector<200x1xf32>
    %76 = math.exp %75 : vector<200x1xf32>
    %cst_50 = arith.constant 0.000000e+00 : f32
    %77 = vector.broadcast %cst_50 : f32 to vector<200x1xf32>
    %78 = arith.select %42, %76, %77 : vector<200x1xi1>, vector<200x1xf32>
    %79 = vector.broadcast %78 : vector<200x1xf32> to vector<200x32xf32>
    %80 = arith.mulf %59, %79 : vector<200x32xf32>
    %81 = tpu.concatenate %78, %80 in 1 : vector<200x1xf32>, vector<200x32xf32> -> vector<200x33xf32>
    %82 = arith.truncf %81 : vector<200x33xf32> to vector<200x33xbf16>
    %cst_51 = arith.constant dense<0.000000e+00> : vector<33x16xf32>
    %83 = tpu.matmul %82, %52, %cst_51 {dimension_numbers = #tpu.dot_dimension_numbers<[0], [0], [1], [1], [0, 1, 1, 1], [], []>} : vector<200x33xbf16>, vector<200x16xbf16>, vector<33x16xf32> -> vector<33x16xf32>
    %84 = vector.extract_strided_slice %83 {offsets = [0, 0], sizes = [1, 16], strides = [1, 1]} : vector<33x16xf32> to vector<1x16xf32>
    %85 = vector.extract_strided_slice %83 {offsets = [1, 0], sizes = [32, 16], strides = [1, 1]} : vector<33x16xf32> to vector<32x16xf32>
    %cst_52 = arith.constant 0.000000e+00 : f32
    %86 = vector.broadcast %cst_52 : f32 to vector<1x16xf32>
    %87 = arith.cmpf ogt, %84, %86 : vector<1x16xf32>
    %cst_53 = arith.constant 1.000000e+00 : f32
    %88 = vector.broadcast %cst_53 : f32 to vector<1x16xf32>
    %89 = arith.select %87, %84, %88 : vector<1x16xi1>, vector<1x16xf32>
    %90 = tpu.reciprocal %89 : vector<1x16xf32> -> vector<1x16xf32>
    %91 = vector.broadcast %90 : vector<1x16xf32> to vector<32x16xf32>
    %92 = arith.mulf %85, %91 : vector<32x16xf32>
    %93 = tpu.transpose %92, [1, 0] : vector<32x16xf32> -> vector<16x32xf32>
    %c0_54 = arith.constant 0 : index
    %c0_55 = arith.constant 0 : index
    %94 = vector.load %arg20[%c0_54, %c0_55] : memref<16x32xf32, #tpu.memory_space<vmem>>, vector<16x32xf32>
    %c0_56 = arith.constant 0 : index
    %c0_57 = arith.constant 0 : index
    %95 = vector.load %arg15[%c0_56, %c0_57] : memref<1x32xf32, #tpu.memory_space<vmem>>, vector<1x32xf32>
    %96 = vector.broadcast %95 : vector<1x32xf32> to vector<16x32xf32>
    %97 = arith.mulf %93, %96 : vector<16x32xf32>
    %cst_58 = arith.constant dense<0.000000e+00> : vector<16xf32>
    %98 = vector.multi_reduction <add>, %97, %cst_58 [1] : vector<16x32xf32> to vector<16xf32>
    %99 = vector.shape_cast %98 : vector<16xf32> to vector<16x1xf32>
    %c0_59 = arith.constant 0 : index
    %c0_60 = arith.constant 0 : index
    %100 = vector.load %arg16[%c0_59, %c0_60] : memref<1x32xf32, #tpu.memory_space<vmem>>, vector<1x32xf32>
    %101 = vector.broadcast %100 : vector<1x32xf32> to vector<16x32xf32>
    %102 = arith.mulf %94, %101 : vector<16x32xf32>
    %cst_61 = arith.constant dense<0.000000e+00> : vector<16xf32>
    %103 = vector.multi_reduction <add>, %102, %cst_61 [1] : vector<16x32xf32> to vector<16xf32>
    %104 = vector.shape_cast %103 : vector<16xf32> to vector<16x1xf32>
    %105 = arith.addf %99, %104 : vector<16x1xf32>
    %106 = arith.negf %105 : vector<16x1xf32>
    %107 = math.exp %106 : vector<16x1xf32>
    %cst_62 = arith.constant 1.000000e+00 : f32
    %108 = vector.broadcast %cst_62 : f32 to vector<16x1xf32>
    %109 = arith.addf %108, %107 : vector<16x1xf32>
    %110 = arith.divf %108, %109 : vector<16x1xf32>
    %111 = vector.broadcast %110 : vector<16x1xf32> to vector<16x32xf32>
    %112 = arith.mulf %111, %94 : vector<16x32xf32>
    %cst_63 = arith.constant 1.000000e+00 : f32
    %113 = vector.broadcast %cst_63 : f32 to vector<16x1xf32>
    %114 = arith.subf %113, %110 : vector<16x1xf32>
    %115 = vector.broadcast %114 : vector<16x1xf32> to vector<16x32xf32>
    %116 = arith.mulf %115, %93 : vector<16x32xf32>
    %117 = arith.addf %112, %116 : vector<16x32xf32>
    %cst_64 = arith.constant 0.000000e+00 : f32
    %118 = vector.broadcast %cst_64 : f32 to vector<16x96xf32>
    %119 = tpu.concatenate %117, %118 in 1 : vector<16x32xf32>, vector<16x96xf32> -> vector<16x128xf32>
    %c0_65 = arith.constant 0 : index
    %c0_66 = arith.constant 0 : index
    %120 = vector.load %arg17[%c0_65, %c0_66] : memref<16x128xf32, #tpu.memory_space<vmem>>, vector<16x128xf32>
    tpu.vector_store %arg17[%c0_65, %c0_66], %119 {strides = array<i32>} : memref<16x128xf32, #tpu.memory_space<vmem>>, vector<16x128xf32>,
    return
  }
  func.func @transform_0(%arg0: i32) -> (i32, i32) {
    %c0_i32 = arith.constant 0 : i32
    %c0_i32_0 = arith.constant 0 : i32
    return %arg0, %c0_i32 : i32, i32
  }
  func.func @transform_1(%arg0: i32) -> (i32, i32) {
    %c0_i32 = arith.constant 0 : i32
    %c0_i32_0 = arith.constant 0 : i32
    return %arg0, %c0_i32 : i32, i32
  }
  func.func @transform_2(%arg0: i32) -> (i32, i32) {
    %c0_i32 = arith.constant 0 : i32
    %c0_i32_0 = arith.constant 0 : i32
    return %arg0, %c0_i32 : i32, i32
  }
  func.func @transform_3(%arg0: i32) -> (i32, i32) {
    %c0_i32 = arith.constant 0 : i32
    %c0_i32_0 = arith.constant 0 : i32
    %c0_i32_1 = arith.constant 0 : i32
    return %c0_i32, %c0_i32_0 : i32, i32
  }
  func.func @transform_4(%arg0: i32) -> (i32, i32) {
    %c0_i32 = arith.constant 0 : i32
    %c0_i32_0 = arith.constant 0 : i32
    %c0_i32_1 = arith.constant 0 : i32
    return %c0_i32, %c0_i32_0 : i32, i32
  }
  func.func @transform_5(%arg0: i32) -> (i32, i32) {
    %c0_i32 = arith.constant 0 : i32
    %c0_i32_0 = arith.constant 0 : i32
    %c0_i32_1 = arith.constant 0 : i32
    return %c0_i32, %c0_i32_0 : i32, i32
  }
  func.func @transform_6(%arg0: i32) -> (i32, i32) {
    %c0_i32 = arith.constant 0 : i32
    %c0_i32_0 = arith.constant 0 : i32
    %c0_i32_1 = arith.constant 0 : i32
    return %c0_i32, %c0_i32_0 : i32, i32
  }
  func.func @transform_7(%arg0: i32) -> (i32, i32) {
    %c0_i32 = arith.constant 0 : i32
    %c0_i32_0 = arith.constant 0 : i32
    %c0_i32_1 = arith.constant 0 : i32
    return %c0_i32, %c0_i32_0 : i32, i32
  }
  func.func @transform_8(%arg0: i32) -> (i32, i32) {
    %c0_i32 = arith.constant 0 : i32
    %c0_i32_0 = arith.constant 0 : i32
    %c0_i32_1 = arith.constant 0 : i32
    return %c0_i32, %c0_i32_0 : i32, i32
  }
  func.func @transform_9(%arg0: i32) -> (i32, i32) {
    %c0_i32 = arith.constant 0 : i32
    %c0_i32_0 = arith.constant 0 : i32
    %c0_i32_1 = arith.constant 0 : i32
    return %c0_i32, %c0_i32_0 : i32, i32
  }
  func.func @transform_10(%arg0: i32) -> (i32, i32) {
    %c0_i32 = arith.constant 0 : i32
    %c0_i32_0 = arith.constant 0 : i32
    %c0_i32_1 = arith.constant 0 : i32
    return %c0_i32, %c0_i32_0 : i32, i32
  }
  func.func @transform_11(%arg0: i32) -> (i32, i32) {
    %c0_i32 = arith.constant 0 : i32
    %c0_i32_0 = arith.constant 0 : i32
    %c0_i32_1 = arith.constant 0 : i32
    return %c0_i32, %c0_i32_0 : i32, i32
  }
  func.func @transform_12(%arg0: i32) -> (i32, i32) {
    %c0_i32 = arith.constant 0 : i32
    %c0_i32_0 = arith.constant 0 : i32
    %c0_i32_1 = arith.constant 0 : i32
    return %c0_i32, %c0_i32_0 : i32, i32
  }
  func.func @transform_13(%arg0: i32) -> (i32, i32) {
    %c0_i32 = arith.constant 0 : i32
    %c0_i32_0 = arith.constant 0 : i32
    %c0_i32_1 = arith.constant 0 : i32
    return %c0_i32, %c0_i32_0 : i32, i32
  }
  func.func @transform_14(%arg0: i32) -> (i32, i32) {
    %c0_i32 = arith.constant 0 : i32
    %c0_i32_0 = arith.constant 0 : i32
    %c0_i32_1 = arith.constant 0 : i32
    return %c0_i32, %c0_i32_0 : i32, i32
  }
  func.func @transform_15(%arg0: i32) -> (i32, i32) {
    %c0_i32 = arith.constant 0 : i32
    %c0_i32_0 = arith.constant 0 : i32
    %c0_i32_1 = arith.constant 0 : i32
    return %c0_i32, %c0_i32_0 : i32, i32
  }
  func.func @transform_16(%arg0: i32) -> (i32, i32) {
    %c0_i32 = arith.constant 0 : i32
    %c0_i32_0 = arith.constant 0 : i32
    %c0_i32_1 = arith.constant 0 : i32
    return %c0_i32, %c0_i32_0 : i32, i32
  }
}

</mosaic_0001>

<bundles_post_ra>
// kernel: tpu_custom_call.1
= control target key start
LH: loop header
LB: loop body
LE: loop exit
PB: predicated region body
PF: predicated region fallthrough
CT: control target
= control target key end

     0   :  { %s5266_s0 = inlined_call_operand.vmem [shape: s32[200,1], index: 0, kind: input, shape index: {}]   ;;  %s5267_s1 = inlined_call_operand.vmem [shape: s32[200,1], index: 1, kind: input, shape index: {}]   ;;  %s5268_s2 = inlined_call_operand.vmem [shape: bf16[200,7], index: 2, kind: input, shape index: {}]   ;;  %s5269_s3 = inlined_call_operand.vmem [shape: f32[16,8], index: 3, kind: input, shape index: {}]   ;;  %s5270_s4 = inlined_call_operand.vmem [shape: f32[8,64], index: 4, kind: input, shape index: {}]   ;;  %s5271_s5 = inlined_call_operand.vmem [shape: f32[1,64], index: 5, kind: input, shape index: {}]   ;;  %s5272_s6 = inlined_call_operand.vmem [shape: f32[8,32], index: 6, kind: input, shape index: {}]   ;;  %s5273_s7 = inlined_call_operand.vmem [shape: f32[1,32], index: 7, kind: input, shape index: {}]   ;;  %s5274_s8 = inlined_call_operand.vmem [shape: f32[8,32], index: 8, kind: input, shape index: {}]   ;;  %s5275_s9 = inlined_call_operand.vmem [shape: f32[1,32], index: 9, kind: input, shape index: {}]   ;;  %s5276_s10 = inlined_call_operand.vmem [shape: f32[7,32], index: 10, kind: input, shape index: {}]   ;;  %s5277_s11 = inlined_call_operand.vmem [shape: f32[1,32], index: 11, kind: input, shape index: {}]   ;;  %s5278_s12 = inlined_call_operand.vmem [shape: f32[32,64], index: 12, kind: input, shape index: {}]   ;;  %s5279_s13 = inlined_call_operand.vmem [shape: f32[1,64], index: 13, kind: input, shape index: {}]   ;;  %s5280_s14 = inlined_call_operand.vmem [shape: f32[1,32], index: 14, kind: input, shape index: {}]   ;;  %s5281_s15 = inlined_call_operand.vmem [shape: f32[1,32], index: 15, kind: input, shape index: {}]   ;;  %s5282_s16 = inlined_call_operand.hbm [shape: f32[16,128], index: 16, kind: output, shape index: {}]  }
   0x1   :  { %5346 = sst [smem:[#allocation51_spill]] %s5266_s0 }
   0x2   :  { %v57_v0 = vld [vmem:[%s5270_s4] sm:$0xff]  ;;  %vm65_vm0 = vcmask 64512   ;;  %v56_v3 = vld [vmem:[%s5269_s3 + $0x8] sm:$0xff]  ;;  %vm5284_vm1 = vcmask 1046528   ;;  %v3487_v8 = vmov 0.0   ;;  %vm3488_vm2 = vmmov 0  }
   0x3   :  { %v158_v1 = vld [vmem:[%s5272_s6] sm:$0xff]  ;;  %3023 = vmatprep.subr.mxu0 %v57_v0  ;;  %v2920_v5 = vld [vmem:[%s5268_s2 + $0x8] sm:$0xff]   ;;  %vm398_vm3 = vcmask 56320   ;;  %v3489_v13 = vmov 0   ;;  %s5347_s21 = sld [smem:[#allocation51_spill]]  ;;  %v2921_v15 = vld [vmem:[%s5268_s2 + $0x10] sm:$0xff]  }
   0x4   :  { %v55_v2 = vld [vmem:[%s5269_s3] sm:$0xff]  ;;  %3028 = vmatprep.subr.mxu1 %v158_v1  ;;  %3024 = vmatpush3.msra.mxu0 %v57_v0  ;;  %v2878_v9 = vunpack.c.l.bf16 %v2920_v5  ;;  %v2879_v12 = vunpack.c.h.bf16 %v2920_v5  ;;  %v1045_v17 = vld [vmem:[%s5267_s1 + $0x8] sm:$0xff]  ;;  %v2882_v18 = vunpack.c.l.bf16 %v2921_v15  ;;  %v2883_v21 = vunpack.c.h.bf16 %v2921_v15  ;;  %v2922_v23 = vld [vmem:[%s5268_s2 + $0x18] sm:$0xff]  }
   0x5   :  { %3025 = vmatprep.mubr.msk.f32.mxu0 %vm65_vm0, %v55_v2  ;;  %v252_v4 = vld [vmem:[%s5274_s8] sm:$0xff]  ;;  %3029 = vmatpush3.msra.mxu1 %v158_v1  ;;  %v1047_v24 = vld [vmem:[%s5267_s1 + $0x18] sm:$0xff]  ;;  %v2886_v25 = vunpack.c.l.bf16 %v2922_v23  ;;  %v1046_v26 = vld [vmem:[%s5267_s1 + $0x10] sm:$0xff] }
   0x6   :  { %3030 = vmatprep.mubr.msk.f32.mxu1 %vm65_vm0, %v55_v2  ;;  %3026 = vmatmul.mubr.msk.f32.vlgmr.msra.gmra.mxu0 %vm65_vm0, %v56_v3  ;;  %v2873_v6 = vld [vmem:[%s5268_s2] sm:$0xff]  }
   0x7   :  { %3031 = vmatmul.mubr.msk.f32.vlgmr.msra.gmra.mxu1 %vm65_vm0, %v56_v3  ;;  %3033 = vmatprep.subr.mxu0 %v252_v4  ;;  %v390_v7 = vld [vmem:[%s5276_s10] sm:$0x7f]  ;;  %v2874_v10 = vunpack.c.l.bf16 %v2873_v6  ;;  %v2875_v16 = vunpack.c.h.bf16 %v2873_v6 }
   0x8   :  { %3035 = vmatprep.mubr.msk.f32.mxu0 %vm65_vm0, %v55_v2  ;;  %3034 = vmatpush3.msra.mxu0 %v252_v4  ;;  %v1044_v11 = vld [vmem:[%s5267_s1] sm:$0xff] }
   0x9   :  { %3306 = vmatprep.subr.mxu1 %v3487_v8  ;;  %3038 = vmatprep.subr.mxu0 %v3487_v8  ;;  %v1019_v14 = vld [vmem:[%s5347_s21] sm:$0xff]  ;;  %v1020_v19 = vld [vmem:[%s5347_s21 + $0x8] sm:$0xff]  ;;  %v1022_v20 = vld [vmem:[%s5347_s21 + $0x18] sm:$0xff] }
   0xa   :  { %3307 = vmatpush3.msk.msra.mxu1 %vm5284_vm1, %v390_v7  ;;  %3036 = vmatmul.mubr.msk.f32.vlgmr.msra.gmra.mxu0 %vm65_vm0, %v56_v3  ;;  %v1021_v22 = vld [vmem:[%s5347_s21 + $0x10] sm:$0xff] }
   0xb   :  { %3046 = vmatprep.mubr.msk.f32.mxu1 %vm3488_vm2, %v3487_v8  ;;  %3039 = vmatpush3.msk.msra.mxu0 %vm5284_vm1, %v390_v7 }
   0xc   :  { %3040 = vmatprep.mubr.msk.f32.mxu0 %vm3488_vm2, %v3487_v8  ;;  %3047 = vmatmul.mubr.msk.f32.vlgmr.msra.gmra.mxu1 %vm398_vm3, %v2878_v9 }
   0xd   :  { %3317 = vset.pattern.permute.xlu1 %v3489_v13  ;;  %3049 = vmatprep.mubr.msk.f32.mxu1 %vm3488_vm2, %v3487_v8 }
   0xe   :  { %1258 = vperm.xlu1 %3317, %v1044_v11   ;;  %3041 = vmatmul.mubr.msk.f32.vlgmr.msra.gmra.mxu0 %vm398_vm3, %v2874_v10 }
   0xf   :  { %3316 = vset.pattern.permute.xlu0 %v3489_v13  ;;  %3043 = vmatprep.mubr.msk.f32.mxu0 %vm3488_vm2, %v3487_v8 }
  0x10   :  { %1095 = vperm.xlu0 %3316, %v1019_v14   ;;  %3050 = vmatmul.mubr.msk.f32.gmra.mxu1 %vm398_vm3, %v2879_v12 }
  0x11   :  { %3115 = vmatprep.subr.mxu0 %v3487_v8  ;;  %3052 = vmatprep.mubr.msk.f32.mxu1 %vm3488_vm2, %v3487_v8 }
  0x12   :  { %1261 = vperm.xlu1 %3317, %v1045_v17   ;;  %3044 = vmatmul.mubr.msk.f32.gmra.mxu0 %vm398_vm3, %v2875_v16 }
  0x13   :  { %3198 = vmatprep.subr.bf16.mxu1 %v3487_v8  ;;  %3123 = vmatprep.mubr.msk.f32.mxu0 %vm3488_vm2, %v3487_v8 }
  0x14   :  { %1098 = vperm.xlu0 %3316, %v1020_v19   ;;  %3053 = vmatmul.mubr.msk.f32.gmra.mxu1 %vm398_vm3, %v2882_v18 }
  0x15   :  { %3055 = vmatprep.mubr.msk.f32.mxu1 %vm3488_vm2, %v3487_v8 }
  0x16   :  { %1104 = vperm.xlu1 %3317, %v1022_v20  }
  0x18   :  { %1101 = vperm.xlu0 %3316, %v1021_v22   ;;  %3056 = vmatmul.mubr.msk.f32.gmra.mxu1 %vm398_vm3, %v2883_v21 }
  0x19   :  { %3058 = vmatprep.mubr.msk.f32.mxu1 %vm3488_vm2, %v3487_v8 }
  0x1a   :  { %1267 = vperm.xlu1 %3317, %v1047_v24  }
  0x1b   :  { %21 = vsyncpa [#allocation9], 0  ;;  %v1024_v27 = vld [vmem:[%s5347_s21 + $0x28] sm:$0xff]  ;;  %v2887_v28 = vunpack.c.h.bf16 %v2922_v23  ;;  %v1023_v29 = vld [vmem:[%s5347_s21 + $0x20] sm:$0xff]  ;;  %vm155_vm4 = vcmask 519168   ;;  %vm249_vm5 = vcmask 257024  }
  0x1c   :  { %1264 = vperm.xlu0 %3316, %v1046_v26   ;;  %3059 = vmatmul.mubr.msk.f32.gmra.mxu1 %vm398_vm3, %v2886_v25  ;;  %v2923_v30 = vld [vmem:[%s5268_s2 + $0x20] sm:$0xff]   ;;  %v1049_v31 = vld [vmem:[%s5267_s1 + $0x28] sm:$0xff]  ;;  %v1026_v34 = vld [vmem:[%s5347_s21 + $0x38] sm:$0xff]  ;;  %vm335_vm6 = vcmask 261120   ;;  %vm1428_vm14 = vcmask 130048  }
  0x1d   :  { %3061 = vmatprep.mubr.msk.f32.mxu1 %vm3488_vm2, %v3487_v8  ;;  %v2890_v32 = vunpack.c.l.bf16 %v2923_v30  ;;  %v1048_v33 = vld [vmem:[%s5267_s1 + $0x20] sm:$0xff]  ;;  %v2891_v35 = vunpack.c.h.bf16 %v2923_v30  ;;  %v1025_v36 = vld [vmem:[%s5347_s21 + $0x30] sm:$0xff]  ;;  %v2924_v37 = vld [vmem:[%s5268_s2 + $0x28] sm:$0xff]  }
  0x1e   :  { %1110 = vperm.xlu1 %3317, %v1024_v27   ;;  %v1051_v38 = vld [vmem:[%s5267_s1 + $0x38] sm:$0xff]  ;;  %v2894_v39 = vunpack.c.l.bf16 %v2924_v37  ;;  %v1050_v40 = vld [vmem:[%s5267_s1 + $0x30] sm:$0xff]  ;;  %v1028_v41 = vld [vmem:[%s5347_s21 + $0x48] sm:$0xff]  ;;  %v2895_v42 = vunpack.c.h.bf16 %v2924_v37 }
  0x1f   :  { %v1027_v43 = vld [vmem:[%s5347_s21 + $0x40] sm:$0xff]  ;;  %v2925_v44 = vld [vmem:[%s5268_s2 + $0x30] sm:$0xff]   ;;  %v1053_v45 = vld [vmem:[%s5267_s1 + $0x48] sm:$0xff] }
  0x20   :  { %1107 = vperm.xlu0 %3316, %v1023_v29   ;;  %3062 = vmatmul.mubr.msk.f32.gmra.mxu1 %vm398_vm3, %v2887_v28  ;;  %v2898_v46 = vunpack.c.l.bf16 %v2925_v44  ;;  %v1052_v47 = vld [vmem:[%s5267_s1 + $0x40] sm:$0xff]  ;;  %v1030_v48 = vld [vmem:[%s5347_s21 + $0x58] sm:$0xff]  ;;  %v2899_v49 = vunpack.c.h.bf16 %v2925_v44  ;;  %v1029_v50 = vld [vmem:[%s5347_s21 + $0x50] sm:$0xff] }
  0x21   :  { %3064 = vmatprep.mubr.msk.f32.mxu1 %vm3488_vm2, %v3487_v8  ;;  %v2926_v51 = vld [vmem:[%s5268_s2 + $0x38] sm:$0xff]   ;;  %v1054_v54 = vld [vmem:[%s5267_s1 + $0x50] sm:$0xff]  ;;  %v1032_v55 = vld [vmem:[%s5347_s21 + $0x68] sm:$0xff] }
  0x22   :  { %1273 = vperm.xlu1 %3317, %v1049_v31   ;;  %v1055_v52 = vld [vmem:[%s5267_s1 + $0x58] sm:$0xff]  ;;  %v2902_v53 = vunpack.c.l.bf16 %v2926_v51  ;;  %v2903_v56 = vunpack.c.h.bf16 %v2926_v51  ;;  %v1031_v57 = vld [vmem:[%s5347_s21 + $0x60] sm:$0xff]  ;;  %v1057_v59 = vld [vmem:[%s5267_s1 + $0x68] sm:$0xff] }
  0x23   :  { %v2927_v58 = vld [vmem:[%s5268_s2 + $0x40] sm:$0xff]   ;;  %v1034_v62 = vld [vmem:[%s5347_s21 + $0x78] sm:$0xff]  ;;  %v1033_v0 = vld [vmem:[%s5347_s21 + $0x70] sm:$0xff] }
  0x24   :  { %1270 = vperm.xlu0 %3316, %v1048_v33   ;;  %3065 = vmatmul.mubr.msk.f32.gmra.mxu1 %vm398_vm3, %v2890_v32  ;;  %v2906_v60 = vunpack.c.l.bf16 %v2927_v58  ;;  %v1056_v61 = vld [vmem:[%s5267_s1 + $0x60] sm:$0xff]  ;;  %v2907_v63 = vunpack.c.h.bf16 %v2927_v58  ;;  %v2928_v1 = vld [vmem:[%s5268_s2 + $0x48] sm:$0xff]   ;;  %v1059_v2 = vld [vmem:[%s5267_s1 + $0x78] sm:$0xff] }
  0x25   :  { %3067 = vmatprep.mubr.msk.f32.mxu1 %vm3488_vm2, %v3487_v8  ;;  %v2910_v3 = vunpack.c.l.bf16 %v2928_v1  ;;  %v1058_v4 = vld [vmem:[%s5267_s1 + $0x70] sm:$0xff]  ;;  %v1036_v5 = vld [vmem:[%s5347_s21 + $0x88] sm:$0xff]  ;;  %v2911_v6 = vunpack.c.h.bf16 %v2928_v1  ;;  %v1035_v7 = vld [vmem:[%s5347_s21 + $0x80] sm:$0xff] }
  0x26   :  { %1116 = vperm.xlu1 %3317, %v1026_v34   ;;  %v746_v9 = vld [vmem:[%s5278_s12 + $0x18] sm:$0xff]  ;;  %v2929_v10 = vld [vmem:[%s5268_s2 + $0x50] sm:$0xff]   ;;  %v1061_v11 = vld [vmem:[%s5267_s1 + $0x88] sm:$0xff] }
  0x27   :  { %3116 = vmatpush3.msra.mxu0 %v746_v9  ;;  %v745_v12 = vld [vmem:[%s5278_s12 + $0x10] sm:$0xff]  ;;  %v2914_v14 = vunpack.c.l.bf16 %v2929_v10  ;;  %v1060_v15 = vld [vmem:[%s5267_s1 + $0x80] sm:$0xff]  ;;  %v744_v16 = vld [vmem:[%s5278_s12 + $0x8] sm:$0xff]  ;;  %v2915_v19 = vunpack.c.h.bf16 %v2929_v10  ;;  %v5303_v10 = vlaneseq }
  0x28   :  { %1113 = vperm.xlu0 %3316, %v1025_v36   ;;  %3068 = vmatmul.mubr.msk.f32.gmra.mxu1 %vm398_vm3, %v2891_v35  ;;  %v1038_v17 = vld [vmem:[%s5347_s21 + $0x98] sm:$0xff]  ;;  %v743_v18 = vld [vmem:[%s5278_s12] sm:$0xff]  ;;  %v1037_v20 = vld [vmem:[%s5347_s21 + $0x90] sm:$0xff] }
  0x29   :  { %3070 = vmatprep.mubr.msk.f32.mxu1 %vm3488_vm2, %v3487_v8  ;;  %3117 = vmatprep.subr.mxu0 %v3487_v8  ;;  %v2930_v21 = vld [vmem:[%s5268_s2 + $0x58] sm:$0xff]   ;;  %v1062_v24 = vld [vmem:[%s5267_s1 + $0x90] sm:$0xff]  ;;  %v1040_v25 = vld [vmem:[%s5347_s21 + $0xa8] sm:$0xff] }
  0x2a   :  { %1279 = vperm.xlu1 %3317, %v1051_v38   ;;  %3118 = vmatpush3.msra.mxu0 %v745_v12  ;;  %v1063_v22 = vld [vmem:[%s5267_s1 + $0x98] sm:$0xff]  ;;  %v2918_v23 = vunpack.c.l.bf16 %v2930_v21  ;;  %v2919_v26 = vunpack.c.h.bf16 %v2930_v21  ;;  %v1039_v27 = vld [vmem:[%s5347_s21 + $0xa0] sm:$0xff]  ;;  %v1065_v29 = vld [vmem:[%s5267_s1 + $0xa8] sm:$0xff] }
  0x2b   :  { %3119 = vmatprep.subr.mxu0 %v3487_v8  ;;  %v364_v28 = vld [vmem:[%s5268_s2 + $0x60] sm:$0xf]  ;;  %v1042_v32 = vld [vmem:[%s5347_s21 + $0xb8] sm:$0xff]  ;;  %v1041_v33 = vld [vmem:[%s5347_s21 + $0xb0] sm:$0xff] }
  0x2c   :  { %1276 = vperm.xlu0 %3316, %v1050_v40   ;;  %3071 = vmatmul.mubr.msk.f32.gmra.mxu1 %vm398_vm3, %v2894_v39  ;;  %v389_v30 = vunpack.c.l.bf16 %v364_v28  ;;  %v1064_v31 = vld [vmem:[%s5267_s1 + $0xa0] sm:$0xff]  ;;  %v1067_v34 = vld [vmem:[%s5267_s1 + $0xb8] sm:$0xff]  ;;  %v1066_v35 = vld [vmem:[%s5267_s1 + $0xb0] sm:$0xff] }
  0x2d   :  { %3073 = vmatprep.mubr.msk.f32.mxu1 %vm3488_vm2, %v3487_v8  ;;  %3120 = vmatpush3.msra.mxu0 %v744_v16  ;;  %v1068_v36 = vld [vmem:[%s5267_s1 + $0xc0] sm:$0xff] }
  0x2e   :  { %1122 = vperm.xlu1 %3317, %v1028_v41   ;;  %3121 = vmatprep.subr.mxu0 %v3487_v8  ;;  %v1043_v37 = vld [vmem:[%s5347_s21 + $0xc0] sm:$0xff] }
  0x2f   :  { %3122 = vmatpush3.msra.mxu0 %v743_v18 }
  0x30   :  { %1119 = vperm.xlu0 %3316, %v1027_v43   ;;  %3074 = vmatmul.mubr.msk.f32.gmra.mxu1 %vm398_vm3, %v2895_v42 }
  0x31   :  { %3076 = vmatprep.mubr.msk.f32.mxu1 %vm3488_vm2, %v3487_v8  ;;  %3252 = vmatprep.subr.bf16.mxu0 %v3487_v8 }
  0x32   :  { %1285 = vperm.xlu1 %3317, %v1053_v45  }
  0x34   :  { %1282 = vperm.xlu0 %3316, %v1052_v47   ;;  %3077 = vmatmul.mubr.msk.f32.gmra.mxu1 %vm398_vm3, %v2898_v46 }
  0x35   :  { %3079 = vmatprep.mubr.msk.f32.mxu1 %vm3488_vm2, %v3487_v8 }
  0x36   :  { %1128 = vperm.xlu1 %3317, %v1030_v48  }
  0x38   :  { %1125 = vperm.xlu0 %3316, %v1029_v50   ;;  %3080 = vmatmul.mubr.msk.f32.gmra.mxu1 %vm398_vm3, %v2899_v49 }
  0x39   :  { %3082 = vmatprep.mubr.msk.f32.mxu1 %vm3488_vm2, %v3487_v8 }
  0x3a   :  { %1291 = vperm.xlu1 %3317, %v1055_v52  }
  0x3c   :  { %1288 = vperm.xlu0 %3316, %v1054_v54   ;;  %3083 = vmatmul.mubr.msk.f32.gmra.mxu1 %vm398_vm3, %v2902_v53 }
  0x3d   :  { %3085 = vmatprep.mubr.msk.f32.mxu1 %vm3488_vm2, %v3487_v8 }
  0x3e   :  { %1134 = vperm.xlu1 %3317, %v1032_v55  }
  0x40   :  { %1131 = vperm.xlu0 %3316, %v1031_v57   ;;  %3086 = vmatmul.mubr.msk.f32.gmra.mxu1 %vm398_vm3, %v2903_v56 }
  0x41   :  { %3088 = vmatprep.mubr.msk.f32.mxu1 %vm3488_vm2, %v3487_v8 }
  0x42   :  { %1297 = vperm.xlu1 %3317, %v1057_v59  }
  0x44   :  { %1294 = vperm.xlu0 %3316, %v1056_v61   ;;  %3089 = vmatmul.mubr.msk.f32.gmra.mxu1 %vm398_vm3, %v2906_v60 }
  0x45   :  { %3091 = vmatprep.mubr.msk.f32.mxu1 %vm3488_vm2, %v3487_v8 }
  0x46   :  { %1140 = vperm.xlu1 %3317, %v1034_v62  }
  0x48   :  { %1137 = vperm.xlu0 %3316, %v1033_v0   ;;  %3092 = vmatmul.mubr.msk.f32.gmra.mxu1 %vm398_vm3, %v2907_v63 }
  0x49   :  { %3094 = vmatprep.mubr.msk.f32.mxu1 %vm3488_vm2, %v3487_v8 }
  0x4a   :  { %1303 = vperm.xlu1 %3317, %v1059_v2  }
  0x4c   :  { %1300 = vperm.xlu0 %3316, %v1058_v4   ;;  %3095 = vmatmul.mubr.msk.f32.gmra.mxu1 %vm398_vm3, %v2910_v3  ;;  %v2693_v4 = vld [vmem:[%s5271_s5] ss:$0 sm:$0xff] }
  0x4d   :  { %3097 = vmatprep.mubr.msk.f32.mxu1 %vm3488_vm2, %v3487_v8 }
  0x4e   :  { %1146 = vperm.xlu1 %3317, %v1036_v5   ;;  %v2698_v5 = vld [vmem:[%s5273_s7] ss:$0 sm:$0xff] }
  0x50   :  { %1143 = vperm.xlu0 %3316, %v1035_v7   ;;  %3098 = vmatmul.mubr.msk.f32.gmra.mxu1 %vm398_vm3, %v2911_v6 }
  0x51   :  { %3100 = vmatprep.mubr.msk.f32.mxu1 %vm3488_vm2, %v3487_v8 }
  0x52   :  { %1309 = vperm.xlu1 %3317, %v1061_v11  }
  0x54   :  { %1306 = vperm.xlu0 %3316, %v1060_v15   ;;  %3101 = vmatmul.mubr.msk.f32.gmra.mxu1 %vm398_vm3, %v2914_v14 }
  0x55   :  { %3103 = vmatprep.mubr.msk.f32.mxu1 %vm3488_vm2, %v3487_v8 }
  0x56   :  { %1152 = vperm.xlu1 %3317, %v1038_v17   ;;  %v2703_v17 = vld [vmem:[%s5275_s9] ss:$0 sm:$0xff] }
  0x58   :  { %1149 = vperm.xlu0 %3316, %v1037_v20   ;;  %3104 = vmatmul.mubr.msk.f32.gmra.mxu1 %vm398_vm3, %v2915_v19 }
  0x59   :  { %3106 = vmatprep.mubr.msk.f32.mxu1 %vm3488_vm2, %v3487_v8 }
  0x5a   :  { %1315 = vperm.xlu1 %3317, %v1063_v22  }
  0x5c   :  { %1312 = vperm.xlu0 %3316, %v1062_v24   ;;  %3107 = vmatmul.mubr.msk.f32.gmra.mxu1 %vm398_vm3, %v2918_v23  ;;  %v3972_v24 = vand.u32 127, %v5303_v10 }
  0x5d   :  { %3109 = vmatprep.mubr.msk.f32.mxu1 %vm3488_vm2, %v3487_v8 }
  0x5e   :  { %1158 = vperm.xlu1 %3317, %v1040_v25  }
  0x60   :  { %1155 = vperm.xlu0 %3316, %v1039_v27   ;;  %3110 = vmatmul.mubr.msk.f32.gmra.mxu1 %vm398_vm3, %v2919_v26 }
  0x61   :  { %3112 = vmatprep.mubr.msk.f32.mxu1 %vm3488_vm2, %v3487_v8 }
  0x62   :  { %1321 = vperm.xlu1 %3317, %v1065_v29  }
  0x64   :  { %1318 = vperm.xlu0 %3316, %v1064_v31   ;;  %3113 = vmatmul.mubr.msk.f32.gmra.mxu1 %vm398_vm3, %v389_v30  ;;  %v3981_v30 = vld [vmem:[%s5277_s11] ss:$0 sm:$0xff] }
  0x65   :  { %3200 = vmatprep.mubr.msk.bf16.mxu1 %vm3488_vm2, %v3487_v8 }
  0x66   :  { %1164 = vperm.xlu1 %3317, %v1042_v32  }
  0x68   :  { %1161 = vperm.xlu0 %3316, %v1041_v33  }
  0x6a   :  { %1327 = vperm.xlu1 %3317, %v1067_v34  }
  0x6c   :  { %1324 = vperm.xlu0 %3316, %v1066_v35  }
  0x6e   :  { %1330 = vperm.xlu1 %3317, %v1068_v36  }
  0x70   :  { %1167 = vperm.xlu0 %3316, %v1043_v37  }
  0x89   :  { %v3896_v38 = vpop.permute.xlu1 %1258 }
  0x8b   :  { %v3898_v39 = vpop.permute.xlu0 %1095 }
  0x8c   :  { %vm1169_vm7 = vcmp.eq.s32.totalorder %v3972_v24, %v3898_v39 }
  0x8d   :  { %v3900_v40 = vpop.permute.xlu1 %1261 }
  0x8f   :  { %v3902_v41 = vpop.permute.xlu0 %1098 }
  0x90   :  { %vm1170_vm8 = vcmp.eq.s32.totalorder %v3972_v24, %v3902_v41 }
  0x91   :  { %v3904_v42 = vpop.permute.xlu1 %1104 }
  0x92   :  { %vm1172_vm13 = vcmp.eq.s32.totalorder %v3972_v24, %v3904_v42 }
  0x93   :  { %v3906_v43 = vpop.permute.xlu0 %1101 }
  0x94   :  { %vm1171_vm15 = vcmp.eq.s32.totalorder %v3972_v24, %v3906_v43 }
  0x95   :  { %v3908_v44 = vpop.permute.xlu1 %1267 }
  0x97   :  { %v3910_v45 = vpop.permute.xlu0 %1264 }
  0x99   :  { %v3912_v46 = vpop.permute.xlu1 %1110 }
  0x9b   :  { %v3914_v47 = vpop.permute.xlu0 %1107 }
  0x9d   :  { %v3916_v48 = vpop.permute.xlu1 %1273 }
  0x9f   :  { %v3918_v49 = vpop.permute.xlu0 %1270 }
  0xa1   :  { %v3920_v50 = vpop.permute.xlu1 %1116 }
  0xa2   :  { %vm1176_vm1 = vcmp.eq.s32.totalorder %v3972_v24, %v3920_v50 }
  0xa3   :  { %v3922_v51 = vpop.permute.xlu0 %1113 }
  0xa5   :  { %v3924_v52 = vpop.permute.xlu1 %1279 }
  0xa7   :  { %v3926_v53 = vpop.permute.xlu0 %1276 }
  0xa9   :  { %v3928_v54 = vpop.permute.xlu1 %1122 }
  0xab   :  { %v3930_v55 = vpop.permute.xlu0 %1119 }
  0xad   :  { %v3932_v56 = vpop.permute.xlu1 %1285 }
  0xaf   :  { %v3934_v57 = vpop.permute.xlu0 %1282 }
  0xb1   :  { %v3936_v58 = vpop.permute.xlu1 %1128 }
  0xb3   :  { %v3938_v59 = vpop.permute.xlu0 %1125 }
  0xb5   :  { %v3940_v60 = vpop.permute.xlu1 %1291 }
  0xb7   :  { %v3942_v61 = vpop.permute.xlu0 %1288 }
  0xb9   :  { %v3944_v62 = vpop.permute.xlu1 %1134 }
  0xbb   :  { %v3946_v63 = vpop.permute.xlu0 %1131 }
  0xbd   :  { %v3948_v0 = vpop.permute.xlu1 %1297 }
  0xbf   :  { %v3950_v1 = vpop.permute.xlu0 %1294 }
  0xc1   :  { %v3952_v2 = vpop.permute.xlu1 %1140 }
  0xc3   :  { %v3954_v3 = vpop.permute.xlu0 %1137 }
  0xc5   :  { %v3962_v6 = vpop.permute.xlu1 %1303 }
  0xc6   :  { %v3027_v7 = vpop.f32.mrf.mxu0  ;;  %vm5286_vm10 = vcmp.eq.s32.totalorder %v3972_v24, %v3962_v6 }
  0xc7   :  { %v3032_v9 = vpop.f32.mrf.mxu1  ;;  %v144_v11 = vadd.f32 %v3027_v7, %v2693_v4  ;;  %v3964_v14 = vpop.permute.xlu0 %1300 }
  0xc8   :  { %v238_v12 = vadd.f32 %v3032_v9, %v2698_v5  ;;  %v138_v15 = vpop.f32.mrf.mxu0  ;;  %vm5285_vm11 = vcmp.eq.s32.totalorder %v3972_v24, %v3964_v14 }
  0xc9   :  { %v232_v16 = vpop.f32.mrf.mxu1  ;;  %v2869_v18 = vpack.c.bf16 %v144_v11, %v144_v11  ;;  %v139_v20 = vadd.f32 %v2693_v4, %v138_v15  ;;  %v3969_v22 = vpop.permute.xlu1 %1146  ;;  %v2759_v11 = vsel %vm1169_vm7, 1.0, %v3487_v8  ;;  %vm2837_vm0 = vmpackc.low %vm5286_vm10, %vm5285_vm11  ;;  %vm1175_vm11 = vcmp.eq.s32.totalorder %v3972_v24, %v3922_v51 }
  0xca   :  { %v2871_v19 = vpack.c.bf16 %v238_v12, %v238_v12  ;;  %v233_v21 = vadd.f32 %v2698_v5, %v232_v16  ;;  %v3037_v23 = vpop.f32.mrf.mxu0  ;;  %v2760_v12 = vsel %vm1170_vm8, 1.0, %v3487_v8 }
  0xcb   :  { %157 = vst.msk [vmem:[#allocation2 + $0x4] sm:$0xf] %vm155_vm4, %v2869_v18  ;;  %v2868_v25 = vpack.c.bf16 %v139_v20, %v139_v20  ;;  %v332_v27 = vadd.f32 %v3037_v23, %v2703_v17  ;;  %v3976_v28 = vpop.permute.xlu0 %1143 }
  0xcc   :  { %251 = vst.msk [vmem:[#allocation3 + $0x4] sm:$0xf] %vm249_vm5, %v2871_v19  ;;  %v2870_v26 = vpack.c.bf16 %v233_v21, %v233_v21  ;;  %v326_v29 = vpop.f32.mrf.mxu0  ;;  %v554_v31 = vpop.f32.mrf.mxu1  ;;  %v1244_v21 = vpack.c.bf16 %v2760_v12, %v2759_v11  ;;  %v3490_v11 = vmov 1.0|1.0  }
  0xcd   :  { %156 = vst.msk [vmem:[#allocation2] sm:$0xf] %vm155_vm4, %v2868_v25  ;;  %v327_v32 = vadd.f32 %v2703_v17, %v326_v29  ;;  %v3986_v33 = vpop.permute.xlu1 %1309  ;;  %v555_v17 = vadd.f32 %v3981_v30, %v554_v31  ;;  %vm5288_vm4 = vcmp.eq.s32.totalorder %v3972_v24, %v3948_v0 }
  0xce   :  { %250 = vst.msk [vmem:[#allocation3] sm:$0xf] %vm249_vm5, %v2870_v26  ;;  %v544_v34 = vpop.f32.mrf.mxu0  ;;  %v3048_v35 = vpop.f32.mrf.mxu1  ;;  %vm5287_vm5 = vcmp.eq.s32.totalorder %v3972_v24, %v3950_v1 }
  0xcf   :  { %337 = vst.msk [vmem:[#allocation4 + $0x8] sm:$0xff] %vm335_vm6, %v332_v27  ;;  %336 = vst.msk [vmem:[#allocation4] sm:$0xff] %vm335_vm6, %v327_v32  ;;  %v545_v36 = vadd.f32 %v3981_v30, %v544_v34  ;;  %v3996_v9 = vpop.permute.xlu0 %1306  ;;  %v695_v29 = vmul.f32 0.15, %v555_v17  ;;  %vm670_vm3 = vcmp.gt.f32.partialorder %v555_v17, 0.0 }
  0xd0   :  { %v3042_v37 = vpop.f32.mrf.mxu0  ;;  %v559_v4 = vpop.f32.mrf.mxu1  ;;  %vm2839_vm7 = vmpackc.low %vm5288_vm4, %vm5287_vm5  ;;  %vm1337_vm5 = vcmp.eq.s32.totalorder %v3972_v24, %v3916_v48 }
  0xd1   :  { %vm668_vm9 = vcmp.gt.f32.partialorder %v545_v36, 0.0  ;;  %v693_v5 = vmul.f32 0.15, %v545_v36  ;;  %v3994_v7 = vpop.permute.xlu1 %1152  ;;  %v560_v32 = vadd.f32 %v3981_v30, %v559_v4  ;;  %v2762_v37 = vsel %vm1172_vm13, 1.0, %v3487_v8 }
  0xd2   :  { %v549_v39 = vpop.f32.mrf.mxu0  ;;  %v3051_v15 = vpop.f32.mrf.mxu1  ;;  %v2761_v4 = vsel %vm1171_vm15, 1.0, %v3487_v8  ;;  %vm1174_vm13 = vcmp.eq.s32.totalorder %v3972_v24, %v3912_v46  ;;  %vm1173_vm15 = vcmp.eq.s32.totalorder %v3972_v24, %v3914_v47 }
  0xd3   :  { %v718_v16 = vsel %vm668_vm9, %v545_v36, %v693_v5  ;;  %v550_v41 = vadd.f32 %v3981_v30, %v549_v39  ;;  %v4023_v34 = vpop.permute.xlu0 %1149  ;;  %v696_v12 = vmul.f32 0.15, %v560_v32  ;;  %v720_v39 = vsel %vm670_vm3, %v555_v17, %v695_v29 }
  0xd4   :  { %3124 = vmatmul.mubr.msk.f32.vlgmr.msra.gmra.mxu0 %vm335_vm6, %v718_v16  ;;  %v3045_v18 = vpop.f32.mrf.mxu0  ;;  %v3378_v19 = vld [vmem:[#allocation2] sm:$0xff]   ;;  %v564_v20 = vpop.f32.mrf.mxu1  ;;  %vm671_vm8 = vcmp.gt.f32.partialorder %v560_v32, 0.0  ;;  %vm5290_vm9 = vcmp.eq.s32.totalorder %v3972_v24, %v3940_v60  ;;  %v1245_v43 = vpack.c.bf16 %v2762_v37, %v2761_v4 }
  0xd5   :  { %vm669_vm12 = vcmp.gt.f32.partialorder %v550_v41, 0.0  ;;  %v694_v23 = vmul.f32 0.15, %v550_v41  ;;  %3126 = vmatprep.mubr.msk.f32.mxu0 %vm3488_vm2, %v3487_v8  ;;  %v3379_v25 = vld [vmem:[#allocation3] sm:$0xff]   ;;  %v4009_v26 = vpop.permute.xlu1 %1315  ;;  %3199 = vmatpush3.bf16.msra.mxu1 %v3378_v19  ;;  %v565_v15 = vadd.f32 %v3981_v30, %v564_v20  ;;  %v721_v19 = vsel %vm671_vm8, %v560_v32, %v696_v12 }
  0xd6   :  { %v3054_v27 = vpop.f32.mrf.mxu1  ;;  %3253 = vmatpush3.bf16.msra.mxu0 %v3379_v25  ;;  %2501 = vmatprep.subr.bf16.mxu1 %v3489_v13  ;;  %vm5291_vm8 = vcmp.eq.s32.totalorder %v3972_v24, %v3934_v57  ;;  %v2763_v25 = vsel %vm1173_vm15, 1.0, %v3487_v8  ;;  %vm5295_vm15 = vcmp.eq.s32.totalorder %v3972_v24, %v3924_v52 }
  0xd7   :  { %v719_v31 = vsel %vm669_vm12, %v550_v41, %v694_v23  ;;  %vm5289_vm12 = vcmp.eq.s32.totalorder %v3972_v24, %v3942_v61  ;;  %v4063_v41 = vpop.permute.xlu0 %1312  ;;  %v697_v18 = vmul.f32 0.15, %v565_v15  ;;  %vm672_vm3 = vcmp.gt.f32.partialorder %v565_v15, 0.0 }
  0xd8   :  { %3127 = vmatmul.mubr.msk.f32.gmra.mxu0 %vm335_vm6, %v719_v31  ;;  %v569_v35 = vpop.f32.mrf.mxu1  ;;  %3201 = vmatmul.mubr.msk.bf16.vlgmr.msra.gmra.mxu1 %vm1428_vm14, %v1244_v21  ;;  %v2764_v23 = vsel %vm1174_vm13, 1.0, %v3487_v8 }
  0xd9   :  { %3129 = vmatprep.mubr.msk.f32.mxu0 %vm3488_vm2, %v3487_v8  ;;  %v4033_v36 = vpop.permute.xlu1 %1158  ;;  %3204 = vmatprep.mubr.msk.bf16.mxu1 %vm3488_vm2, %v3487_v8  ;;  %v570_v20 = vadd.f32 %v3981_v30, %v569_v35  ;;  %v722_v31 = vsel %vm672_vm3, %v565_v15, %v697_v18  ;;  %v1246_v37 = vpack.c.bf16 %v2764_v23, %v2763_v25 }
  0xda   :  { %v3057_v5 = vpop.f32.mrf.mxu1  ;;  %2838 = vmatpush1.bf16.msk.msra.mxu1 %vm2837_vm0, %v3490_v11  ;;  %vm2841_vm0 = vmpackc.low %vm5290_vm9, %vm5289_vm12  ;;  %vm1178_vm12 = vcmp.eq.s32.totalorder %v3972_v24, %v3928_v54  ;;  %vm1177_vm9 = vcmp.eq.s32.totalorder %v3972_v24, %v3930_v55 }
  0xdb   :  { %2503 = vmatprep.subr.bf16.mxu1 %v3489_v13  ;;  %v698_v29 = vmul.f32 0.15, %v570_v20  ;;  %v4104_v46 = vpop.permute.xlu0 %1155  ;;  %vm673_vm3 = vcmp.gt.f32.partialorder %v570_v20, 0.0 }
  0xdc   :  { %3130 = vmatmul.mubr.msk.f32.gmra.mxu0 %vm335_vm6, %v720_v39  ;;  %v574_v42 = vpop.f32.mrf.mxu1 }
  0xdd   :  { %3132 = vmatprep.mubr.msk.f32.mxu0 %vm3488_vm2, %v3487_v8  ;;  %v4061_v16 = vpop.permute.xlu1 %1321  ;;  %v575_v32 = vadd.f32 %v3981_v30, %v574_v42  ;;  %v723_v39 = vsel %vm673_vm3, %v570_v20, %v698_v29 }
  0xde   :  { %v3060_v17 = vpop.f32.mrf.mxu1  ;;  %2840 = vmatpush1.bf16.msk.msra.mxu1 %vm2839_vm7, %v3490_v11  ;;  %vm5292_vm7 = vcmp.eq.s32.totalorder %v3972_v24, %v3932_v56 }
  0xdf   :  { %2505 = vmatprep.subr.bf16.mxu1 %v3489_v13  ;;  %vm2843_vm13 = vmpackc.low %vm5292_vm7, %vm5291_vm8  ;;  %v699_v12 = vmul.f32 0.15, %v575_v32  ;;  %vm674_vm4 = vcmp.gt.f32.partialorder %v575_v32, 0.0  ;;  %v4136_v42 = vpop.permute.xlu0 %1318  ;;  %v2765_v17 = vsel %vm1175_vm11, 1.0, %v3487_v8  ;;  %vm1335_vm11 = vcmp.eq.s32.totalorder %v3972_v24, %v3908_v44 }
  0xe0   :  { %3133 = vmatmul.mubr.msk.f32.gmra.mxu0 %vm335_vm6, %v721_v19  ;;  %v579_v47 = vpop.f32.mrf.mxu1  ;;  %3205 = vmatmul.mubr.msk.bf16.gmra.mxu1 %vm1428_vm14, %v1245_v43  ;;  %v2766_v43 = vsel %vm1176_vm1, 1.0, %v3487_v8  ;;  %vm1333_vm7 = vcmp.eq.s32.totalorder %v3972_v24, %v3900_v40 }
  0xe1   :  { %3135 = vmatprep.mubr.msk.f32.mxu0 %vm3488_vm2, %v3487_v8  ;;  %v4086_v21 = vpop.permute.xlu1 %1164  ;;  %3208 = vmatprep.mubr.msk.bf16.mxu1 %vm3488_vm2, %v3487_v8  ;;  %v580_v15 = vadd.f32 %v3981_v30, %v579_v47  ;;  %v724_v47 = vsel %vm674_vm4, %v575_v32, %v699_v12  ;;  %v1247_v25 = vpack.c.bf16 %v2766_v43, %v2765_v17  ;;  %v2768_v12 = vsel %vm1178_vm12, 1.0, %v3487_v8 }
  0xe2   :  { %v3063_v27 = vpop.f32.mrf.mxu1  ;;  %2842 = vmatpush1.bf16.msk.msra.mxu1 %vm2841_vm0, %v3490_v11  ;;  %vm5294_vm0 = vcmp.eq.s32.totalorder %v3972_v24, %v3926_v53 }
  0xe3   :  { %2507 = vmatprep.subr.bf16.mxu1 %v3489_v13  ;;  %vm2845_vm10 = vmpackc.low %vm5295_vm15, %vm5294_vm0  ;;  %v700_v20 = vmul.f32 0.15, %v580_v15  ;;  %vm675_vm3 = vcmp.gt.f32.partialorder %v580_v15, 0.0 }
  0xe4   :  { %3136 = vmatmul.mubr.msk.f32.gmra.mxu0 %vm335_vm6, %v722_v31  ;;  %v584_v35 = vpop.f32.mrf.mxu1 }
  0xe5   :  { %3138 = vmatprep.mubr.msk.f32.mxu0 %vm3488_vm2, %v3487_v8  ;;  %v4113_v4 = vpop.permute.xlu1 %1327  ;;  %v585_v23 = vadd.f32 %v3981_v30, %v584_v35  ;;  %v725_v31 = vsel %vm675_vm3, %v580_v15, %v700_v20  ;;  %v4178_v35 = vpop.permute.xlu0 %1161 }
  0xe6   :  { %5348 = vst [vmem:[#allocation11_spill] sm:$0xff] %v4113_v4  ;;  %v3066_v5 = vpop.f32.mrf.mxu1  ;;  %2844 = vmatpush1.bf16.msk.msra.mxu1 %vm2843_vm13, %v3490_v11  ;;  %vm5296_vm13 = vcmp.eq.s32.totalorder %v3972_v24, %v3918_v49  ;;  %vm5298_vm15 = vcmp.eq.s32.totalorder %v3972_v24, %v4113_v4 }
  0xe7   :  { %2509 = vmatprep.subr.bf16.mxu1 %v3489_v13  ;;  %vm2847_vm1 = vmpackc.low %vm1337_vm5, %vm5296_vm13  ;;  %v701_v29 = vmul.f32 0.15, %v585_v23  ;;  %vm676_vm3 = vcmp.gt.f32.partialorder %v585_v23, 0.0 }
  0xe8   :  { %3139 = vmatmul.mubr.msk.f32.gmra.mxu0 %vm335_vm6, %v723_v39  ;;  %v589_v51 = vpop.f32.mrf.mxu1  ;;  %3209 = vmatmul.mubr.msk.bf16.gmra.mxu1 %vm1428_vm14, %v1246_v37  ;;  %v2767_v39 = vsel %vm1177_vm9, 1.0, %v3487_v8 }
  0xe9   :  { %3141 = vmatprep.mubr.msk.f32.mxu0 %vm3488_vm2, %v3487_v8  ;;  %3212 = vmatprep.mubr.msk.bf16.mxu1 %vm3488_vm2, %v3487_v8  ;;  %v4146_v19 = vpop.permute.xlu1 %1330  ;;  %v590_v32 = vadd.f32 %v3981_v30, %v589_v51  ;;  %v726_v43 = vsel %vm676_vm3, %v585_v23, %v701_v29  ;;  %v1248_v55 = vpack.c.bf16 %v2768_v12, %v2767_v39  ;;  %v4216_v20 = vpop.permute.xlu0 %1324 }
  0xea   :  { %v3069_v18 = vpop.f32.mrf.mxu1  ;;  %2846 = vmatpush1.bf16.msk.msra.mxu1 %vm2845_vm10, %v3490_v11  ;;  %5349 = vst [vmem:[#allocation12_spill] sm:$0xff] %v4146_v19  ;;  %vm1334_vm10 = vcmp.eq.s32.totalorder %v3972_v24, %v3910_v45  ;;  %vm5293_vm4 = vcmp.eq.s32.totalorder %v3972_v24, %v4146_v19  ;;  %vm1180_vm3 = vcmp.eq.s32.totalorder %v3972_v24, %v3936_v58 }
  0xeb   :  { %2511 = vmatprep.subr.bf16.mxu1 %v3489_v13  ;;  %vm2849_vm8 = vmpackc.low %vm1335_vm11, %vm1334_vm10  ;;  %v2808_v5 = vsel %vm5293_vm4, 1.0, %v3487_v8  ;;  %v702_v51 = vmul.f32 0.15, %v590_v32  ;;  %vm677_vm12 = vcmp.gt.f32.partialorder %v590_v32, 0.0  ;;  %vm1179_vm4 = vcmp.eq.s32.totalorder %v3972_v24, %v3938_v59 }
  0xec   :  { %3142 = vmatmul.mubr.msk.f32.gmra.mxu0 %vm335_vm6, %v724_v47  ;;  %v594_v50 = vpop.f32.mrf.mxu1  ;;  %v4204_v18 = vpack.c.bf16 %v2808_v5, %v2808_v5  ;;  %vm5297_vm13 = vcmp.eq.s32.totalorder %v3972_v24, %v4216_v20 }
  0xed   :  { %3144 = vmatprep.mubr.msk.f32.mxu0 %vm3488_vm2, %v3487_v8  ;;  %v595_v17 = vadd.f32 %v3981_v30, %v594_v50  ;;  %v727_v50 = vsel %vm677_vm12, %v590_v32, %v702_v51  ;;  %v2769_v32 = vsel %vm1179_vm4, 1.0, %v3487_v8  ;;  %vm5300_vm4 = vcmp.eq.s32.totalorder %v3972_v24, %v4061_v16 }
  0xee   :  { %v3072_v27 = vpop.f32.mrf.mxu1  ;;  %2848 = vmatpush1.bf16.msk.msra.mxu1 %vm2847_vm1, %v3490_v11  ;;  %vm1332_vm1 = vcmp.eq.s32.totalorder %v3972_v24, %v3896_v38 }
  0xef   :  { %2513 = vmatprep.subr.bf16.mxu1 %v3489_v13  ;;  %vm2851_vm9 = vmpackc.low %vm1333_vm7, %vm1332_vm1  ;;  %v703_v23 = vmul.f32 0.15, %v595_v17  ;;  %vm678_vm0 = vcmp.gt.f32.partialorder %v595_v17, 0.0 }
  0xf0   :  { %3145 = vmatmul.mubr.msk.f32.gmra.mxu0 %vm335_vm6, %v725_v31  ;;  %v599_v37 = vpop.f32.mrf.mxu1  ;;  %3213 = vmatmul.mubr.msk.bf16.gmra.mxu1 %vm1428_vm14, %v1247_v25  ;;  %v2770_v31 = vsel %vm1180_vm3, 1.0, %v3487_v8  ;;  %vm1181_vm3 = vcmp.eq.s32.totalorder %v3972_v24, %v3946_v63 }
  0xf1   :  { %3147 = vmatprep.mubr.msk.f32.mxu0 %vm3488_vm2, %v3487_v8  ;;  %3216 = vmatprep.mubr.msk.bf16.mxu1 %vm3488_vm2, %v3487_v8  ;;  %v600_v25 = vadd.f32 %v3981_v30, %v599_v37  ;;  %v728_v12 = vsel %vm678_vm0, %v595_v17, %v703_v23  ;;  %vm5299_vm0 = vcmp.eq.s32.totalorder %v3972_v24, %v4136_v42 }
  0xf2   :  { %v3075_v15 = vpop.f32.mrf.mxu1  ;;  %2850 = vmatpush1.bf16.msk.msra.mxu1 %vm2849_vm8, %v3490_v11  ;;  %vm2498_vm8 = vcmask 1043456   ;;  %v1249_v59 = vpack.c.bf16 %v2770_v31, %v2769_v32 }
  0xf3   :  { %2515 = vmatprep.subr.bf16.mxu1 %v3489_v13  ;;  %v2499_v27 = vsel %vm2498_vm8, %v4204_v18, 0  ;;  %v704_v5 = vmul.f32 0.15, %v600_v25  ;;  %vm679_vm12 = vcmp.gt.f32.partialorder %v600_v25, 0.0  ;;  %vm1182_vm8 = vcmp.eq.s32.totalorder %v3972_v24, %v3944_v62 }
  0xf4   :  { %3148 = vmatmul.mubr.msk.f32.gmra.mxu0 %vm335_vm6, %v726_v43  ;;  %v604_v54 = vpop.f32.mrf.mxu1 }
  0xf5   :  { %3150 = vmatprep.mubr.msk.f32.mxu0 %vm3488_vm2, %v3487_v8  ;;  %v605_v39 = vadd.f32 %v3981_v30, %v604_v54  ;;  %v729_v43 = vsel %vm679_vm12, %v600_v25, %v704_v5  ;;  %vm5301_vm12 = vcmp.eq.s32.totalorder %v3972_v24, %v4063_v41  ;;  %v2772_v54 = vsel %vm1182_vm8, 1.0, %v3487_v8 }
  0xf6   :  { %v3078_v47 = vpop.f32.mrf.mxu1  ;;  %2852 = vmatpush1.bf16.msk.msra.mxu1 %vm2851_vm9, %v3490_v11  ;;  %vm2853_vm9 = vmpackc.low %vm5298_vm15, %vm5297_vm13 }
  0xf7   :  { %2523 = vmatprep.subr.bf16.mxu1 %v3489_v13  ;;  %v705_v51 = vmul.f32 0.15, %v605_v39  ;;  %vm2855_vm13 = vmpackc.low %vm5300_vm4, %vm5299_vm0  ;;  %vm680_vm15 = vcmp.gt.f32.partialorder %v605_v39, 0.0  ;;  %vm1183_vm4 = vcmp.eq.s32.totalorder %v3972_v24, %v3954_v3 }
  0xf8   :  { %3151 = vmatmul.mubr.msk.f32.gmra.mxu0 %vm335_vm6, %v727_v50  ;;  %v609_v29 = vpop.f32.mrf.mxu1  ;;  %3217 = vmatmul.mubr.msk.bf16.gmra.mxu1 %vm1428_vm14, %v1248_v55  ;;  %v2771_v55 = vsel %vm1181_vm3, 1.0, %v3487_v8  ;;  %vm1349_vm3 = vcmp.eq.s32.totalorder %v3972_v24, %v3986_v33 }
  0xf9   :  { %3153 = vmatprep.mubr.msk.f32.mxu0 %vm3488_vm2, %v3487_v8  ;;  %3220 = vmatprep.mubr.msk.bf16.mxu1 %vm3488_vm2, %v3487_v8  ;;  %v610_v17 = vadd.f32 %v3981_v30, %v609_v29  ;;  %v730_v50 = vsel %vm680_vm15, %v605_v39, %v705_v51  ;;  %vm1348_vm15 = vcmp.eq.s32.totalorder %v3972_v24, %v3996_v9 }
  0xfa   :  { %v3081_v37 = vpop.f32.mrf.mxu1  ;;  %2524 = vmatpush2.bf16.msra.mxu1 %v2499_v27  ;;  %v1250_v27 = vpack.c.bf16 %v2772_v54, %v2771_v55 }
  0xfb   :  { %2525 = vmatprep.subr.bf16.mxu1 %v3489_v13  ;;  %v706_v23 = vmul.f32 0.15, %v610_v17  ;;  %vm681_vm0 = vcmp.gt.f32.partialorder %v610_v17, 0.0 }
  0xfc   :  { %3154 = vmatmul.mubr.msk.f32.gmra.mxu0 %vm335_vm6, %v728_v12  ;;  %v614_v58 = vpop.f32.mrf.mxu1 }
  0xfd   :  { %3156 = vmatprep.mubr.msk.f32.mxu0 %vm3488_vm2, %v3487_v8  ;;  %v615_v25 = vadd.f32 %v3981_v30, %v614_v58  ;;  %v731_v32 = vsel %vm681_vm0, %v610_v17, %v706_v23 }
  0xfe   :  { %v3084_v15 = vpop.f32.mrf.mxu1  ;;  %2854 = vmatpush2.bf16.msk.msra.mxu1 %vm2853_vm9, %v3490_v11  ;;  %vm5302_vm9 = vcmp.eq.s32.totalorder %v3972_v24, %v4009_v26 }
  0xff   :  { %2527 = vmatprep.subr.bf16.mxu1 %v3489_v13  ;;  %vm2857_vm8 = vmpackc.low %vm5302_vm9, %vm5301_vm12  ;;  %v707_v31 = vmul.f32 0.15, %v615_v25  ;;  %vm682_vm9 = vcmp.gt.f32.partialorder %v615_v25, 0.0 }
 0x100   :  { %3157 = vmatmul.mubr.msk.f32.gmra.mxu0 %vm335_vm6, %v729_v43  ;;  %v619_v63 = vpop.f32.mrf.mxu1  ;;  %3221 = vmatmul.mubr.msk.bf16.gmra.mxu1 %vm1428_vm14, %v1249_v59  ;;  %vm2859_vm12 = vmpackc.low %vm1349_vm3, %vm1348_vm15 }
 0x101   :  { %3159 = vmatprep.mubr.msk.f32.mxu0 %vm3488_vm2, %v3487_v8  ;;  %3224 = vmatprep.mubr.msk.bf16.mxu1 %vm3488_vm2, %v3487_v8  ;;  %v620_v37 = vadd.f32 %v3981_v30, %v619_v63  ;;  %v732_v39 = vsel %vm682_vm9, %v615_v25, %v707_v31 }
 0x102   :  { %v3087_v47 = vpop.f32.mrf.mxu1  ;;  %2856 = vmatpush2.bf16.msk.msra.mxu1 %vm2855_vm13, %v3490_v11  ;;  %vm1184_vm13 = vcmp.eq.s32.totalorder %v3972_v24, %v3952_v2 }
 0x103   :  { %2529 = vmatprep.subr.bf16.mxu1 %v3489_v13  ;;  %v2774_v3 = vsel %vm1184_vm13, 1.0, %v3487_v8  ;;  %v708_v12 = vmul.f32 0.15, %v620_v37  ;;  %vm683_vm0 = vcmp.gt.f32.partialorder %v620_v37, 0.0  ;;  %vm1188_vm13 = vcmp.eq.s32.totalorder %v3972_v24, %v3994_v7 }
 0x104   :  { %3160 = vmatmul.mubr.msk.f32.gmra.mxu0 %vm335_vm6, %v730_v50  ;;  %v624_v62 = vpop.f32.mrf.mxu1 }
 0x105   :  { %3162 = vmatprep.mubr.msk.f32.mxu0 %vm3488_vm2, %v3487_v8  ;;  %v625_v58 = vadd.f32 %v3981_v30, %v624_v62  ;;  %v733_v43 = vsel %vm683_vm0, %v620_v37, %v708_v12  ;;  %vm1187_vm0 = vcmp.eq.s32.totalorder %v3972_v24, %v4023_v34  ;;  %v2778_v37 = vsel %vm1188_vm13, 1.0, %v3487_v8 }
 0x106   :  { %v3090_v29 = vpop.f32.mrf.mxu1  ;;  %2858 = vmatpush2.bf16.msk.msra.mxu1 %vm2857_vm8, %v3490_v11  ;;  %vm1185_vm8 = vcmp.eq.s32.totalorder %v3972_v24, %v3976_v28  ;;  %v2777_v7 = vsel %vm1187_vm0, 1.0, %v3487_v8 }
 0x107   :  { %2531 = vmatprep.subr.bf16.mxu1 %v3489_v13  ;;  %v2773_v13 = vsel %vm1183_vm4, 1.0, %v3487_v8  ;;  %vm1186_vm4 = vcmp.eq.s32.totalorder %v3972_v24, %v3969_v22  ;;  %vm684_vm9 = vcmp.gt.f32.partialorder %v625_v58, 0.0  ;;  %v2775_v22 = vsel %vm1185_vm8, 1.0, %v3487_v8 }
 0x108   :  { %3163 = vmatmul.mubr.msk.f32.gmra.mxu0 %vm335_vm6, %v731_v32  ;;  %v629_v2 = vpop.f32.mrf.mxu1  ;;  %3225 = vmatmul.mubr.msk.bf16.gmra.mxu1 %vm1428_vm14, %v1250_v27  ;;  %v1251_v15 = vpack.c.bf16 %v2774_v3, %v2773_v13  ;;  %v2776_v54 = vsel %vm1186_vm4, 1.0, %v3487_v8  ;;  %v1253_v12 = vpack.c.bf16 %v2778_v37, %v2777_v7  ;;  %v2785_v37 = vsel %vm1333_vm7, 1.0, %v3487_v8 }
 0x109   :  { %3165 = vmatprep.mubr.msk.f32.mxu0 %vm3488_vm2, %v3487_v8  ;;  %3228 = vmatprep.mubr.msk.bf16.mxu1 %vm3488_vm2, %v3487_v8  ;;  %v630_v17 = vadd.f32 %v3981_v30, %v629_v2  ;;  %v1252_v25 = vpack.c.bf16 %v2776_v54, %v2775_v22 }
 0x10a   :  { %v3093_v5 = vpop.f32.mrf.mxu1  ;;  %2860 = vmatpush2.bf16.msk.msra.mxu1 %vm2859_vm12, %v3490_v11  ;;  %v709_v11 = vmul.f32 0.15, %v625_v58 }
 0x10b   :  { %v710_v55 = vmul.f32 0.15, %v630_v17  ;;  %vm685_vm12 = vcmp.gt.f32.partialorder %v630_v17, 0.0 }
 0x10c   :  { %3166 = vmatmul.mubr.msk.f32.gmra.mxu0 %vm335_vm6, %v732_v39  ;;  %v634_v59 = vpop.f32.mrf.mxu1  ;;  %v734_v47 = vsel %vm684_vm9, %v625_v58, %v709_v11  ;;  %vm1190_vm9 = vcmp.eq.s32.totalorder %v3972_v24, %v4033_v36 }
 0x10d   :  { %3168 = vmatprep.mubr.msk.f32.mxu0 %vm3488_vm2, %v3487_v8  ;;  %v635_v23 = vadd.f32 %v3981_v30, %v634_v59  ;;  %v735_v29 = vsel %vm685_vm12, %v630_v17, %v710_v55  ;;  %vm1189_vm12 = vcmp.eq.s32.totalorder %v3972_v24, %v4104_v46  ;;  %v2780_v11 = vsel %vm1190_vm9, 1.0, %v3487_v8 }
 0x10e   :  { %v3096_v51 = vpop.f32.mrf.mxu1  ;;  %v2779_v36 = vsel %vm1189_vm12, 1.0, %v3487_v8 }
 0x10f   :  { %v711_v27 = vmul.f32 0.15, %v635_v23  ;;  %vm686_vm4 = vcmp.gt.f32.partialorder %v635_v23, 0.0  ;;  %v1254_v22 = vpack.c.bf16 %v2780_v11, %v2779_v36 }
 0x110   :  { %3169 = vmatmul.mubr.msk.f32.gmra.mxu0 %vm335_vm6, %v733_v43  ;;  %v639_v63 = vpop.f32.mrf.mxu1  ;;  %3229 = vmatmul.mubr.msk.bf16.gmra.mxu1 %vm1428_vm14, %v1251_v15 }
 0x111   :  { %3171 = vmatprep.mubr.msk.f32.mxu0 %vm3488_vm2, %v3487_v8  ;;  %3232 = vmatprep.mubr.msk.bf16.mxu1 %vm3488_vm2, %v3487_v8  ;;  %v640_v31 = vadd.f32 %v3981_v30, %v639_v63  ;;  %v736_v3 = vsel %vm686_vm4, %v635_v23, %v711_v27  ;;  %vm1192_vm4 = vcmp.eq.s32.totalorder %v3972_v24, %v4086_v21 }
 0x112   :  { %v3099_v28 = vpop.f32.mrf.mxu1 }
 0x113   :  { %v712_v2 = vmul.f32 0.15, %v640_v31  ;;  %vm687_vm8 = vcmp.gt.f32.partialorder %v640_v31, 0.0 }
 0x114   :  { %3172 = vmatmul.mubr.msk.f32.gmra.mxu0 %vm335_vm6, %v734_v47  ;;  %v644_v50 = vpop.f32.mrf.mxu1 }
 0x115   :  { %3174 = vmatprep.mubr.msk.f32.mxu0 %vm3488_vm2, %v3487_v8  ;;  %v645_v13 = vadd.f32 %v3981_v30, %v644_v50  ;;  %v737_v59 = vsel %vm687_vm8, %v640_v31, %v712_v2  ;;  %vm1191_vm8 = vcmp.eq.s32.totalorder %v3972_v24, %v4178_v35  ;;  %v2782_v50 = vsel %vm1192_vm4, 1.0, %v3487_v8 }
 0x116   :  { %v3102_v62 = vpop.f32.mrf.mxu1  ;;  %v2781_v21 = vsel %vm1191_vm8, 1.0, %v3487_v8  ;;  %vm5350_vm4 = vcmp.eq.s32.totalorder %v3972_v24, %v3918_v49  ;;  %vm5351_vm8 = vcmp.eq.s32.totalorder %v3972_v24, %v3924_v52 }
 0x117   :  { %v713_v58 = vmul.f32 0.15, %v645_v13  ;;  %vm688_vm13 = vcmp.gt.f32.partialorder %v645_v13, 0.0  ;;  %v1255_v27 = vpack.c.bf16 %v2782_v50, %v2781_v21  ;;  %v2801_v21 = vsel %vm1349_vm3, 1.0, %v3487_v8 }
 0x118   :  { %3175 = vmatmul.mubr.msk.f32.gmra.mxu0 %vm335_vm6, %v735_v29  ;;  %v649_v32 = vpop.f32.mrf.mxu1  ;;  %3233 = vmatmul.mubr.msk.bf16.gmra.mxu1 %vm1428_vm14, %v1252_v25  ;;  %v1168_v29 = vpop.permute.xlu0 %1167 }
 0x119   :  { %3177 = vmatprep.mubr.msk.f32.mxu0 %vm3488_vm2, %v3487_v8  ;;  %3236 = vmatprep.mubr.msk.bf16.mxu1 %vm3488_vm2, %v3487_v8  ;;  %v650_v15 = vadd.f32 %v3981_v30, %v649_v32  ;;  %v738_v17 = vsel %vm688_vm13, %v645_v13, %v713_v58  ;;  %v2787_v13 = vsel %vm1335_vm11, 1.0, %v3487_v8  ;;  %v2788_v58 = vsel %vm5350_vm4, 1.0, %v3487_v8 }
 0x11a   :  { %v3105_v34 = vpop.f32.mrf.mxu1  ;;  %vm5356_vm4 = vcmp.eq.s32.totalorder %v3972_v24, %v3942_v61 }
 0x11b   :  { %v714_v43 = vmul.f32 0.15, %v650_v15  ;;  %vm689_vm0 = vcmp.gt.f32.partialorder %v650_v15, 0.0 }
 0x11c   :  { %3178 = vmatmul.mubr.msk.f32.gmra.mxu0 %vm335_vm6, %v736_v3  ;;  %v654_v5 = vpop.f32.mrf.mxu1 }
 0x11d   :  { %3180 = vmatprep.mubr.msk.f32.mxu0 %vm3488_vm2, %v3487_v8  ;;  %v655_v63 = vadd.f32 %v3981_v30, %v654_v5  ;;  %v739_v47 = vsel %vm689_vm0, %v650_v15, %v714_v43  ;;  %vm1193_vm0 = vcmp.eq.s32.totalorder %v3972_v24, %v1168_v29  ;;  %v2786_v5 = vsel %vm1334_vm10, 1.0, %v3487_v8 }
 0x11e   :  { %v3108_v39 = vpop.f32.mrf.mxu1  ;;  %v2783_v34 = vsel %vm1193_vm0, 1.0, %v3487_v8  ;;  %v2791_v15 = vsel %vm5351_vm8, 1.0, %v3487_v8  ;;  %vm5355_vm0 = vcmp.eq.s32.totalorder %v3972_v24, %v3940_v60  ;;  %vm5357_vm8 = vcmp.eq.s32.totalorder %v3972_v24, %v3948_v0 }
 0x11f   :  { %v715_v55 = vmul.f32 0.15, %v655_v63  ;;  %vm690_vm9 = vcmp.gt.f32.partialorder %v655_v63, 0.0  ;;  %v1256_v3 = vpack.c.bf16 %v2783_v34, %v2783_v34  ;;  %v2789_v39 = vsel %vm1337_vm5, 1.0, %v3487_v8 }
 0x120   :  { %3181 = vmatmul.mubr.msk.f32.gmra.mxu0 %vm335_vm6, %v737_v59  ;;  %v659_v51 = vpop.f32.mrf.mxu1  ;;  %3237 = vmatmul.mubr.msk.bf16.gmra.mxu1 %vm1428_vm14, %v1253_v12  ;;  %v1408_v12 = vpack.c.bf16 %v2787_v13, %v2786_v5  ;;  %v1409_v59 = vpack.c.bf16 %v2789_v39, %v2788_v58 }
 0x121   :  { %3183 = vmatprep.mubr.msk.f32.mxu0 %vm3488_vm2, %v3487_v8  ;;  %3240 = vmatprep.mubr.msk.bf16.mxu1 %vm3488_vm2, %v3487_v8  ;;  %v660_v23 = vadd.f32 %v3981_v30, %v659_v51  ;;  %v740_v25 = vsel %vm690_vm9, %v655_v63, %v715_v55  ;;  %vm5352_vm9 = vcmp.eq.s32.totalorder %v3972_v24, %v3926_v53  ;;  %v2794_v63 = vsel %vm5356_vm4, 1.0, %v3487_v8 }
 0x122   :  { %v3111_v46 = vpop.f32.mrf.mxu1  ;;  %v2790_v51 = vsel %vm5352_vm9, 1.0, %v3487_v8  ;;  %vm5358_vm9 = vcmp.eq.s32.totalorder %v3972_v24, %v3950_v1  ;;  %vm5362_vm4 = vcmp.eq.s32.totalorder %v3972_v24, %v4063_v41 }
 0x123   :  { %v716_v35 = vmul.f32 0.15, %v660_v23  ;;  %vm691_vm12 = vcmp.gt.f32.partialorder %v660_v23, 0.0  ;;  %v1410_v11 = vpack.c.bf16 %v2791_v15, %v2790_v51 }
 0x124   :  { %3184 = vmatmul.mubr.msk.f32.gmra.mxu0 %vm335_vm6, %v738_v17  ;;  %v664_v54 = vpop.f32.mrf.mxu1  ;;  %v2795_v17 = vsel %vm5355_vm0, 1.0, %v3487_v8  ;;  %vm5361_vm0 = vcmp.eq.s32.totalorder %v3972_v24, %v4009_v26 }
 0x125   :  { %3186 = vmatprep.mubr.msk.f32.mxu0 %vm3488_vm2, %v3487_v8  ;;  %v665_v62 = vadd.f32 %v3981_v30, %v664_v54  ;;  %v741_v32 = vsel %vm691_vm12, %v660_v23, %v716_v35  ;;  %v2784_v30 = vsel %vm1332_vm1, 1.0, %v3487_v8  ;;  %vm5353_vm12 = vcmp.eq.s32.totalorder %v3972_v24, %v3932_v56 }
 0x126   :  { %v3114_v28 = vpop.f32.mrf.mxu1  ;;  %v1407_v2 = vpack.c.bf16 %v2785_v37, %v2784_v30  ;;  %v2793_v36 = vsel %vm5353_vm12, 1.0, %v3487_v8  ;;  %v1412_v54 = vpack.c.bf16 %v2795_v17, %v2794_v63  ;;  %vm5359_vm12 = vcmp.eq.s32.totalorder %v3972_v24, %v3962_v6 }
 0x127   :  { %v717_v31 = vmul.f32 0.15, %v665_v62  ;;  %vm692_vm13 = vcmp.gt.f32.partialorder %v665_v62, 0.0  ;;  %v2796_v28 = vsel %vm5358_vm9, 1.0, %v3487_v8  ;;  %v2800_v35 = vsel %vm1348_vm15, 1.0, %v3487_v8 }
 0x128   :  { %3187 = vmatmul.mubr.msk.f32.gmra.mxu0 %vm335_vm6, %v739_v47  ;;  %3241 = vmatmul.mubr.msk.bf16.gmra.mxu1 %vm1428_vm14, %v1254_v22  ;;  %v2797_v22 = vsel %vm5357_vm8, 1.0, %v3487_v8  ;;  %v2799_v47 = vsel %vm5359_vm12, 1.0, %v3487_v8  ;;  %vm5363_vm8 = vcmp.eq.s32.totalorder %v3972_v24, %v4061_v16  ;;  %vm5364_vm9 = vcmp.eq.s32.totalorder %v3972_v24, %v4136_v42 }
 0x129   :  { %3189 = vmatprep.mubr.msk.f32.mxu0 %vm3488_vm2, %v3487_v8  ;;  %3244 = vmatprep.mubr.msk.bf16.mxu1 %vm3488_vm2, %v3487_v8  ;;  %v742_v7 = vsel %vm692_vm13, %v665_v62, %v717_v31  ;;  %vm5354_vm13 = vcmp.eq.s32.totalorder %v3972_v24, %v3934_v57  ;;  %v1413_v55 = vpack.c.bf16 %v2797_v22, %v2796_v28  ;;  %v2803_v62 = vsel %vm5361_vm0, 1.0, %v3487_v8 }
 0x12a   :  { %v2792_v46 = vsel %vm5354_vm13, 1.0, %v3487_v8  ;;  %vm5360_vm13 = vcmp.eq.s32.totalorder %v3972_v24, %v3964_v14  ;;  %v2805_v31 = vsel %vm5363_vm8, 1.0, %v3487_v8  ;;  %vm5365_vm12 = vcmp.eq.s32.totalorder %v3972_v24, %v4113_v4 }
 0x12b   :  { %v1411_v43 = vpack.c.bf16 %v2793_v36, %v2792_v46  ;;  %v2798_v23 = vsel %vm5360_vm13, 1.0, %v3487_v8  ;;  %v2807_v37 = vsel %vm5365_vm12, 1.0, %v3487_v8  ;;  %vm5366_vm13 = vcmp.eq.s32.totalorder %v3972_v24, %v4216_v20 }
 0x12c   :  { %3190 = vmatmul.mubr.msk.f32.gmra.mxu0 %vm335_vm6, %v740_v25  ;;  %v1414_v50 = vpack.c.bf16 %v2799_v47, %v2798_v23  ;;  %v1415_v25 = vpack.c.bf16 %v2801_v21, %v2800_v35  ;;  %vm5401_vm0 = vcmp.eq.s32.totalorder %v3972_v24, %v3926_v53  ;;  %vm5404_vm8 = vcmp.eq.s32.totalorder %v3972_v24, %v3934_v57 }
 0x12d   :  { %3192 = vmatprep.mubr.msk.f32.mxu0 %vm3488_vm2, %v3487_v8  ;;  %vm5406_vm12 = vcmp.eq.s32.totalorder %v3972_v24, %v3942_v61 }
 0x130   :  { %3193 = vmatmul.mubr.msk.f32.gmra.mxu0 %vm335_vm6, %v741_v32  ;;  %3245 = vmatmul.mubr.msk.bf16.gmra.mxu1 %vm1428_vm14, %v1255_v27  ;;  %v2802_v27 = vsel %vm5362_vm4, 1.0, %v3487_v8  ;;  %v2804_v32 = vsel %vm5364_vm9, 1.0, %v3487_v8  ;;  %vm5402_vm4 = vcmp.eq.s32.totalorder %v3972_v24, %v3924_v52  ;;  %vm5405_vm9 = vcmp.eq.s32.totalorder %v3972_v24, %v3932_v56 }
 0x131   :  { %3195 = vmatprep.mubr.msk.f32.mxu0 %vm3488_vm2, %v3487_v8  ;;  %3248 = vmatprep.mubr.msk.bf16.mxu1 %vm3488_vm2, %v3487_v8  ;;  %v1416_v29 = vpack.c.bf16 %v2803_v62, %v2802_v27  ;;  %v1417_v30 = vpack.c.bf16 %v2805_v31, %v2804_v32 }
 0x134   :  { %3196 = vmatmul.mubr.msk.f32.gmra.mxu0 %vm335_vm6, %v742_v7  ;;  %v2806_v7 = vsel %vm5366_vm13, 1.0, %v3487_v8  ;;  %vm5407_vm13 = vcmp.eq.s32.totalorder %v3972_v24, %v3940_v60 }
 0x135   :  { %3254 = vmatprep.mubr.msk.bf16.mxu0 %vm3488_vm2, %v3487_v8  ;;  %v1418_v34 = vpack.c.bf16 %v2807_v37, %v2806_v7 }
 0x138   :  { %3255 = vmatmul.mubr.msk.bf16.vlgmr.msra.gmra.mxu0 %vm1428_vm14, %v1407_v2  ;;  %3249 = vmatmul.mubr.msk.bf16.gmra.mxu1 %vm1428_vm14, %v1256_v3  ;;  %v4544_v3 = vld [vmem:[%s5279_s13] ss:$0 sm:$0xff] }
 0x139   :  { %3258 = vmatprep.mubr.msk.bf16.mxu0 %vm3488_vm2, %v3487_v8 }
 0x140   :  { %3259 = vmatmul.mubr.msk.bf16.gmra.mxu0 %vm1428_vm14, %v1408_v12 }
 0x141   :  { %3262 = vmatprep.mubr.msk.bf16.mxu0 %vm3488_vm2, %v3487_v8 }
 0x148   :  { %3263 = vmatmul.mubr.msk.bf16.gmra.mxu0 %vm1428_vm14, %v1409_v59 }
 0x149   :  { %3266 = vmatprep.mubr.msk.bf16.mxu0 %vm3488_vm2, %v3487_v8 }
 0x150   :  { %3267 = vmatmul.mubr.msk.bf16.gmra.mxu0 %vm1428_vm14, %v1410_v11 }
 0x151   :  { %3270 = vmatprep.mubr.msk.bf16.mxu0 %vm3488_vm2, %v3487_v8 }
 0x158   :  { %3271 = vmatmul.mubr.msk.bf16.gmra.mxu0 %vm1428_vm14, %v1411_v43 }
 0x159   :  { %3274 = vmatprep.mubr.msk.bf16.mxu0 %vm3488_vm2, %v3487_v8 }
 0x160   :  { %3275 = vmatmul.mubr.msk.bf16.gmra.mxu0 %vm1428_vm14, %v1412_v54 }
 0x161   :  { %3278 = vmatprep.mubr.msk.bf16.mxu0 %vm3488_vm2, %v3487_v8 }
 0x168   :  { %3279 = vmatmul.mubr.msk.bf16.gmra.mxu0 %vm1428_vm14, %v1413_v55 }
 0x169   :  { %3282 = vmatprep.mubr.msk.bf16.mxu0 %vm3488_vm2, %v3487_v8 }
 0x170   :  { %3283 = vmatmul.mubr.msk.bf16.gmra.mxu0 %vm1428_vm14, %v1414_v50 }
 0x171   :  { %3286 = vmatprep.mubr.msk.bf16.mxu0 %vm3488_vm2, %v3487_v8 }
 0x178   :  { %3287 = vmatmul.mubr.msk.bf16.gmra.mxu0 %vm1428_vm14, %v1415_v25 }
 0x179   :  { %3290 = vmatprep.mubr.msk.bf16.mxu0 %vm3488_vm2, %v3487_v8 }
 0x180   :  { %3291 = vmatmul.mubr.msk.bf16.gmra.mxu0 %vm1428_vm14, %v1416_v29 }
 0x181   :  { %3294 = vmatprep.mubr.msk.bf16.mxu0 %vm3488_vm2, %v3487_v8 }
 0x188   :  { %3295 = vmatmul.mubr.msk.bf16.gmra.mxu0 %vm1428_vm14, %v1417_v30 }
 0x189   :  { %3298 = vmatprep.mubr.msk.bf16.mxu0 %vm3488_vm2, %v3487_v8 }
 0x190   :  { %3299 = vmatmul.mubr.msk.bf16.gmra.mxu0 %vm1428_vm14, %v1418_v34 }
 0x191   :  { %3302 = vmatprep.mubr.msk.bf16.mxu0 %vm3488_vm2, %v3487_v8  ;;  %vm5400_vm2 = vcmp.eq.s32.totalorder %v3972_v24, %v3918_v49 }
 0x194   :  { %v895_v2 = vpop.f32.mrf.mxu0 }
 0x195   :  { %v896_v5 = vadd.f32 %v4544_v3, %v895_v2 }
 0x196   :  { %v3125_v13 = vpop.f32.mrf.mxu0 }
 0x198   :  { %v900_v12 = vpop.f32.mrf.mxu0  ;;  %3303 = vmatmul.mubr.msk.bf16.gmra.mxu0 %vm1428_vm14, %v4204_v18  ;;  %v1502_v39 = vpop.f32.mrf.mxu1 }
 0x199   :  { %v4549_v59 = vadd.f32 %v1502_v39, %v896_v5  ;;  %v901_v8 = vadd.f32 %v4544_v3, %v900_v12 }
 0x19a   :  { %v3128_v58 = vpop.f32.mrf.mxu0  ;;  %v3202_v15 = vpop.f32.mrf.mxu1 }
 0x19b   :  { %5367 = vst [vmem:[#allocation13_spill] sm:$0xff] %v4549_v59 }
 0x19c   :  { %v905_v51 = vpop.f32.mrf.mxu0  ;;  %v1505_v11 = vpop.f32.mrf.mxu1 }
 0x19d   :  { %v4552_v46 = vadd.f32 %v1505_v11, %v901_v8  ;;  %v906_v17 = vadd.f32 %v4544_v3, %v905_v51 }
 0x19e   :  { %v3131_v36 = vpop.f32.mrf.mxu0  ;;  %v3203_v43 = vpop.f32.mrf.mxu1 }
 0x19f   :  { %5368 = vst [vmem:[#allocation14_spill] sm:$0xff] %v4552_v46 }
 0x1a0   :  { %v910_v63 = vpop.f32.mrf.mxu0  ;;  %v1510_v54 = vpop.f32.mrf.mxu1 }
 0x1a1   :  { %v4555_v28 = vadd.f32 %v1510_v54, %v906_v17  ;;  %v911_v55 = vadd.f32 %v4544_v3, %v910_v63 }
 0x1a2   :  { %v3134_v22 = vpop.f32.mrf.mxu0  ;;  %v3206_v18 = vpop.f32.mrf.mxu1 }
 0x1a3   :  { %5369 = vst [vmem:[#allocation15_spill] sm:$0xff] %v4555_v28 }
 0x1a4   :  { %v915_v47 = vpop.f32.mrf.mxu0  ;;  %v1513_v23 = vpop.f32.mrf.mxu1 }
 0x1a5   :  { %v4558_v21 = vadd.f32 %v1513_v23, %v911_v55  ;;  %v916_v25 = vadd.f32 %v4544_v3, %v915_v47 }
 0x1a6   :  { %v3137_v50 = vpop.f32.mrf.mxu0  ;;  %v3207_v35 = vpop.f32.mrf.mxu1 }
 0x1a7   :  { %5370 = vst [vmem:[#allocation16_spill] sm:$0xff] %v4558_v21 }
 0x1a8   :  { %v920_v62 = vpop.f32.mrf.mxu0  ;;  %v1518_v27 = vpop.f32.mrf.mxu1 }
 0x1a9   :  { %v4561_v31 = vadd.f32 %v1518_v27, %v916_v25  ;;  %v921_v30 = vadd.f32 %v4544_v3, %v920_v62 }
 0x1aa   :  { %v3140_v29 = vpop.f32.mrf.mxu0  ;;  %v3210_v32 = vpop.f32.mrf.mxu1 }
 0x1ab   :  { %5371 = vst [vmem:[#allocation17_spill] sm:$0xff] %v4561_v31 }
 0x1ac   :  { %v925_v37 = vpop.f32.mrf.mxu0  ;;  %v1521_v7 = vpop.f32.mrf.mxu1 }
 0x1ad   :  { %v4564_v2 = vadd.f32 %v1521_v7, %v921_v30  ;;  %v926_v5 = vadd.f32 %v4544_v3, %v925_v37 }
 0x1ae   :  { %v3143_v34 = vpop.f32.mrf.mxu0  ;;  %v3211_v13 = vpop.f32.mrf.mxu1 }
 0x1af   :  { %5372 = vst [vmem:[#allocation18_spill] sm:$0xff] %v4564_v2 }
 0x1b0   :  { %v930_v12 = vpop.f32.mrf.mxu0  ;;  %v1526_v39 = vpop.f32.mrf.mxu1 }
 0x1b1   :  { %v4567_v15 = vadd.f32 %v1526_v39, %v926_v5  ;;  %v931_v51 = vadd.f32 %v4544_v3, %v930_v12 }
 0x1b2   :  { %v3146_v58 = vpop.f32.mrf.mxu0  ;;  %v3214_v8 = vpop.f32.mrf.mxu1 }
 0x1b3   :  { %5373 = vst [vmem:[#allocation19_spill] sm:$0xff] %v4567_v15 }
 0x1b4   :  { %v935_v11 = vpop.f32.mrf.mxu0  ;;  %v1529_v36 = vpop.f32.mrf.mxu1 }
 0x1b5   :  { %v4570_v17 = vadd.f32 %v1529_v36, %v931_v51  ;;  %v936_v54 = vadd.f32 %v4544_v3, %v935_v11 }
 0x1b6   :  { %v3149_v43 = vpop.f32.mrf.mxu0  ;;  %v3215_v63 = vpop.f32.mrf.mxu1 }
 0x1b7   :  { %5374 = vst [vmem:[#allocation20_spill] sm:$0xff] %v4570_v17 }
 0x1b8   :  { %v940_v22 = vpop.f32.mrf.mxu0  ;;  %v1534_v18 = vpop.f32.mrf.mxu1 }
 0x1b9   :  { %v4573_v47 = vadd.f32 %v1534_v18, %v936_v54  ;;  %v941_v50 = vadd.f32 %v4544_v3, %v940_v22 }
 0x1ba   :  { %v3152_v55 = vpop.f32.mrf.mxu0  ;;  %v3218_v23 = vpop.f32.mrf.mxu1 }
 0x1bb   :  { %5375 = vst [vmem:[#allocation21_spill] sm:$0xff] %v4573_v47 }
 0x1bc   :  { %v945_v35 = vpop.f32.mrf.mxu0  ;;  %v1537_v25 = vpop.f32.mrf.mxu1 }
 0x1bd   :  { %v4576_v27 = vadd.f32 %v1537_v25, %v941_v50  ;;  %v946_v32 = vadd.f32 %v4544_v3, %v945_v35 }
 0x1be   :  { %v3155_v62 = vpop.f32.mrf.mxu0  ;;  %v3219_v29 = vpop.f32.mrf.mxu1 }
 0x1bf   :  { %5376 = vst [vmem:[#allocation22_spill] sm:$0xff] %v4576_v27 }
 0x1c0   :  { %v950_v30 = vpop.f32.mrf.mxu0  ;;  %v1542_v37 = vpop.f32.mrf.mxu1 }
 0x1c1   :  { %v4579_v34 = vadd.f32 %v1542_v37, %v946_v32  ;;  %v951_v5 = vadd.f32 %v4544_v3, %v950_v30 }
 0x1c2   :  { %v3158_v7 = vpop.f32.mrf.mxu0  ;;  %v3222_v13 = vpop.f32.mrf.mxu1 }
 0x1c3   :  { %5377 = vst [vmem:[#allocation23_spill] sm:$0xff] %v4579_v34 }
 0x1c4   :  { %v955_v12 = vpop.f32.mrf.mxu0  ;;  %v1545_v39 = vpop.f32.mrf.mxu1 }
 0x1c5   :  { %v4582_v8 = vadd.f32 %v1545_v39, %v951_v5  ;;  %v956_v11 = vadd.f32 %v4544_v3, %v955_v12 }
 0x1c6   :  { %v3161_v58 = vpop.f32.mrf.mxu0  ;;  %v3223_v51 = vpop.f32.mrf.mxu1 }
 0x1c7   :  { %5378 = vst [vmem:[#allocation24_spill] sm:$0xff] %v4582_v8 }
 0x1c8   :  { %v960_v36 = vpop.f32.mrf.mxu0  ;;  %v1550_v43 = vpop.f32.mrf.mxu1 }
 0x1c9   :  { %v4585_v54 = vadd.f32 %v1550_v43, %v956_v11  ;;  %v961_v18 = vadd.f32 %v4544_v3, %v960_v36 }
 0x1ca   :  { %v3164_v63 = vpop.f32.mrf.mxu0  ;;  %v3226_v22 = vpop.f32.mrf.mxu1 }
 0x1cb   :  { %5379 = vst [vmem:[#allocation25_spill] sm:$0xff] %v4585_v54 }
 0x1cc   :  { %v965_v55 = vpop.f32.mrf.mxu0  ;;  %v1553_v23 = vpop.f32.mrf.mxu1 }
 0x1cd   :  { %v4588_v35 = vadd.f32 %v1553_v23, %v961_v18  ;;  %v966_v62 = vadd.f32 %v4544_v3, %v965_v55 }
 0x1ce   :  { %v3167_v50 = vpop.f32.mrf.mxu0  ;;  %v3227_v25 = vpop.f32.mrf.mxu1 }
 0x1cf   :  { %5380 = vst [vmem:[#allocation26_spill] sm:$0xff] %v4588_v35 }
 0x1d0   :  { %v970_v29 = vpop.f32.mrf.mxu0  ;;  %v1558_v32 = vpop.f32.mrf.mxu1 }
 0x1d1   :  { %v4591_v37 = vadd.f32 %v1558_v32, %v966_v62  ;;  %v971_v13 = vadd.f32 %v4544_v3, %v970_v29 }
 0x1d2   :  { %v3170_v30 = vpop.f32.mrf.mxu0  ;;  %v3230_v7 = vpop.f32.mrf.mxu1 }
 0x1d3   :  { %5381 = vst [vmem:[#allocation27_spill] sm:$0xff] %v4591_v37 }
 0x1d4   :  { %v975_v5 = vpop.f32.mrf.mxu0  ;;  %v1561_v12 = vpop.f32.mrf.mxu1 }
 0x1d5   :  { %v4594_v58 = vadd.f32 %v1561_v12, %v971_v13  ;;  %v976_v11 = vadd.f32 %v4544_v3, %v975_v5 }
 0x1d6   :  { %v3173_v39 = vpop.f32.mrf.mxu0  ;;  %v3231_v51 = vpop.f32.mrf.mxu1 }
 0x1d7   :  { %5382 = vst [vmem:[#allocation28_spill] sm:$0xff] %v4594_v58 }
 0x1d8   :  { %v980_v36 = vpop.f32.mrf.mxu0  ;;  %v1566_v43 = vpop.f32.mrf.mxu1 }
 0x1d9   :  { %v4597_v22 = vadd.f32 %v1566_v43, %v976_v11  ;;  %v981_v55 = vadd.f32 %v4544_v3, %v980_v36 }
 0x1da   :  { %v3176_v63 = vpop.f32.mrf.mxu0  ;;  %v3234_v18 = vpop.f32.mrf.mxu1 }
 0x1db   :  { %5383 = vst [vmem:[#allocation29_spill] sm:$0xff] %v4597_v22 }
 0x1dc   :  { %v985_v23 = vpop.f32.mrf.mxu0  ;;  %v1569_v50 = vpop.f32.mrf.mxu1 }
 0x1dd   :  { %v4600_v62 = vadd.f32 %v1569_v50, %v981_v55  ;;  %v986_v32 = vadd.f32 %v4544_v3, %v985_v23 }
 0x1de   :  { %v3179_v25 = vpop.f32.mrf.mxu0  ;;  %v3235_v29 = vpop.f32.mrf.mxu1 }
 0x1df   :  { %5384 = vst [vmem:[#allocation30_spill] sm:$0xff] %v4600_v62 }
 0x1e0   :  { %v990_v30 = vpop.f32.mrf.mxu0  ;;  %v1574_v7 = vpop.f32.mrf.mxu1 }
 0x1e1   :  { %v4603_v5 = vadd.f32 %v1574_v7, %v986_v32  ;;  %v991_v39 = vadd.f32 %v4544_v3, %v990_v30 }
 0x1e2   :  { %v3182_v13 = vpop.f32.mrf.mxu0  ;;  %v3238_v12 = vpop.f32.mrf.mxu1 }
 0x1e3   :  { %5385 = vst [vmem:[#allocation31_spill] sm:$0xff] %v4603_v5 }
 0x1e4   :  { %v995_v51 = vpop.f32.mrf.mxu0  ;;  %v1577_v11 = vpop.f32.mrf.mxu1 }
 0x1e5   :  { %v4606_v36 = vadd.f32 %v1577_v11, %v991_v39  ;;  %v996_v18 = vadd.f32 %v4544_v3, %v995_v51 }
 0x1e6   :  { %v3185_v43 = vpop.f32.mrf.mxu0  ;;  %v3239_v63 = vpop.f32.mrf.mxu1 }
 0x1e7   :  { %5386 = vst [vmem:[#allocation32_spill] sm:$0xff] %v4606_v36 }
 0x1e8   :  { %v1000_v55 = vpop.f32.mrf.mxu0  ;;  %v1582_v50 = vpop.f32.mrf.mxu1 }
 0x1e9   :  { %v4609_v23 = vadd.f32 %v1582_v50, %v996_v18  ;;  %v1001_v32 = vadd.f32 %v4544_v3, %v1000_v55 }
 0x1ea   :  { %v3188_v25 = vpop.f32.mrf.mxu0  ;;  %v3242_v29 = vpop.f32.mrf.mxu1 }
 0x1eb   :  { %5387 = vst [vmem:[#allocation33_spill] sm:$0xff] %v4609_v23 }
 0x1ec   :  { %v1005_v7 = vpop.f32.mrf.mxu0  ;;  %v1585_v13 = vpop.f32.mrf.mxu1 }
 0x1ed   :  { %v4612_v30 = vadd.f32 %v1585_v13, %v1001_v32  ;;  %v1006_v39 = vadd.f32 %v4544_v3, %v1005_v7 }
 0x1ee   :  { %v3191_v12 = vpop.f32.mrf.mxu0  ;;  %v3243_v10 = vpop.f32.mrf.mxu1 }
 0x1ef   :  { %5388 = vst [vmem:[#allocation34_spill] sm:$0xff] %v4612_v30 }
 0x1f0   :  { %v1010_v11 = vpop.f32.mrf.mxu0  ;;  %v1590_v43 = vpop.f32.mrf.mxu1 }
 0x1f1   :  { %v4615_v51 = vadd.f32 %v1590_v43, %v1006_v39  ;;  %v1011_v18 = vadd.f32 %v4544_v3, %v1010_v11 }
 0x1f2   :  { %v3194_v63 = vpop.f32.mrf.mxu0  ;;  %v3246_v19 = vpop.f32.mrf.mxu1 }
 0x1f3   :  { %5389 = vst [vmem:[#allocation35_spill] sm:$0xff] %v4615_v51 }
 0x1f4   :  { %v1015_v50 = vpop.f32.mrf.mxu0  ;;  %v1593_v25 = vpop.f32.mrf.mxu1 }
 0x1f5   :  { %v4618_v55 = vadd.f32 %v1593_v25, %v1011_v18  ;;  %v1016_v32 = vadd.f32 %v4544_v3, %v1015_v50 }
 0x1f6   :  { %v3197_v29 = vpop.f32.mrf.mxu0  ;;  %v3247_v4 = vpop.f32.mrf.mxu1 }
 0x1f7   :  { %5390 = vst [vmem:[#allocation36_spill] sm:$0xff] %v4618_v55 }
 0x1f8   :  { %v1685_v13 = vpop.f32.mrf.mxu0  ;;  %v1598_v7 = vpop.f32.mrf.mxu1 }
 0x1f9   :  { %v1787_v10 = vmul.f32 %v1685_v13, %v4549_v59  ;;  %v4622_v12 = vadd.f32 %v1598_v7, %v1016_v32 }
 0x1fa   :  { %v3256_v63 = vpop.f32.mrf.mxu0  ;;  %v3250_v19 = vpop.f32.mrf.mxu1 }
 0x1fb   :  { %5391 = vst [vmem:[#allocation37_spill] sm:$0xff] %v4622_v12  ;;  %v1812_v39 = vsel %vm335_vm6, %v1787_v10, 0.0 }
 0x1fc   :  { %v1688_v43 = vpop.f32.mrf.mxu0  ;;  %1813 = vadd.xlane.f32.xlu0 %v1812_v39  ;;  %v1601_v29 = vpop.f32.mrf.mxu1 }
 0x1fd   :  { %v1788_v11 = vmul.f32 %v1688_v43, %v4552_v46 }
 0x1fe   :  { %v3257_v18 = vpop.f32.mrf.mxu0  ;;  %v3251_v25 = vpop.f32.mrf.mxu1 }
 0x1ff   :  { %v1815_v4 = vsel %vm335_vm6, %v1788_v11, 0.0 }
 0x200   :  { %v1693_v3 = vpop.f32.mrf.mxu0  ;;  %1816 = vadd.xlane.f32.xlu0 %v1815_v4 }
 0x201   :  { %v1789_v50 = vmul.f32 %v1693_v3, %v4555_v28 }
 0x202   :  { %v3260_v13 = vpop.f32.mrf.mxu0 }
 0x203   :  { %v1818_v32 = vsel %vm335_vm6, %v1789_v50, 0.0 }
 0x204   :  { %v1696_v7 = vpop.f32.mrf.mxu0  ;;  %1819 = vadd.xlane.f32.xlu0 %v1818_v32 }
 0x205   :  { %v1790_v10 = vmul.f32 %v1696_v7, %v4558_v21 }
 0x206   :  { %v3261_v63 = vpop.f32.mrf.mxu0 }
 0x207   :  { %v1821_v39 = vsel %vm335_vm6, %v1790_v10, 0.0 }
 0x208   :  { %v1701_v19 = vpop.f32.mrf.mxu0  ;;  %1822 = vadd.xlane.f32.xlu1 %v1821_v39 }
 0x209   :  { %v1791_v43 = vmul.f32 %v1701_v19, %v4561_v31 }
 0x20a   :  { %v3264_v11 = vpop.f32.mrf.mxu0 }
 0x20b   :  { %v1824_v29 = vsel %vm335_vm6, %v1791_v43, 0.0 }
 0x20c   :  { %v1704_v18 = vpop.f32.mrf.mxu0  ;;  %1825 = vadd.xlane.f32.xlu1 %v1824_v29 }
 0x20d   :  { %v1792_v4 = vmul.f32 %v1704_v18, %v4564_v2 }
 0x20e   :  { %v3265_v25 = vpop.f32.mrf.mxu0 }
 0x20f   :  { %v1827_v3 = vsel %vm335_vm6, %v1792_v4, 0.0 }
 0x210   :  { %v1709_v50 = vpop.f32.mrf.mxu0  ;;  %1828 = vadd.xlane.f32.xlu0 %v1827_v3 }
 0x211   :  { %v1793_v13 = vmul.f32 %v1709_v50, %v4567_v15 }
 0x212   :  { %v3268_v32 = vpop.f32.mrf.mxu0 }
 0x213   :  { %v1830_v7 = vsel %vm335_vm6, %v1793_v13, 0.0 }
 0x214   :  { %v1712_v10 = vpop.f32.mrf.mxu0  ;;  %1831 = vadd.xlane.f32.xlu1 %v1830_v7 }
 0x215   :  { %v1794_v63 = vmul.f32 %v1712_v10, %v4570_v17 }
 0x216   :  { %v3269_v39 = vpop.f32.mrf.mxu0 }
 0x217   :  { %v1833_v19 = vsel %vm335_vm6, %v1794_v63, 0.0 }
 0x218   :  { %v1717_v43 = vpop.f32.mrf.mxu0  ;;  %1834 = vadd.xlane.f32.xlu0 %v1833_v19 }
 0x219   :  { %v1795_v11 = vmul.f32 %v1717_v43, %v4573_v47 }
 0x21a   :  { %v3272_v29 = vpop.f32.mrf.mxu0 }
 0x21b   :  { %v1836_v18 = vsel %vm335_vm6, %v1795_v11, 0.0 }
 0x21c   :  { %v1720_v4 = vpop.f32.mrf.mxu0  ;;  %1837 = vadd.xlane.f32.xlu1 %v1836_v18 }
 0x21d   :  { %v1796_v25 = vmul.f32 %v1720_v4, %v4576_v27 }
 0x21e   :  { %v3273_v3 = vpop.f32.mrf.mxu0 }
 0x21f   :  { %v1839_v50 = vsel %vm335_vm6, %v1796_v25, 0.0 }
 0x220   :  { %v1725_v13 = vpop.f32.mrf.mxu0  ;;  %1840 = vadd.xlane.f32.xlu0 %v1839_v50 }
 0x221   :  { %v1797_v32 = vmul.f32 %v1725_v13, %v4579_v34 }
 0x222   :  { %v3276_v7 = vpop.f32.mrf.mxu0 }
 0x223   :  { %v1842_v10 = vsel %vm335_vm6, %v1797_v32, 0.0 }
 0x224   :  { %v1728_v63 = vpop.f32.mrf.mxu0  ;;  %1843 = vadd.xlane.f32.xlu1 %v1842_v10 }
 0x225   :  { %v1798_v39 = vmul.f32 %v1728_v63, %v4582_v8 }
 0x226   :  { %v3277_v19 = vpop.f32.mrf.mxu0 }
 0x227   :  { %v1845_v43 = vsel %vm335_vm6, %v1798_v39, 0.0 }
 0x228   :  { %v1733_v11 = vpop.f32.mrf.mxu0  ;;  %1846 = vadd.xlane.f32.xlu0 %v1845_v43 }
 0x229   :  { %v1799_v29 = vmul.f32 %v1733_v11, %v4585_v54 }
 0x22a   :  { %v3280_v18 = vpop.f32.mrf.mxu0 }
 0x22b   :  { %v1848_v4 = vsel %vm335_vm6, %v1799_v29, 0.0 }
 0x22c   :  { %v1736_v25 = vpop.f32.mrf.mxu0  ;;  %1849 = vadd.xlane.f32.xlu1 %v1848_v4 }
 0x22d   :  { %v1800_v3 = vmul.f32 %v1736_v25, %v4588_v35 }
 0x22e   :  { %v3281_v50 = vpop.f32.mrf.mxu0 }
 0x22f   :  { %v1851_v13 = vsel %vm335_vm6, %v1800_v3, 0.0 }
 0x230   :  { %v1741_v32 = vpop.f32.mrf.mxu0  ;;  %1852 = vadd.xlane.f32.xlu0 %v1851_v13 }
 0x231   :  { %v1801_v7 = vmul.f32 %v1741_v32, %v4591_v37 }
 0x232   :  { %v3284_v10 = vpop.f32.mrf.mxu0 }
 0x233   :  { %v1854_v63 = vsel %vm335_vm6, %v1801_v7, 0.0 }
 0x234   :  { %v1744_v39 = vpop.f32.mrf.mxu0  ;;  %1855 = vadd.xlane.f32.xlu1 %v1854_v63 }
 0x235   :  { %v1802_v19 = vmul.f32 %v1744_v39, %v4594_v58 }
 0x236   :  { %v3285_v43 = vpop.f32.mrf.mxu0 }
 0x237   :  { %v1857_v11 = vsel %vm335_vm6, %v1802_v19, 0.0 }
 0x238   :  { %v1749_v29 = vpop.f32.mrf.mxu0  ;;  %1858 = vadd.xlane.f32.xlu0 %v1857_v11 }
 0x239   :  { %v1803_v18 = vmul.f32 %v1749_v29, %v4597_v22 }
 0x23a   :  { %v3288_v4 = vpop.f32.mrf.mxu0 }
 0x23b   :  { %v1860_v25 = vsel %vm335_vm6, %v1803_v18, 0.0 }
 0x23c   :  { %v1752_v3 = vpop.f32.mrf.mxu0  ;;  %1861 = vadd.xlane.f32.xlu1 %v1860_v25 }
 0x23d   :  { %v1804_v50 = vmul.f32 %v1752_v3, %v4600_v62 }
 0x23e   :  { %v3289_v13 = vpop.f32.mrf.mxu0 }
 0x23f   :  { %v1863_v32 = vsel %vm335_vm6, %v1804_v50, 0.0 }
 0x240   :  { %v1757_v7 = vpop.f32.mrf.mxu0  ;;  %1864 = vadd.xlane.f32.xlu0 %v1863_v32 }
 0x241   :  { %v1805_v10 = vmul.f32 %v1757_v7, %v4603_v5 }
 0x242   :  { %v3292_v63 = vpop.f32.mrf.mxu0 }
 0x243   :  { %v1866_v39 = vsel %vm335_vm6, %v1805_v10, 0.0 }
 0x244   :  { %v1760_v19 = vpop.f32.mrf.mxu0  ;;  %1867 = vadd.xlane.f32.xlu1 %v1866_v39 }
 0x245   :  { %v1806_v43 = vmul.f32 %v1760_v19, %v4606_v36 }
 0x246   :  { %v3293_v11 = vpop.f32.mrf.mxu0 }
 0x247   :  { %v1869_v29 = vsel %vm335_vm6, %v1806_v43, 0.0 }
 0x248   :  { %v1765_v18 = vpop.f32.mrf.mxu0  ;;  %1870 = vadd.xlane.f32.xlu0 %v1869_v29 }
 0x249   :  { %v1807_v4 = vmul.f32 %v1765_v18, %v4609_v23 }
 0x24a   :  { %v3296_v25 = vpop.f32.mrf.mxu0 }
 0x24b   :  { %v1872_v3 = vsel %vm335_vm6, %v1807_v4, 0.0 }
 0x24c   :  { %v1768_v50 = vpop.f32.mrf.mxu0  ;;  %1873 = vadd.xlane.f32.xlu1 %v1872_v3 }
 0x24d   :  { %v1808_v13 = vmul.f32 %v1768_v50, %v4612_v30 }
 0x24e   :  { %v3297_v32 = vpop.f32.mrf.mxu0 }
 0x24f   :  { %v1875_v7 = vsel %vm335_vm6, %v1808_v13, 0.0 }
 0x250   :  { %v1773_v10 = vpop.f32.mrf.mxu0  ;;  %1876 = vadd.xlane.f32.xlu0 %v1875_v7 }
 0x251   :  { %v1809_v63 = vmul.f32 %v1773_v10, %v4615_v51 }
 0x252   :  { %v3300_v39 = vpop.f32.mrf.mxu0 }
 0x253   :  { %v1878_v19 = vsel %vm335_vm6, %v1809_v63, 0.0 }
 0x254   :  { %v1776_v43 = vpop.f32.mrf.mxu0  ;;  %1879 = vadd.xlane.f32.xlu1 %v1878_v19 }
 0x255   :  { %v1810_v11 = vmul.f32 %v1776_v43, %v4618_v55 }
 0x256   :  { %v3301_v29 = vpop.f32.mrf.mxu0 }
 0x257   :  { %v1881_v18 = vsel %vm335_vm6, %v1810_v11, 0.0 }
 0x258   :  { %v1781_v4 = vpop.f32.mrf.mxu0  ;;  %1882 = vadd.xlane.f32.xlu0 %v1881_v18 }
 0x259   :  { %v1811_v25 = vmul.f32 %v1781_v4, %v4622_v12 }
 0x25a   :  { %v3304_v3 = vpop.f32.mrf.mxu0 }
 0x25b   :  { %v1884_v50 = vsel %vm335_vm6, %v1811_v25, 0.0 }
 0x25c   :  { %v1784_v13 = vpop.f32.mrf.mxu0  ;;  %1885 = vadd.xlane.f32.xlu1 %v1884_v50 }
 0x25e   :  { %v3305_v32 = vpop.f32.mrf.mxu0 }
 0x285   :  { %v4673_v7 = vpop.xlane.xlu0 %1813 }
 0x286   :  { %v1887_v37 = vsel %vm1332_vm1, %v4673_v7, -1e+30 }
 0x287   :  { %v1912_v34 = vsel %vm1428_vm14, %v1887_v37, -inf }
 0x289   :  { %v4675_v10 = vpop.xlane.xlu0 %1816 }
 0x28a   :  { %v1888_v12 = vsel %vm1333_vm7, %v4675_v10, -1e+30 }
 0x28b   :  { %v1913_v30 = vsel %vm1428_vm14, %v1888_v12, -inf }
 0x28d   :  { %v4679_v39 = vpop.xlane.xlu0 %1819 }
 0x28e   :  { %v1889_v23 = vsel %vm1334_vm10, %v4679_v39, -1e+30 }
 0x291   :  { %v4677_v63 = vpop.xlane.xlu1 %1822 }
 0x292   :  { %v1890_v27 = vsel %vm1335_vm11, %v4677_v63, -1e+30 }
 0x293   :  { %v1915_v22 = vsel %vm1428_vm14, %v1890_v27, -inf }
 0x295   :  { %v4681_v19 = vpop.xlane.xlu1 %1825 }
 0x296   :  { %v1891_v54 = vsel %vm5400_vm2, %v4681_v19, -1e+30  ;;  %vm5408_vm2 = vcmp.eq.s32.totalorder %v3972_v24, %v3950_v1 }
 0x297   :  { %v1916_v37 = vsel %vm1428_vm14, %v1891_v54, -inf }
 0x298   :  { %v1917_v21 = vmax.f32 %v1912_v34, %v1916_v37 }
 0x299   :  { %v4683_v43 = vpop.xlane.xlu0 %1828 }
 0x29a   :  { %v1892_v55 = vsel %vm1337_vm5, %v4683_v43, -1e+30 }
 0x29b   :  { %v1918_v12 = vsel %vm1428_vm14, %v1892_v55, -inf  ;;  %v1914_v55 = vsel %vm1428_vm14, %v1889_v23, -inf }
 0x29c   :  { %v1919_v28 = vmax.f32 %v1913_v30, %v1918_v12 }
 0x29d   :  { %v4685_v11 = vpop.xlane.xlu1 %1831 }
 0x29e   :  { %v1893_v51 = vsel %vm5401_vm0, %v4685_v11, -1e+30  ;;  %vm5410_vm0 = vcmp.eq.s32.totalorder %v3972_v24, %v3962_v6 }
 0x29f   :  { %v1920_v5 = vsel %vm1428_vm14, %v1893_v51, -inf }
 0x2a0   :  { %v1921_v59 = vmax.f32 %v1914_v55, %v1920_v5 }
 0x2a1   :  { %v4687_v29 = vpop.xlane.xlu0 %1834 }
 0x2a2   :  { %v1894_v47 = vsel %vm5402_vm4, %v4687_v29, -1e+30  ;;  %vm5411_vm4 = vcmp.eq.s32.totalorder %v3972_v24, %v3948_v0 }
 0x2a3   :  { %v1922_v2 = vsel %vm1428_vm14, %v1894_v47, -inf }
 0x2a5   :  { %v4689_v18 = vpop.xlane.xlu1 %1837 }
 0x2a6   :  { %5392 = vst [vmem:[#allocation38_spill] sm:$0xff] %v4689_v18  ;;  %v1895_v17 = vsel %vm5404_vm8, %v4689_v18, -1e+30  ;;  %v1923_v18 = vmax.f32 %v1915_v22, %v1922_v2  ;;  %vm5412_vm8 = vcmp.eq.s32.totalorder %v3972_v24, %v3964_v14 }
 0x2a7   :  { %v1924_v46 = vsel %vm1428_vm14, %v1895_v17, -inf }
 0x2a8   :  { %v1925_v5 = vmax.f32 %v1917_v21, %v1924_v46 }
 0x2a9   :  { %v4691_v4 = vpop.xlane.xlu0 %1840 }
 0x2aa   :  { %5393 = vst [vmem:[#allocation39_spill] sm:$0xff] %v4691_v4  ;;  %v1896_v15 = vsel %vm5405_vm9, %v4691_v4, -1e+30  ;;  %vm5414_vm9 = vcmp.eq.s32.totalorder %v3972_v24, %v4009_v26 }
 0x2ad   :  { %v4693_v25 = vpop.xlane.xlu1 %1843 }
 0x2ae   :  { %5394 = vst [vmem:[#allocation40_spill] sm:$0xff] %v4693_v25  ;;  %v1897_v62 = vsel %vm5406_vm12, %v4693_v25, -1e+30  ;;  %vm5416_vm12 = vcmp.eq.s32.totalorder %v3972_v24, %v4063_v41 }
 0x2af   :  { %v1928_v23 = vsel %vm1428_vm14, %v1897_v62, -inf }
 0x2b0   :  { %v1929_v37 = vmax.f32 %v1921_v59, %v1928_v23 }
 0x2b1   :  { %v4695_v3 = vpop.xlane.xlu0 %1846 }
 0x2b2   :  { %5395 = vst [vmem:[#allocation41_spill] sm:$0xff] %v4695_v3  ;;  %v1898_v54 = vsel %vm5407_vm13, %v4695_v3, -1e+30  ;;  %v1926_v3 = vsel %vm1428_vm14, %v1896_v15, -inf  ;;  %vm5417_vm13 = vcmp.eq.s32.totalorder %v3972_v24, %v4136_v42 }
 0x2b3   :  { %v1930_v27 = vsel %vm1428_vm14, %v1898_v54, -inf  ;;  %v1927_v30 = vmax.f32 %v1919_v28, %v1926_v3 }
 0x2b4   :  { %v1931_v12 = vmax.f32 %v1923_v18, %v1930_v27 }
 0x2b5   :  { %v4697_v50 = vpop.xlane.xlu1 %1849 }
 0x2b6   :  { %5396 = vst [vmem:[#allocation42_spill] sm:$0xff] %v4697_v50  ;;  %v1899_v31 = vsel %vm5408_vm2, %v4697_v50, -1e+30  ;;  %vm5419_vm2 = vcmp.eq.s32.totalorder %v3972_v24, %v4061_v16 }
 0x2b7   :  { %v1932_v34 = vsel %vm1428_vm14, %v1899_v31, -inf }
 0x2b8   :  { %v1933_v54 = vmax.f32 %v1925_v5, %v1932_v34 }
 0x2b9   :  { %v4699_v13 = vpop.xlane.xlu0 %1852 }
 0x2ba   :  { %5397 = vst [vmem:[#allocation43_spill] sm:$0xff] %v4699_v13  ;;  %v1900_v17 = vsel %vm5411_vm4, %v4699_v13, -1e+30 }
 0x2bb   :  { %v1934_v55 = vsel %vm1428_vm14, %v1900_v17, -inf  ;;  %v5421_v17 = vld [vmem:[#allocation11_spill] sm:$0xff] }
 0x2bc   :  { %vm5422_vm4 = vcmp.eq.s32.totalorder %v3972_v24, %v5421_v17  ;;  %v1935_v5 = vmax.f32 %v1927_v30, %v1934_v55 }
 0x2bd   :  { %v4701_v32 = vpop.xlane.xlu1 %1855 }
 0x2be   :  { %5398 = vst [vmem:[#allocation44_spill] sm:$0xff] %v4701_v32  ;;  %v1901_v15 = vsel %vm5412_vm8, %v4701_v32, -1e+30 }
 0x2bf   :  { %v1936_v59 = vsel %vm1428_vm14, %v1901_v15, -inf }
 0x2c1   :  { %v4703_v58 = vpop.xlane.xlu0 %1858 }
 0x2c2   :  { %5399 = vst [vmem:[#allocation45_spill] sm:$0xff] %v4703_v58  ;;  %v1902_v47 = vsel %vm5410_vm0, %v4703_v58, -1e+30  ;;  %vm5420_vm0 = vcmp.eq.s32.totalorder %v3972_v24, %v4216_v20 }
 0x2c3   :  { %v1938_v46 = vsel %vm1428_vm14, %v1902_v47, -inf }
 0x2c4   :  { %v1939_v27 = vmax.f32 %v1931_v12, %v1938_v46  ;;  %v1937_v12 = vmax.f32 %v1929_v37, %v1936_v59 }
 0x2c5   :  { %v4713_v35 = vpop.xlane.xlu1 %1861 }
 0x2c6   :  { %v1903_v2 = vsel %vm1348_vm15, %v4713_v35, -1e+30 }
 0x2c7   :  { %v1940_v28 = vsel %vm1428_vm14, %v1903_v2, -inf }
 0x2c8   :  { %v1941_v46 = vmax.f32 %v1933_v54, %v1940_v28 }
 0x2c9   :  { %v4727_v8 = vpop.xlane.xlu0 %1864 }
 0x2ca   :  { %v1904_v31 = vsel %vm1349_vm3, %v4727_v8, -1e+30 }
 0x2cb   :  { %v1942_v18 = vsel %vm1428_vm14, %v1904_v31, -inf }
 0x2cc   :  { %v1943_v13 = vmax.f32 %v1935_v5, %v1942_v18 }
 0x2cd   :  { %v4743_v36 = vpop.xlane.xlu1 %1867 }
 0x2ce   :  { %5403 = vst [vmem:[#allocation46_spill] sm:$0xff] %v4743_v36  ;;  %v1905_v58 = vsel %vm5416_vm12, %v4743_v36, -1e+30 }
 0x2cf   :  { %v1944_v2 = vsel %vm1428_vm14, %v1905_v58, -inf  ;;  %v5423_v58 = vld [vmem:[#allocation12_spill] sm:$0xff] }
 0x2d0   :  { %v1945_v4 = vmax.f32 %v1937_v12, %v1944_v2  ;;  %vm5424_vm8 = vcmp.eq.s32.totalorder %v3972_v24, %v5423_v58 }
 0x2d1   :  { %v4764_v51 = vpop.xlane.xlu0 %1870 }
 0x2d2   :  { %v1906_v22 = vsel %vm5414_vm9, %v4764_v51, -1e+30 }
 0x2d3   :  { %v1946_v3 = vsel %vm1428_vm14, %v1906_v22, -inf }
 0x2d4   :  { %v1947_v50 = vmax.f32 %v1939_v27, %v1946_v3 }
 0x2d5   :  { %v4774_v25 = vpop.xlane.xlu1 %1873 }
 0x2d6   :  { %5409 = vst [vmem:[#allocation47_spill] sm:$0xff] %v4774_v25  ;;  %v1907_v32 = vsel %vm5417_vm13, %v4774_v25, -1e+30 }
 0x2d7   :  { %v1948_v31 = vsel %vm1428_vm14, %v1907_v32, -inf }
 0x2d8   :  { %v1949_v36 = vmax.f32 %v1941_v46, %v1948_v31 }
 0x2d9   :  { %v4792_v62 = vpop.xlane.xlu0 %1876 }
 0x2da   :  { %5413 = vst [vmem:[#allocation48_spill] sm:$0xff] %v4792_v62  ;;  %v1908_v47 = vsel %vm5419_vm2, %v4792_v62, -1e+30 }
 0x2db   :  { %v1950_v25 = vsel %vm1428_vm14, %v1908_v47, -inf }
 0x2dc   :  { %v1951_v37 = vmax.f32 %v1943_v13, %v1950_v25 }
 0x2dd   :  { %v4807_v21 = vpop.xlane.xlu1 %1879 }
 0x2de   :  { %5415 = vst [vmem:[#allocation49_spill] sm:$0xff] %v4807_v21  ;;  %v1909_v34 = vsel %vm5420_vm0, %v4807_v21, -1e+30  ;;  %vm5436_vm0 = vmmov %vm5422_vm4 }
 0x2df   :  { %v1952_v21 = vsel %vm1428_vm14, %v1909_v34, -inf }
 0x2e0   :  { %v1953_v54 = vmax.f32 %v1945_v4, %v1952_v21 }
 0x2e1   :  { %v4822_v23 = vpop.xlane.xlu0 %1882 }
 0x2e2   :  { %5418 = vst [vmem:[#allocation50_spill] sm:$0xff] %v4822_v23  ;;  %v1910_v15 = vsel %vm5422_vm4, %v4822_v23, -1e+30  ;;  %vm5437_vm4 = vcmp.eq.s32.totalorder %v3972_v24, %v4216_v20 }
 0x2e3   :  { %v1954_v22 = vsel %vm1428_vm14, %v1910_v15, -inf }
 0x2e4   :  { %v1955_v23 = vmax.f32 %v1947_v50, %v1954_v22 }
 0x2e5   :  { %v4841_v62 = vpop.xlane.xlu1 %1885 }
 0x2e6   :  { %v1911_v32 = vsel %vm5424_vm8, %v4841_v62, -1e+30  ;;  %v1959_v59 = vmax.f32 %v1953_v54, %v1955_v23  ;;  %vm5438_vm8 = vcmp.eq.s32.totalorder %v3972_v24, %v3948_v0 }
 0x2e7   :  { %v1956_v30 = vsel %vm1428_vm14, %v1911_v32, -inf }
 0x2e8   :  { %v1957_v55 = vmax.f32 %v1949_v36, %v1956_v30 }
 0x2ea   :  { %v1958_v28 = vmax.f32 %v1957_v55, %v1951_v37 }
 0x2ec   :  { %v1960_v18 = vmax.f32 %v1958_v28, %v1959_v59 }
 0x2ee   :  { %v1961_v3 = vrot.slane %v1960_v18, 4 }
 0x2f0   :  { %v1962_v27 = vmax.f32 %v1960_v18, %v1961_v3 }
 0x2f2   :  { %v1963_v47 = vrot.slane %v1962_v27, 2 }
 0x2f4   :  { %v1964_v34 = vmax.f32 %v1962_v27, %v1963_v47 }
 0x2f6   :  { %v1965_v15 = vrot.slane %v1964_v34, 1 }
 0x2f8   :  { %v4848_v5 = vmax.f32 %v1964_v34, %v1965_v15 }
 0x2fa   :  { %v1968_v50 = vsel %vm1333_vm7, %v4848_v5, 0.0  ;;  %v1967_v36 = vsel %vm1332_vm1, %v4848_v5, 0.0  ;;  %v1970_v13 = vsel %vm1335_vm11, %v4848_v5, 0.0  ;;  %v1969_v40 = vsel %vm1334_vm10, %v4848_v5, 0.0  ;;  %vm5428_vm10 = vmmov %vm5414_vm9 }
 0x2fb   :  { %v1995_v4 = vsel %vm1428_vm14, %v1968_v50, 0.0  ;;  %v1992_v25 = vsel %vm1428_vm14, %v1967_v36, 0.0  ;;  %v2001_v21 = vsel %vm1428_vm14, %v1970_v13, 0.0  ;;  %v1998_v38 = vsel %vm1428_vm14, %v1969_v40, 0.0  ;;  %vm5429_vm1 = vmmov %vm5416_vm12 }
 0x2fc   :  { %1996 = vadd.xlane.f32.xlu1 %v1995_v4  ;;  %1993 = vadd.xlane.f32.xlu0 %v1992_v25  ;;  %v1972_v23 = vsel %vm1337_vm5, %v4848_v5, 0.0  ;;  %vm5425_vm7 = vcmp.eq.s32.totalorder %v3972_v24, %v3918_v49  ;;  %v1984_v31 = vsel %vm1349_vm3, %v4848_v5, 0.0  ;;  %v1983_v48 = vsel %vm1348_vm15, %v4848_v5, 0.0  ;;  %vm5432_vm9 = vmmov %vm5419_vm2 }
 0x2fd   :  { %v1971_v44 = vsel %vm5425_vm7, %v4848_v5, 0.0  ;;  %v2007_v2 = vsel %vm1428_vm14, %v1972_v23, 0.0  ;;  %v2043_v22 = vsel %vm1428_vm14, %v1984_v31, 0.0  ;;  %v2040_v49 = vsel %vm1428_vm14, %v1983_v48, 0.0  ;;  %vm5433_vm12 = vmmov %vm5417_vm13 }
 0x2fe   :  { %v2004_v45 = vsel %vm1428_vm14, %v1971_v44, 0.0  ;;  %vm5426_vm5 = vcmp.eq.s32.totalorder %v3972_v24, %v3924_v52  ;;  %vm5427_vm11 = vcmp.eq.s32.totalorder %v3972_v24, %v3926_v53  ;;  %v1986_v32 = vsel %vm5428_vm10, %v4848_v5, 0.0 }
 0x2ff   :  { %v1974_v12 = vsel %vm5426_vm5, %v4848_v5, 0.0  ;;  %v1973_v33 = vsel %vm5427_vm11, %v4848_v5, 0.0  ;;  %v1985_v52 = vsel %vm5429_vm1, %v4848_v5, 0.0  ;;  %v2049_v30 = vsel %vm1428_vm14, %v1986_v32, 0.0 }
 0x300   :  { %2002 = vadd.xlane.f32.xlu1 %v2001_v21  ;;  %1999 = vadd.xlane.f32.xlu0 %v1998_v38  ;;  %v2013_v46 = vsel %vm1428_vm14, %v1974_v12, 0.0  ;;  %v2010_v9 = vsel %vm1428_vm14, %v1973_v33, 0.0  ;;  %v2046_v53 = vsel %vm1428_vm14, %v1985_v52, 0.0  ;;  %vm5430_vm3 = vcmp.eq.s32.totalorder %v3972_v24, %v3932_v56  ;;  %v3440_v33 = vld [vmem:[%s5267_s1 + $0x8] sm:$0xff] }
 0x301   :  { %v1976_v37 = vsel %vm5430_vm3, %v4848_v5, 0.0  ;;  %vm5431_vm15 = vcmp.eq.s32.totalorder %v3972_v24, %v3934_v57  ;;  %v1988_v55 = vsel %vm5432_vm9, %v4848_v5, 0.0  ;;  %v1987_v56 = vsel %vm5433_vm12, %v4848_v5, 0.0 }
 0x302   :  { %v1975_v26 = vsel %vm5431_vm15, %v4848_v5, 0.0  ;;  %v2019_v54 = vsel %vm1428_vm14, %v1976_v37, 0.0  ;;  %v2055_v59 = vsel %vm1428_vm14, %v1988_v55, 0.0  ;;  %v2052_v57 = vsel %vm1428_vm14, %v1987_v56, 0.0  ;;  %v5443_v55 = vld [vmem:[#allocation46_spill] sm:$0xff] }
 0x303   :  { %v2016_v41 = vsel %vm1428_vm14, %v1975_v26, 0.0  ;;  %vm5434_vm13 = vcmp.eq.s32.totalorder %v3972_v24, %v3940_v60  ;;  %vm5435_vm2 = vcmp.eq.s32.totalorder %v3972_v24, %v3942_v61  ;;  %v1990_v3 = vsel %vm5436_vm0, %v4848_v5, 0.0 }
 0x304   :  { %2008 = vadd.xlane.f32.xlu1 %v2007_v2  ;;  %2005 = vadd.xlane.f32.xlu0 %v2004_v45  ;;  %v1978_v28 = vsel %vm5434_vm13, %v4848_v5, 0.0  ;;  %v1977_v16 = vsel %vm5435_vm2, %v4848_v5, 0.0  ;;  %v1989_v60 = vsel %vm5437_vm4, %v4848_v5, 0.0  ;;  %v2061_v27 = vsel %vm1428_vm14, %v1990_v3, 0.0 }
 0x305   :  { %v2025_v18 = vsel %vm1428_vm14, %v1978_v28, 0.0  ;;  %v2022_v42 = vsel %vm1428_vm14, %v1977_v16, 0.0  ;;  %v2058_v61 = vsel %vm1428_vm14, %v1989_v60, 0.0  ;;  %v1980_v47 = vsel %vm5438_vm8, %v4848_v5, 0.0  ;;  %v3443_v60 = vld [vmem:[%s5267_s1 + $0x18] sm:$0xff] }
 0x306   :  { %vm5439_vm7 = vcmp.eq.s32.totalorder %v3972_v24, %v3950_v1  ;;  %v2031_v34 = vsel %vm1428_vm14, %v1980_v47, 0.0  ;;  %vm5440_vm5 = vcmp.eq.s32.totalorder %v3972_v24, %v3964_v14  ;;  %vm5441_vm11 = vcmp.eq.s32.totalorder %v3972_v24, %v5423_v58  ;;  %v5445_v47 = vld [vmem:[#allocation38_spill] sm:$0xff] }
 0x307   :  { %v1979_v17 = vsel %vm5439_vm7, %v4848_v5, 0.0  ;;  %v1981_v15 = vsel %vm5440_vm5, %v4848_v5, 0.0  ;;  %v1991_v0 = vsel %vm5441_vm11, %v4848_v5, 0.0  ;;  %vm5442_vm10 = vcmp.eq.s32.totalorder %v3972_v24, %v3962_v6 }
 0x308   :  { %2044 = vadd.xlane.f32.xlu1 %v2043_v22  ;;  %2041 = vadd.xlane.f32.xlu0 %v2040_v49  ;;  %v2028_v20 = vsel %vm1428_vm14, %v1979_v17, 0.0  ;;  %v2034_v50 = vsel %vm1428_vm14, %v1981_v15, 0.0  ;;  %v2064_v1 = vsel %vm1428_vm14, %v1991_v0, 0.0  ;;  %v1982_v36 = vsel %vm5442_vm10, %v4848_v5, 0.0 }
 0x309   :  { %v2037_v4 = vsel %vm1428_vm14, %v1982_v36, 0.0  ;;  %vm1070_vm14 = vcmp.ge.s32.totalorder %v3440_v33, 0  ;;  %vm1072_vm15 = vcmp.ge.s32.totalorder %v3443_v60, 0  ;;  %v5453_v60 = vld [vmem:[#allocation42_spill] sm:$0xff] }
 0x30c   :  { %2014 = vadd.xlane.f32.xlu1 %v2013_v46  ;;  %2011 = vadd.xlane.f32.xlu0 %v2010_v9  ;;  %v3441_v9 = vld [vmem:[%s5267_s1] sm:$0xff] }
 0x30d   :  { %vm1069_vm1 = vcmp.ge.s32.totalorder %v3441_v9, 0 }
 0x310   :  { %2050 = vadd.xlane.f32.xlu1 %v2049_v30  ;;  %2047 = vadd.xlane.f32.xlu0 %v2046_v53 }
 0x314   :  { %2020 = vadd.xlane.f32.xlu1 %v2019_v54  ;;  %2017 = vadd.xlane.f32.xlu0 %v2016_v41 }
 0x318   :  { %2056 = vadd.xlane.f32.xlu1 %v2055_v59  ;;  %2053 = vadd.xlane.f32.xlu0 %v2052_v57 }
 0x31c   :  { %2026 = vadd.xlane.f32.xlu1 %v2025_v18  ;;  %2023 = vadd.xlane.f32.xlu0 %v2022_v42 }
 0x320   :  { %2062 = vadd.xlane.f32.xlu1 %v2061_v27  ;;  %2059 = vadd.xlane.f32.xlu0 %v2058_v61  ;;  %v5444_v27 = vld [vmem:[#allocation39_spill] sm:$0xff] }
 0x324   :  { %2032 = vadd.xlane.f32.xlu1 %v2031_v34  ;;  %2029 = vadd.xlane.f32.xlu0 %v2028_v20 }
 0x328   :  { %2035 = vadd.xlane.f32.xlu1 %v2034_v50  ;;  %2065 = vadd.xlane.f32.xlu0 %v2064_v1 }
 0x32c   :  { %2038 = vadd.xlane.f32.xlu0 %v2037_v4 }
 0x385   :  { %v1997_v14 = vpop.xlane.xlu1 %1996  ;;  %v1994_v25 = vpop.xlane.xlu0 %1993 }
 0x386   :  { %v2068_v13 = vsub.f32 %v4675_v10, %v1997_v14  ;;  %v2067_v58 = vsub.f32 %v4673_v7, %v1994_v25  ;;  %v3445_v14 = vld [vmem:[%s5267_s1 + $0x28] sm:$0xff]  ;;  %v3446_v25 = vld [vmem:[%s5267_s1 + $0x80] sm:$0xff] }
 0x387   :  { %vm1074_vm12 = vcmp.ge.s32.totalorder %v3445_v14, 0  ;;  %vm1085_vm13 = vcmp.ge.s32.totalorder %v3446_v25, 0  ;;  %v5454_v14 = vld [vmem:[#allocation44_spill] sm:$0xff] }
 0x388   :  { %v2094_v40 = vmul.f32 1.442695, %v2068_v13  ;;  %v2092_v21 = vmul.f32 1.442695, %v2067_v58  ;;  %v5446_v13 = vld [vmem:[#allocation48_spill] sm:$0xff] }
 0x389   :  { %v2003_v38 = vpop.xlane.xlu1 %2002  ;;  %v2000_v23 = vpop.xlane.xlu0 %1999 }
 0x38a   :  { %3380 = vpow2.f32 %v2094_v40  ;;  %v2070_v44 = vsub.f32 %v4677_v63, %v2003_v38  ;;  %v2069_v2 = vsub.f32 %v4679_v39, %v2000_v23  ;;  %v5447_v40 = vld [vmem:[#allocation47_spill] sm:$0xff] }
 0x38b   :  { %3382 = vpow2.f32 %v2092_v21 }
 0x38c   :  { %v2096_v6 = vmul.f32 1.442695, %v2069_v2  ;;  %v2098_v24 = vmul.f32 1.442695, %v2070_v44 }
 0x38d   :  { %v2009_v5 = vpop.xlane.xlu1 %2008  ;;  %v2006_v45 = vpop.xlane.xlu0 %2005 }
 0x38e   :  { %v2072_v31 = vsub.f32 %v4683_v43, %v2009_v5  ;;  %v2071_v10 = vsub.f32 %v4681_v19, %v2006_v45  ;;  %3384 = vpow2.f32 %v2096_v6 }
 0x38f   :  { %3386 = vpow2.f32 %v2098_v24 }
 0x390   :  { %v2100_v7 = vmul.f32 1.442695, %v2071_v10  ;;  %v2102_v48 = vmul.f32 1.442695, %v2072_v31  ;;  %v3447_v31 = vld [vmem:[%s5267_s1 + $0x30] sm:$0xff]  ;;  %v3448_v10 = vld [vmem:[%s5267_s1 + $0x88] sm:$0xff] }
 0x391   :  { %v2045_v22 = vpop.xlane.xlu1 %2044  ;;  %v2042_v49 = vpop.xlane.xlu0 %2041  ;;  %vm1075_vm2 = vcmp.ge.s32.totalorder %v3447_v31, 0  ;;  %vm1086_vm0 = vcmp.ge.s32.totalorder %v3448_v10, 0 }
 0x392   :  { %v2084_v12 = vsub.f32 %v4727_v8, %v2045_v22  ;;  %v2083_v63 = vsub.f32 %v4713_v35, %v2042_v49  ;;  %3388 = vpow2.f32 %v2100_v7  ;;  %v5448_v7 = vld [vmem:[#allocation41_spill] sm:$0xff]  ;;  %v5449_v22 = vld [vmem:[#allocation40_spill] sm:$0xff] }
 0x393   :  { %3390 = vpow2.f32 %v2102_v48 }
 0x394   :  { %v2124_v39 = vmul.f32 1.442695, %v2083_v63  ;;  %v2126_v43 = vmul.f32 1.442695, %v2084_v12 }
 0x395   :  { %v2015_v19 = vpop.xlane.xlu1 %2014  ;;  %v2012_v46 = vpop.xlane.xlu0 %2011 }
 0x396   :  { %v2074_v8 = vsub.f32 %v4687_v29, %v2015_v19  ;;  %v2073_v35 = vsub.f32 %v4685_v11, %v2012_v46  ;;  %3392 = vpow2.f32 %v2124_v39  ;;  %v3442_v29 = vld [vmem:[%s5267_s1 + $0x10] sm:$0xff] }
 0x397   :  { %v3381_v32 = vpop.eup %3380  ;;  %3394 = vpow2.f32 %v2126_v43  ;;  %vm1071_vm3 = vcmp.ge.s32.totalorder %v3442_v29, 0 }
 0x398   :  { %v3383_v52 = vpop.eup %3382  ;;  %v2104_v30 = vmul.f32 1.442695, %v2073_v35  ;;  %v4991_v53 = vsel %vm1070_vm14, %v3381_v32, 0.0  ;;  %v2106_v37 = vmul.f32 1.442695, %v2074_v8  ;;  %v3449_v8 = vld [vmem:[%s5267_s1 + $0x38] sm:$0xff] }
 0x399   :  { %v2051_v26 = vpop.xlane.xlu1 %2050  ;;  %2174 = vperm.xlu0 %3316, %v4991_v53   ;;  %v4994_v54 = vsel %vm1069_vm1, %v3383_v52, 0.0  ;;  %v2048_v41 = vpop.xlane.xlu0 %2047  ;;  %vm1076_vm4 = vcmp.ge.s32.totalorder %v3449_v8, 0  ;;  %v3450_v35 = vld [vmem:[%s5267_s1 + $0x90] sm:$0xff]  ;;  %v5450_v32 = vld [vmem:[#allocation50_spill] sm:$0xff]  ;;  %v3459_v8 = vld [vmem:[%s5267_s1 + $0x60] sm:$0xff] }
 0x39a   :  { %v2086_v11 = vsub.f32 %v4764_v51, %v2051_v26  ;;  %2169 = vperm.xlu1 %3317, %v4994_v54   ;;  %v2085_v56 = vsub.f32 %v5443_v55, %v2048_v41  ;;  %3396 = vpow2.f32 %v2104_v30  ;;  %v3444_v51 = vld [vmem:[%s5267_s1 + $0x20] sm:$0xff]  ;;  %vm1087_vm8 = vcmp.ge.s32.totalorder %v3450_v35, 0  ;;  %v3460_v35 = vld [vmem:[%s5267_s1 + $0xb8] sm:$0xff] }
 0x39b   :  { %v3385_v59 = vpop.eup %3384  ;;  %3398 = vpow2.f32 %v2106_v37  ;;  %vm1073_vm9 = vcmp.ge.s32.totalorder %v3444_v51, 0  ;;  %v5451_v30 = vld [vmem:[#allocation49_spill] sm:$0xff] }
 0x39c   :  { %v2128_v57 = vmul.f32 1.442695, %v2085_v56  ;;  %v2130_v28 = vmul.f32 1.442695, %v2086_v11  ;;  %v5002_v18 = vsel %vm1071_vm3, %v3385_v59, 0.0  ;;  %v3387_v3 = vpop.eup %3386 }
 0x39d   :  { %v2021_v16 = vpop.xlane.xlu1 %2020  ;;  %v2018_v42 = vpop.xlane.xlu0 %2017  ;;  %v5013_v50 = vsel %vm1072_vm15, %v3387_v3, 0.0 }
 0x39e   :  { %v2076_v61 = vsub.f32 %v5444_v27, %v2021_v16  ;;  %2179 = vperm.xlu1 %3317, %v5002_v18   ;;  %v2075_v17 = vsub.f32 %v5445_v47, %v2018_v42  ;;  %3400 = vpow2.f32 %v2128_v57  ;;  %v3452_v16 = vld [vmem:[%s5267_s1 + $0x98] sm:$0xff]  ;;  %v5452_v42 = vld [vmem:[#allocation43_spill] sm:$0xff] }
 0x39f   :  { %v3389_v34 = vpop.eup %3388  ;;  %3402 = vpow2.f32 %v2130_v28  ;;  %v3451_v28 = vld [vmem:[%s5267_s1 + $0x40] sm:$0xff]  ;;  %vm1088_vm5 = vcmp.ge.s32.totalorder %v3452_v16, 0  ;;  %v3464_v16 = vld [vmem:[%s5267_s1 + $0x70] sm:$0xff] }
 0x3a0   :  { %v2108_v20 = vmul.f32 1.442695, %v2075_v17  ;;  %v2110_v15 = vmul.f32 1.442695, %v2076_v61  ;;  %v5015_v1 = vsel %vm1073_vm9, %v3389_v34, 0.0  ;;  %v3391_v4 = vpop.eup %3390  ;;  %vm1077_vm7 = vcmp.ge.s32.totalorder %v3451_v28, 0 }
 0x3a1   :  { %v2057_v0 = vpop.xlane.xlu1 %2056  ;;  %v2054_v36 = vpop.xlane.xlu0 %2053  ;;  %2189 = vperm.xlu0 %3316, %v5015_v1   ;;  %v5027_v6 = vsel %vm1074_vm12, %v3391_v4, 0.0  ;;  %v3454_v4 = vld [vmem:[%s5267_s1 + $0xa0] sm:$0xff]  ;;  %vm1081_vm9 = vcmp.ge.s32.totalorder %v3459_v8, 0  ;;  %vm1092_vm12 = vcmp.ge.s32.totalorder %v3460_v35, 0 }
 0x3a2   :  { %v2088_v58 = vsub.f32 %v5446_v13, %v2057_v0  ;;  %2184 = vperm.xlu1 %3317, %v5013_v50   ;;  %v2087_v21 = vsub.f32 %v5447_v40, %v2054_v36  ;;  %3404 = vpow2.f32 %v2108_v20  ;;  %v3453_v36 = vld [vmem:[%s5267_s1 + $0x48] sm:$0xff]  ;;  %vm1089_vm10 = vcmp.ge.s32.totalorder %v3454_v4, 0 }
 0x3a3   :  { %v3393_v38 = vpop.eup %3392  ;;  %3406 = vpow2.f32 %v2110_v15  ;;  %vm1078_vm11 = vcmp.ge.s32.totalorder %v3453_v36, 0 }
 0x3a4   :  { %v2132_v23 = vmul.f32 1.442695, %v2087_v21  ;;  %v2134_v44 = vmul.f32 1.442695, %v2088_v58  ;;  %v5029_v24 = vsel %vm1085_vm13, %v3393_v38, 0.0  ;;  %v3395_v45 = vpop.eup %3394 }
 0x3a5   :  { %v2027_v2 = vpop.xlane.xlu1 %2026  ;;  %v2024_v5 = vpop.xlane.xlu0 %2023  ;;  %2249 = vperm.xlu0 %3316, %v5029_v24   ;;  %v5041_v43 = vsel %vm1086_vm0, %v3395_v45, 0.0  ;;  %v5455_v45 = vld [vmem:[#allocation45_spill] sm:$0xff] }
 0x3a6   :  { %v2078_v48 = vsub.f32 %v5448_v7, %v2027_v2  ;;  %2194 = vperm.xlu1 %3317, %v5027_v6   ;;  %v2077_v49 = vsub.f32 %v5449_v22, %v2024_v5  ;;  %3408 = vpow2.f32 %v2132_v23  ;;  %v3455_v5 = vld [vmem:[%s5267_s1 + $0x50] sm:$0xff] }
 0x3a7   :  { %v3397_v12 = vpop.eup %3396  ;;  %3410 = vpow2.f32 %v2134_v44  ;;  %vm1079_vm14 = vcmp.ge.s32.totalorder %v3455_v5, 0  ;;  %v5460_v5 = vld [vmem:[#allocation17_spill] sm:$0xff] }
 0x3a8   :  { %v2112_v63 = vmul.f32 1.442695, %v2077_v49  ;;  %v2114_v39 = vmul.f32 1.442695, %v2078_v48  ;;  %v5043_v19 = vsel %vm1075_vm2, %v3397_v12, 0.0  ;;  %v3399_v9 = vpop.eup %3398  ;;  %v3457_v12 = vld [vmem:[%s5267_s1 + $0x58] sm:$0xff] }
 0x3a9   :  { %v2063_v33 = vpop.xlane.xlu1 %2062  ;;  %v2060_v46 = vpop.xlane.xlu0 %2059  ;;  %2199 = vperm.xlu0 %3316, %v5043_v19   ;;  %v5055_v55 = vsel %vm1076_vm4, %v3399_v9, 0.0  ;;  %vm1080_vm3 = vcmp.ge.s32.totalorder %v3457_v12, 0  ;;  %vm1083_vm4 = vcmp.ge.s32.totalorder %v3464_v16, 0  ;;  %v5462_v12 = vld [vmem:[#allocation29_spill] sm:$0xff] }
 0x3aa   :  { %v2090_v52 = vsub.f32 %v5450_v32, %v2063_v33  ;;  %2254 = vperm.xlu1 %3317, %v5041_v43   ;;  %v2089_v37 = vsub.f32 %v5451_v30, %v2060_v46  ;;  %3412 = vpow2.f32 %v2112_v63  ;;  %v3458_v63 = vld [vmem:[%s5267_s1 + $0xb0] sm:$0xff] }
 0x3ab   :  { %v3401_v26 = vpop.eup %3400  ;;  %3414 = vpow2.f32 %v2114_v39  ;;  %vm1091_vm15 = vcmp.ge.s32.totalorder %v3458_v63, 0 }
 0x3ac   :  { %v2136_v41 = vmul.f32 1.442695, %v2089_v37  ;;  %v2138_v29 = vmul.f32 1.442695, %v2090_v52  ;;  %v5057_v56 = vsel %vm1087_vm8, %v3401_v26, 0.0  ;;  %v3403_v57 = vpop.eup %3402  ;;  %v3461_v26 = vld [vmem:[%s5267_s1 + $0x68] sm:$0xff] }
 0x3ad   :  { %v2033_v11 = vpop.xlane.xlu1 %2032  ;;  %v2030_v59 = vpop.xlane.xlu0 %2029  ;;  %2259 = vperm.xlu0 %3316, %v5057_v56   ;;  %v5069_v34 = vsel %vm1088_vm5, %v3403_v57, 0.0  ;;  %vm1082_vm13 = vcmp.ge.s32.totalorder %v3461_v26, 0  ;;  %vm2417_vm8 = vcmask 7168  }
 0x3ae   :  { %v2080_v3 = vsub.f32 %v5452_v42, %v2033_v11  ;;  %2204 = vperm.xlu1 %3317, %v5055_v55   ;;  %v2079_v51 = vsub.f32 %v5453_v60, %v2030_v59  ;;  %3416 = vpow2.f32 %v2136_v41  ;;  %v3462_v41 = vld [vmem:[%s5267_s1 + $0xc0] sm:$0xff]  ;;  %v3463_v11 = vld [vmem:[%s5267_s1 + $0x78] sm:$0xff] }
 0x3af   :  { %v3405_v27 = vpop.eup %3404  ;;  %3418 = vpow2.f32 %v2138_v29  ;;  %vm1093_vm2 = vcmp.ge.s32.totalorder %v3462_v41, 0  ;;  %vm1084_vm0 = vcmp.ge.s32.totalorder %v3463_v11, 0  ;;  %v5465_v41 = vld [vmem:[#allocation20_spill] sm:$0xff] }
 0x3b0   :  { %v2116_v61 = vmul.f32 1.442695, %v2079_v51  ;;  %v2118_v47 = vmul.f32 1.442695, %v2080_v3  ;;  %v5071_v20 = vsel %vm1077_vm7, %v3405_v27, 0.0  ;;  %v3407_v0 = vpop.eup %3406  ;;  %vm2488_vm7 = vcmask 588800  }
 0x3b1   :  { %v2036_v17 = vpop.xlane.xlu1 %2035  ;;  %v2066_v15 = vpop.xlane.xlu0 %2065  ;;  %2209 = vperm.xlu0 %3316, %v5071_v20   ;;  %v5083_v38 = vsel %vm1078_vm11, %v3407_v0, 0.0  ;;  %vm5482_vm11 = vcmask 1046528  }
 0x3b2   :  { %v2081_v25 = vsub.f32 %v5454_v14, %v2036_v17  ;;  %2264 = vperm.xlu1 %3317, %v5069_v34   ;;  %v2091_v13 = vsub.f32 %v4841_v62, %v2066_v15  ;;  %3420 = vpow2.f32 %v2116_v61  ;;  %v3456_v62 = vld [vmem:[%s5267_s1 + $0xa8] sm:$0xff]  ;;  %v5457_v17 = vld [vmem:[#allocation13_spill] sm:$0xff]  ;;  %s3491_s1 = smov 97  }
 0x3b3   :  { %v3409_v58 = vpop.eup %3408  ;;  %3422 = vpow2.f32 %v2118_v47  ;;  %vm1090_vm1 = vcmp.ge.s32.totalorder %v3456_v62, 0  ;;  %v5456_v61 = vld [vmem:[#allocation14_spill] sm:$0xff] }
 0x3b4   :  { %v2140_v40 = vmul.f32 1.442695, %v2091_v13  ;;  %v2120_v21 = vmul.f32 1.442695, %v2081_v25  ;;  %v5085_v23 = vsel %vm1089_vm10, %v3409_v58, 0.0  ;;  %v3411_v2 = vpop.eup %3410  ;;  %v5458_v25 = vld [vmem:[#allocation15_spill] sm:$0xff]  ;;  %vm5483_vm10 = vmmov %vm5482_vm11 }
 0x3b5   :  { %v2039_v44 = vpop.xlane.xlu0 %2038  ;;  %2269 = vperm.xlu0 %3316, %v5085_v23   ;;  %v5096_v48 = vsel %vm1090_vm1, %v3411_v2, 0.0  ;;  %v5459_v58 = vld [vmem:[#allocation16_spill] sm:$0xff]  ;;  %vm5485_vm1 = vmmov %vm5483_vm10 }
 0x3b6   :  { %2214 = vperm.xlu1 %3317, %v5083_v38   ;;  %v2082_v31 = vsub.f32 %v5455_v45, %v2039_v44  ;;  %3424 = vpow2.f32 %v2140_v40  ;;  %v5461_v45 = vld [vmem:[#allocation18_spill] sm:$0xff] }
 0x3b7   :  { %v3413_v10 = vpop.eup %3412  ;;  %3426 = vpow2.f32 %v2120_v21 }
 0x3b8   :  { %v2122_v7 = vmul.f32 1.442695, %v2082_v31  ;;  %v5098_v22 = vsel %vm1079_vm14, %v3413_v10, 0.0  ;;  %v3415_v49 = vpop.eup %3414  ;;  %vm5484_vm14 = vmmov %vm5483_vm10 }
 0x3b9   :  { %2219 = vperm.xlu0 %3316, %v5098_v22   ;;  %v5108_v33 = vsel %vm1080_vm3, %v3415_v49, 0.0 }
 0x3ba   :  { %3428 = vpow2.f32 %v2122_v7  ;;  %2274 = vperm.xlu1 %3317, %v5096_v48  }
 0x3bb   :  { %v3417_v39 = vpop.eup %3416 }
 0x3bc   :  { %v5110_v46 = vsel %vm1091_vm15, %v3417_v39, 0.0  ;;  %v3419_v9 = vpop.eup %3418  ;;  %v5463_v39 = vld [vmem:[#allocation30_spill] sm:$0xff] }
 0x3bd   :  { %2279 = vperm.xlu0 %3316, %v5110_v46   ;;  %v5120_v52 = vsel %vm1092_vm12, %v3419_v9, 0.0 }
 0x3be   :  { %2224 = vperm.xlu1 %3317, %v5108_v33  }
 0x3bf   :  { %v3421_v32 = vpop.eup %3420 }
 0x3c0   :  { %v5122_v30 = vsel %vm1081_vm9, %v3421_v32, 0.0  ;;  %v3423_v37 = vpop.eup %3422 }
 0x3c1   :  { %2229 = vperm.xlu0 %3316, %v5122_v30   ;;  %v5135_v59 = vsel %vm1082_vm13, %v3423_v37, 0.0  ;;  %v5464_v37 = vld [vmem:[#allocation19_spill] sm:$0xff] }
 0x3c2   :  { %2284 = vperm.xlu1 %3317, %v5120_v52  }
 0x3c3   :  { %v3425_v29 = vpop.eup %3424 }
 0x3c4   :  { %v5137_v57 = vsel %vm1093_vm2, %v3425_v29, 0.0  ;;  %v3427_v28 = vpop.eup %3426 }
 0x3c5   :  { %2289 = vperm.xlu0 %3316, %v5137_v57   ;;  %v5146_v60 = vsel %vm1083_vm4, %v3427_v28, 0.0 }
 0x3c6   :  { %2234 = vperm.xlu1 %3317, %v5135_v59  }
 0x3c7   :  { %v3429_v42 = vpop.eup %3428 }
 0x3c8   :  { %v5144_v3 = vsel %vm1084_vm0, %v3429_v42, 0.0  ;;  %v5466_v42 = vld [vmem:[#allocation31_spill] sm:$0xff] }
 0x3c9   :  { %2244 = vperm.xlu0 %3316, %v5144_v3  }
 0x3ca   :  { %2239 = vperm.xlu1 %3317, %v5146_v60  }
 0x414   :  { %v2175_v51 = vpop.permute.xlu0 %2174 }
 0x415   :  { %v2170_v27 = vpop.permute.xlu1 %2169  ;;  %v2293_v47 = vmul.f32 %v2175_v51, %v5456_v61 }
 0x416   :  { %v2292_v15 = vmul.f32 %v2170_v27, %v5457_v17  ;;  %v5467_v27 = vld [vmem:[#allocation32_spill] sm:$0xff] }
 0x418   :  { %v3318_v0 = vpack.i.bf16 %v2293_v47, %v2292_v15 }
 0x419   :  { %v2180_v36 = vpop.permute.xlu1 %2179 }
 0x41a   :  { %3319 = vrot.lane.b32.xlu1 %v3318_v0, %s3491_s1  ;;  %v2294_v13 = vmul.f32 %v2180_v36, %v5458_v25  ;;  %v5468_v0 = vld [vmem:[#allocation21_spill] sm:$0xff] }
 0x41c   :  { %v2190_v14 = vpop.permute.xlu0 %2189 }
 0x41d   :  { %v2185_v4 = vpop.permute.xlu1 %2184  ;;  %v2296_v62 = vmul.f32 %v2190_v14, %v5460_v5 }
 0x41e   :  { %v2295_v40 = vmul.f32 %v2185_v4, %v5459_v58  ;;  %v5469_v4 = vld [vmem:[#allocation22_spill] sm:$0xff] }
 0x420   :  { %v3323_v21 = vpack.i.bf16 %v2295_v40, %v2294_v13  ;;  %v2250_v2 = vpop.permute.xlu0 %2249  ;;  %v5470_v40 = vld [vmem:[#allocation33_spill] sm:$0xff] }
 0x421   :  { %v2195_v44 = vpop.permute.xlu1 %2194  ;;  %v2308_v63 = vmul.f32 %v2250_v2, %v5462_v12 }
 0x422   :  { %v2297_v31 = vmul.f32 %v2195_v44, %v5461_v45  ;;  %3324 = vrot.lane.b32.xlu0 %v3323_v21, %s3491_s1  ;;  %v5471_v44 = vld [vmem:[#allocation34_spill] sm:$0xff] }
 0x424   :  { %v3328_v10 = vpack.i.bf16 %v2297_v31, %v2296_v62  ;;  %v2200_v49 = vpop.permute.xlu0 %2199  ;;  %v5472_v31 = vld [vmem:[#allocation23_spill] sm:$0xff] }
 0x425   :  { %v2255_v7 = vpop.permute.xlu1 %2254  ;;  %v2298_v26 = vmul.f32 %v2200_v49, %v5464_v37 }
 0x426   :  { %v2309_v9 = vmul.f32 %v2255_v7, %v5463_v39  ;;  %3329 = vrot.lane.b32.xlu1 %v3328_v10, %s3491_s1  ;;  %v5473_v7 = vld [vmem:[#allocation24_spill] sm:$0xff] }
 0x428   :  { %v3333_v8 = vpack.i.bf16 %v2309_v9, %v2308_v63  ;;  %v2260_v32 = vpop.permute.xlu0 %2259  ;;  %v5474_v9 = vld [vmem:[#allocation35_spill] sm:$0xff] }
 0x429   :  { %v2205_v35 = vpop.permute.xlu1 %2204  ;;  %v2310_v51 = vmul.f32 %v2260_v32, %v5466_v42 }
 0x42a   :  { %v2299_v29 = vmul.f32 %v2205_v35, %v5465_v41  ;;  %3334 = vrot.lane.b32.xlu0 %v3333_v8, %s3491_s1  ;;  %v5475_v35 = vld [vmem:[#allocation36_spill] sm:$0xff] }
 0x42c   :  { %v3338_v11 = vpack.i.bf16 %v2299_v29, %v2298_v26  ;;  %v2210_v16 = vpop.permute.xlu0 %2209  ;;  %v5476_v29 = vld [vmem:[#allocation25_spill] sm:$0xff] }
 0x42d   :  { %v2265_v28 = vpop.permute.xlu1 %2264  ;;  %v2300_v36 = vmul.f32 %v2210_v16, %v5468_v0 }
 0x42e   :  { %v2311_v61 = vmul.f32 %v2265_v28, %v5467_v27  ;;  %3339 = vrot.lane.b32.xlu1 %v3338_v11, %s3491_s1  ;;  %v5477_v28 = vld [vmem:[#allocation26_spill] sm:$0xff] }
 0x430   :  { %v3343_v47 = vpack.i.bf16 %v2311_v61, %v2310_v51  ;;  %v2270_v15 = vpop.permute.xlu0 %2269  ;;  %v5478_v61 = vld [vmem:[#allocation37_spill] sm:$0xff] }
 0x431   :  { %v2215_v17 = vpop.permute.xlu1 %2214  ;;  %v2312_v21 = vmul.f32 %v2270_v15, %v5470_v40 }
 0x432   :  { %v2301_v14 = vmul.f32 %v2215_v17, %v5469_v4  ;;  %3344 = vrot.lane.b32.xlu0 %v3343_v47, %s3491_s1  ;;  %v5479_v17 = vld [vmem:[#allocation27_spill] sm:$0xff] }
 0x434   :  { %v3348_v25 = vpack.i.bf16 %v2301_v14, %v2300_v36  ;;  %v2220_v58 = vpop.permute.xlu0 %2219  ;;  %v5480_v36 = vld [vmem:[#allocation28_spill] sm:$0xff] }
 0x435   :  { %v2275_v13 = vpop.permute.xlu1 %2274  ;;  %v2302_v10 = vmul.f32 %v2220_v58, %v5472_v31 }
 0x436   :  { %v2313_v2 = vmul.f32 %v2275_v13, %v5471_v44  ;;  %3349 = vrot.lane.b32.xlu1 %v3348_v25, %s3491_s1 }
 0x438   :  { %v3353_v5 = vpack.i.bf16 %v2313_v2, %v2312_v21  ;;  %v2280_v45 = vpop.permute.xlu0 %2279 }
 0x439   :  { %v2225_v62 = vpop.permute.xlu1 %2224  ;;  %v2314_v8 = vmul.f32 %v2280_v45, %v5474_v9 }
 0x43a   :  { %v2303_v49 = vmul.f32 %v2225_v62, %v5473_v7  ;;  %3354 = vrot.lane.b32.xlu0 %v3353_v5, %s3491_s1 }
 0x43c   :  { %v3358_v12 = vpack.i.bf16 %v2303_v49, %v2302_v10  ;;  %v2230_v39 = vpop.permute.xlu0 %2229 }
 0x43d   :  { %v2285_v63 = vpop.permute.xlu1 %2284  ;;  %v2304_v11 = vmul.f32 %v2230_v39, %v5476_v29 }
 0x43e   :  { %v2315_v32 = vmul.f32 %v2285_v63, %v5475_v35  ;;  %3359 = vrot.lane.b32.xlu1 %v3358_v12, %s3491_s1 }
 0x440   :  { %v3363_v37 = vpack.i.bf16 %v2315_v32, %v2314_v8  ;;  %v2290_v41 = vpop.permute.xlu0 %2289 }
 0x441   :  { %v2235_v26 = vpop.permute.xlu1 %2234  ;;  %v2316_v47 = vmul.f32 %v2290_v41, %v5478_v61 }
 0x442   :  { %v2305_v16 = vmul.f32 %v2235_v26, %v5477_v28  ;;  %3364 = vrot.lane.b32.xlu0 %v3363_v37, %s3491_s1 }
 0x444   :  { %v3368_v42 = vpack.i.bf16 %v2305_v16, %v2304_v11  ;;  %v2245_v27 = vpop.permute.xlu0 %2244 }
 0x445   :  { %v2240_v51 = vpop.permute.xlu1 %2239  ;;  %v2307_v4 = vmul.f32 %v2245_v27, %v5480_v36 }
 0x446   :  { %v2306_v15 = vmul.f32 %v2240_v51, %v5479_v17  ;;  %3369 = vrot.lane.b32.xlu1 %v3368_v42, %s3491_s1 }
 0x448   :  { %v3373_v0 = vpack.i.bf16 %v2306_v15, %v2316_v47 }
 0x44a   :  { %3374 = vrot.lane.b32.xlu0 %v3373_v0, %s3491_s1  ;;  %2372 = vrot.lane.b32.xlu1 %v2307_v4, %s3491_s1 }
 0x48c   :  { %v3320_v14 = vpop.permute.xlu1 %3319 }
 0x48d   :  { %v3322_v25 = vunpack.i.h.bf16 %v3320_v14  ;;  %v3321_v13 = vunpack.i.l.bf16 %v3320_v14 }
 0x48f   :  { %v2419_v58 = vsel %vm2417_vm8, %v4991_v53, %v3322_v25  ;;  %v2418_v40 = vsel %vm2417_vm8, %v4994_v54, %v3321_v13 }
 0x490   :  { %v2443_v21 = vpack.c.bf16 %v2419_v58, %v2418_v40 }
 0x492   :  { %2456 = vxpose.xlu1.c.b16.start [1/8] (narrow) %v2443_v21, 48 }
 0x494   :  { %v3325_v44 = vpop.permute.xlu0 %3324 }
 0x495   :  { %v3327_v2 = vunpack.i.h.bf16 %v3325_v44  ;;  %v3326_v5 = vunpack.i.l.bf16 %v3325_v44 }
 0x497   :  { %v2421_v62 = vsel %vm2417_vm8, %v5013_v50, %v3327_v2  ;;  %v2420_v45 = vsel %vm2417_vm8, %v5002_v18, %v3326_v5 }
 0x498   :  { %v2444_v31 = vpack.c.bf16 %v2421_v62, %v2420_v45  ;;  %v3330_v10 = vpop.permute.xlu1 %3329 }
 0x499   :  { %v3332_v7 = vunpack.i.h.bf16 %v3330_v10  ;;  %v3331_v49 = vunpack.i.l.bf16 %v3330_v10 }
 0x49a   :  { %2457 = vxpose.xlu1.c.b16.cont [2/8] (narrow) %v2444_v31, 48 }
 0x49b   :  { %v2423_v53 = vsel %vm2417_vm8, %v5027_v6, %v3332_v7  ;;  %v2422_v54 = vsel %vm2417_vm8, %v5015_v1, %v3331_v49 }
 0x49c   :  { %v2445_v12 = vpack.c.bf16 %v2423_v53, %v2422_v54  ;;  %v3335_v63 = vpop.permute.xlu0 %3334  ;;  %v5243_v53 = vld [vmem:[%s5281_s15] ss:$0 sm:$0xff] }
 0x49d   :  { %v3337_v39 = vunpack.i.h.bf16 %v3335_v63  ;;  %v3336_v9 = vunpack.i.l.bf16 %v3335_v63 }
 0x49e   :  { %2458 = vxpose.xlu1.c.b16.cont [3/8] (narrow) %v2445_v12, 48 }
 0x49f   :  { %v2435_v50 = vsel %vm2417_vm8, %v5041_v43, %v3337_v39  ;;  %v2434_v18 = vsel %vm2417_vm8, %v5029_v24, %v3336_v9 }
 0x4a0   :  { %v2451_v8 = vpack.c.bf16 %v2435_v50, %v2434_v18  ;;  %v3340_v35 = vpop.permute.xlu1 %3339 }
 0x4a1   :  { %v3342_v32 = vunpack.i.h.bf16 %v3340_v35  ;;  %v3341_v37 = vunpack.i.l.bf16 %v3340_v35 }
 0x4a2   :  { %2472 = vxpose.xlu0.c.b16.start [1/5] (short) (narrow) %v2451_v8, 48 }
 0x4a3   :  { %v2425_v6 = vsel %vm2417_vm8, %v5055_v55, %v3342_v32  ;;  %v2424_v1 = vsel %vm2417_vm8, %v5043_v19, %v3341_v37 }
 0x4a4   :  { %v2446_v26 = vpack.c.bf16 %v2425_v6, %v2424_v1  ;;  %v3345_v41 = vpop.permute.xlu0 %3344  ;;  %v5481_v6 = vlaneseq }
 0x4a5   :  { %v3347_v29 = vunpack.i.h.bf16 %v3345_v41  ;;  %v3346_v11 = vunpack.i.l.bf16 %v3345_v41 }
 0x4a6   :  { %2459 = vxpose.xlu1.c.b16.cont [4/8] (narrow) %v2446_v26, 48  ;;  %v2561_v1 = vshrl.u32 %v5481_v6, 7 }
 0x4a7   :  { %v2437_v43 = vsel %vm2417_vm8, %v5069_v34, %v3347_v29  ;;  %v2436_v24 = vsel %vm2417_vm8, %v5057_v56, %v3346_v11 }
 0x4a8   :  { %v2452_v28 = vpack.c.bf16 %v2437_v43, %v2436_v24  ;;  %v3350_v16 = vpop.permute.xlu1 %3349  ;;  %v2562_v29 = vsub.s32 0, %v2561_v1 }
 0x4a9   :  { %v3352_v42 = vunpack.i.h.bf16 %v3350_v16  ;;  %v3351_v51 = vunpack.i.l.bf16 %v3350_v16 }
 0x4aa   :  { %2473 = vxpose.xlu0.c.b16.cont [2/5] (short) (narrow) %v2452_v28, 48 }
 0x4ab   :  { %v2427_v55 = vsel %vm2417_vm8, %v5083_v38, %v3352_v42  ;;  %v2426_v19 = vsel %vm2417_vm8, %v5071_v20, %v3351_v51 }
 0x4ac   :  { %v2447_v27 = vpack.c.bf16 %v2427_v55, %v2426_v19  ;;  %v3355_v61 = vpop.permute.xlu0 %3354 }
 0x4ad   :  { %v3357_v47 = vunpack.i.h.bf16 %v3355_v61  ;;  %v3356_v17 = vunpack.i.l.bf16 %v3355_v61 }
 0x4ae   :  { %2460 = vxpose.xlu1.c.b16.cont [5/8] (narrow) %v2447_v27, 48 }
 0x4af   :  { %v2439_v34 = vsel %vm2417_vm8, %v5096_v48, %v3357_v47  ;;  %v2438_v56 = vsel %vm2417_vm8, %v5085_v23, %v3356_v17 }
 0x4b0   :  { %v2453_v15 = vpack.c.bf16 %v2439_v34, %v2438_v56  ;;  %v3360_v0 = vpop.permute.xlu1 %3359 }
 0x4b1   :  { %v3362_v36 = vunpack.i.h.bf16 %v3360_v0  ;;  %v3361_v4 = vunpack.i.l.bf16 %v3360_v0 }
 0x4b2   :  { %2474 = vxpose.xlu0.c.b16.cont [3/5] (short) (narrow) %v2453_v15, 48 }
 0x4b3   :  { %v2429_v38 = vsel %vm2417_vm8, %v5108_v33, %v3362_v36  ;;  %v2428_v20 = vsel %vm2417_vm8, %v5098_v22, %v3361_v4 }
 0x4b4   :  { %v2448_v14 = vpack.c.bf16 %v2429_v38, %v2428_v20  ;;  %v3365_v25 = vpop.permute.xlu0 %3364 }
 0x4b5   :  { %v3367_v13 = vunpack.i.h.bf16 %v3365_v25  ;;  %v3366_v58 = vunpack.i.l.bf16 %v3365_v25 }
 0x4b6   :  { %2461 = vxpose.xlu1.c.b16.cont [6/8] (narrow) %v2448_v14, 48  ;;  %v2864_v14 = vld [vmem:[%s5280_s14] ss:$0 sm:$0xff]  ;;  %s3492_s14 = smov [#allocation8]  }
 0x4b7   :  { %v2441_v48 = vsel %vm2417_vm8, %v5120_v52, %v3367_v13  ;;  %v2440_v23 = vsel %vm2417_vm8, %v5110_v46, %v3366_v58  ;;  %s2682_s11 = sshll.u32 %s3492_s14, 4  ;;  %s2683_s11 = int_to_ptr.vmem [resolvable:$true] %s2682_s11 }
 0x4b8   :  { %v2454_v40 = vpack.c.bf16 %v2441_v48, %v2440_v23  ;;  %v3370_v21 = vpop.permute.xlu1 %3369  ;;  %v2620_v23 = vld [vmem:[#allocation4 + $0x8] sm:$0xff]  ;;  %s3465_s13 = scalar_lea.vmem %s2683_s11, 256  ;;  %p3470_p1 = scmp.lt.s32.totalorder %s2683_s11, %s2683_s11 }
 0x4b9   :  { %v3372_v44 = vunpack.i.h.bf16 %v3370_v21  ;;  %v3371_v2 = vunpack.i.l.bf16 %v3370_v21  ;;  %p3466_p0 = scmp.ne.s32.totalorder %s2683_s11, %s3465_s13  ;;  %p3471_p2 = scmp.lt.s32.totalorder %s3465_s13, %s3465_s13 }
 0x4ba   :  { %2475 = vxpose.xlu0.c.b16.cont [4/5] (short) (narrow) %v2454_v40, 48 }
 0x4bb   :  { %v2431_v33 = vsel %vm2417_vm8, %v5135_v59, %v3372_v44  ;;  %v2430_v22 = vsel %vm2417_vm8, %v5122_v30, %v3371_v2  ;;  %v5238_v30 = vld [vmem:[#allocation4] sm:$0xff]  ;;  %v2644_v44 = vmul.f32 %v5243_v53, %v2620_v23  ;;  %p3472_p3 = por %p3471_p2, %p3470_p1 }
 0x4bc   :  { %v2449_v5 = vpack.c.bf16 %v2431_v33, %v2430_v22  ;;  %v2373_v62 = vpop.permute.xlu1 %2372  ;;  %v3375_v45 = vpop.permute.xlu0 %3374 }
 0x4bd   :  { %v3377_v31 = vunpack.i.h.bf16 %v3375_v45  ;;  %v3376_v10 = vunpack.i.l.bf16 %v3375_v45  ;;  %v2433_v46 = vsel %vm2417_vm8, %v5144_v3, %v2373_v62  ;;  %v2643_v3 = vmul.f32 %v5243_v53, %v5238_v30  ;;  %p3473_p4 = pnand %p3472_p3, %p3466_p0 }
 0x4be   :  { %2462 = vxpose.xlu1.c.b16.cont [7/8] (narrow) %v2449_v5, 48  ;;  %v2648_v2 = vsel %vm335_vm6, %v2644_v44, 0.0 }
 0x4bf   :  { %v2432_v52 = vsel %vm2417_vm8, %v5146_v60, %v3377_v31  ;;  %v2442_v7 = vsel %vm2417_vm8, %v5137_v57, %v3376_v10  ;;  %v2645_v54 = vsel %vm335_vm6, %v2643_v3, 0.0 }
 0x4c0   :  { %v2450_v49 = vpack.c.bf16 %v2433_v46, %v2432_v52  ;;  %v2455_v59 = vpack.c.bf16 %v2442_v7, %v2442_v7 }
 0x4c2   :  { %2476 = vxpose.xlu0.c.b16.end [5/5] (short) (narrow) %v2455_v59, 48  ;;  %2463 = vxpose.xlu1.c.b16.end [8/8] (narrow) %v2450_v49, 48 }
 0x4cf   :  { %2646 = vadd.xlane.f32.xlu1 %v2645_v54 }
 0x508   :  { %v2464_v60 = vpop.trf.xlu1 }
 0x50c   :  { %v2465_v63 = vpop.trf.xlu1 }
 0x510   :  { %v2466_v9 = vpop.trf.xlu1 }
 0x514   :  { %v2480_v57 = vpop.trf.xlu0 }
 0x515   :  { %2861 = vmatprep.mubr.msk.bf16.mxu1 %vm2488_vm7, %v2480_v57 }
 0x516   :  { %2534 = vmatmul.mubr.bf16.vlgmr.msra.gmra.mxu1 %v2464_v60 }
 0x518   :  { %v2481_v12 = vpop.trf.xlu0 }
 0x519   :  { %2862 = vmatprep.mubr.msk.bf16.mxu1 %vm2488_vm7, %v2481_v12 }
 0x51c   :  { %v2482_v39 = vpop.trf.xlu0 }
 0x51e   :  { %2542 = vmatmul.mubr.bf16.gmra.mxu1 %v2465_v63 }
 0x51f   :  { %2863 = vmatprep.mubr.msk.bf16.mxu1 %vm2488_vm7, %v2482_v39 }
 0x526   :  { %2550 = vmatmul.mubr.bf16.gmra.mxu1 %v2466_v9 }
 0x558   :  { %v2647_v33 = vpop.xlane.xlu1 %2646 }
 0x5d6   :  { %v2535_v50 = vpop.f32.mrf.mxu1 }
 0x5d7   :  { %vm2557_vm5 = vcmp.gt.f32.partialorder %v2535_v50, 0.0 }
 0x5d8   :  { %v2558_v18 = vsel %vm2557_vm5, %v2535_v50, 1.0  ;;  %v2537_v8 = vpop.f32.mrf.mxu1 }
 0x5d9   :  { %3430 = vrcp.f32 %v2558_v18 }
 0x5da   :  { %v2538_v35 = vpop.f32.mrf.mxu1 }
 0x5dc   :  { %v2540_v32 = vpop.f32.mrf.mxu1 }
 0x5de   :  { %v2543_v37 = vpop.f32.mrf.mxu1 }
 0x5e0   :  { %v2545_v26 = vpop.f32.mrf.mxu1 }
 0x5e2   :  { %v2546_v41 = vpop.f32.mrf.mxu1 }
 0x5e4   :  { %v2548_v11 = vpop.f32.mrf.mxu1 }
 0x5e6   :  { %v3431_v43 = vpop.eup %3430  ;;  %v2551_v24 = vpop.f32.mrf.mxu1 }
 0x5e7   :  { %v2563_v28 = vrot.slane %v3431_v43, %v2562_v29 }
 0x5e8   :  { %v2553_v16 = vpop.f32.mrf.mxu1 }
 0x5e9   :  { %v2564_v42 = vmul.f32 %v2563_v28, %v2535_v50  ;;  %v2565_v51 = vmul.f32 %v2563_v28, %v2538_v35  ;;  %v2566_v55 = vmul.f32 %v2563_v28, %v2543_v37  ;;  %v2567_v34 = vmul.f32 %v2563_v28, %v2546_v41 }
 0x5ea   :  { %v2554_v19 = vpop.f32.mrf.mxu1  ;;  %v2568_v0 = vmul.f32 %v2563_v28, %v2551_v24 }
 0x5eb   :  { %v2574_v27 = vrot.slane %v2564_v42, 1  ;;  %v2575_v61 = vrot.slane %v2565_v51, 1  ;;  %v2577_v17 = vrot.slane %v2566_v55, 1  ;;  %v2579_v15 = vrot.slane %v2567_v34, 1 }
 0x5ec   :  { %v2555_v47 = vpop.f32.mrf.mxu1  ;;  %v2581_v4 = vrot.slane %v2568_v0, 1 }
 0x5ed   :  { %v2576_v56 = vsel %vm5482_vm11, %v2574_v27, %v2575_v61  ;;  %v2578_v36 = vsel %vm5483_vm10, %v2575_v61, %v2577_v17  ;;  %v2580_v38 = vsel %vm5484_vm14, %v2577_v17, %v2579_v15 }
 0x5ee   :  { %2587 = vxpose.xlu0.b32.start [1/4] (short) (narrow) %v2576_v56, 16  ;;  %v2582_v20 = vsel %vm5485_vm1, %v2579_v15, %v2581_v4 }
 0x5f2   :  { %2588 = vxpose.xlu0.b32.cont [2/4] (short) (narrow) %v2578_v36, 16 }
 0x5f6   :  { %2589 = vxpose.xlu0.b32.cont [3/4] (short) (narrow) %v2580_v38, 16 }
 0x5fa   :  { %2590 = vxpose.xlu0.b32.end [4/4] (short) (narrow) %v2582_v20, 16 }
 0x66a   :  { %v2603_v25 = vpop.trf.xlu0 }
 0x66b   :  { %v2628_v13 = vmul.f32 %v2864_v14, %v2603_v25 }
 0x66d   :  { %v2630_v58 = vsel %vm335_vm6, %v2628_v13, 0.0 }
 0x66e   :  { %2631 = vadd.xlane.f32.xlu0 %v2630_v58  ;;  %v2604_v48 = vpop.trf.xlu0 }
 0x66f   :  { %v2629_v40 = vmul.f32 %v2864_v14, %v2604_v48 }
 0x671   :  { %v2633_v21 = vsel %vm335_vm6, %v2629_v40, 0.0 }
 0x672   :  { %2634 = vadd.xlane.f32.xlu1 %v2633_v21 }
 0x676   :  { %2649 = vadd.xlane.f32.xlu1 %v2648_v2 }
 0x6f7   :  { %v2632_v22 = vpop.xlane.xlu0 %2631 }
 0x6f8   :  { %v2651_v5 = vadd.f32 %v2647_v33, %v2632_v22 }
 0x6fa   :  { %v2866_v62 = vmul.f32 -1.442695, %v2651_v5 }
 0x6fb   :  { %v2635_v45 = vpop.xlane.xlu1 %2634 }
 0x6fc   :  { %3432 = vpow2.f32 %v2866_v62 }
 0x6ff   :  { %v2650_v31 = vpop.xlane.xlu1 %2649 }
 0x700   :  { %v2652_v10 = vadd.f32 %v2650_v31, %v2635_v45 }
 0x702   :  { %v2867_v46 = vmul.f32 -1.442695, %v2652_v10 }
 0x704   :  { %3434 = vpow2.f32 %v2867_v46 }
 0x709   :  { %v3433_v52 = vpop.eup %3432 }
 0x70a   :  { %v2659_v7 = vadd.f32 1.0, %v3433_v52 }
 0x70c   :  { %3436 = vrcp.f32 %v2659_v7 }
 0x711   :  { %v3435_v49 = vpop.eup %3434 }
 0x712   :  { %v2660_v59 = vadd.f32 1.0, %v3435_v49 }
 0x714   :  { %3438 = vrcp.f32 %v2660_v59 }
 0x719   :  { %v3437_v53 = vpop.eup %3436 }
 0x71a   :  { %v2667_v3 = vsub.f32 1.0, %v3437_v53  ;;  %v2665_v54 = vmul.f32 %v3437_v53, %v5238_v30 }
 0x71c   :  { %v2669_v60 = vmul.f32 %v2667_v3, %v2603_v25 }
 0x71e   :  { %v2671_v57 = vadd.f32 %v2669_v60, %v2665_v54 }
 0x720   :  { %v2673_v12 = vsel %vm335_vm6, %v2671_v57, 0.0 }
 0x721   :  { %v3439_v63 = vpop.eup %3438  ;;  %2675 = vst [vmem:[#allocation8] sm:$0xff] %v2673_v12 }
 0x722   :  { %v2668_v39 = vsub.f32 1.0, %v3439_v63  ;;  %v2666_v9 = vmul.f32 %v3439_v63, %v2620_v23 }
 0x724   :  { %v2670_v50 = vmul.f32 %v2668_v39, %v2604_v48 }
 0x726   :  { %v2672_v18 = vadd.f32 %v2670_v50, %v2666_v9 }
 0x728   :  { %v2674_v8 = vsel %vm335_vm6, %v2672_v18, 0.0 }
 0x729   :  { %2676 = vst [vmem:[#allocation8 + $0x8] sm:$0xff] %v2674_v8 }
 0x72a   :  { %3476 = shalt.err (!%p3473_p4)
}
 0x72b   :  { %s3493_s17 = smov 128   ;;  %s3494_s18 = smov 8  }
 0x72c   :  { %2688 = dma.vmem_to_hbm [thread:$0]  %s2683_s11, 256, %s5282_s16, [#allocation9], %s3493_s17, %s3493_s17, %s3494_s18  }
 0x72d   :  { %3485 = dma.done.wait [#allocation9], 256  }
 0x72e   :  { %3486 = vsyncadd [#allocation9], 4294967040 }
 0x72f   :  { %2692 = vsyncpa [#allocation9], 1 }

</bundles_post_ra>
